<compile_context>
chip_gen: v5e
topology: v5e:2x2
jax: 0.10.0
libtpu: 0.0.40
codegen_flags: <defaults>
</compile_context>

<pallas_src>
import functools

import jax
import jax.numpy as jnp
from jax import lax
from jax.experimental import pallas as pl
from jax.experimental.pallas import tpu as pltpu

EPS = 1e-5        # PyTorch BatchNorm2d default eps
LANES = 128


def _round_up(x, m):
    return (x + m - 1) // m * m


def _device_kind():
    try:
        return jax.devices()[0].device_kind.lower()
    except Exception:
        return ""


_KIND = _device_kind()
_IS_V7 = ("v7" in _KIND) or ("tpu7" in _KIND)
# v6e / v7x have 2x256x256 MXUs -> pack taps pairwise (K = 2*Cp); v5e's MXU is
# 4x128x128 so K = Cp = 128 is already optimal there.
_KPACK = 2 if (_IS_V7 or "v6" in _KIND) else 1
# v7x has 64 MiB physical VMEM per TensorCore -> keep the scoped limit modest;
# v5e / v6e have 128 MiB so a larger limit is fine.
_VMEM_LIMIT = (40 if _IS_V7 else 64) * 1024 * 1024


def _cparams(n_axes):
    return pltpu.CompilerParams(
        dimension_semantics=("parallel",) * n_axes,
        vmem_limit_bytes=_VMEM_LIMIT,
    )


# ---------------- Pallas kernels ----------------

def _conv_bnstats_kernel(x_ref, w_ref, y_ref, st_ref, acc_ref,
                         *, taps, kpack, th, wo):
    """One (image, row-strip) step of a 3x3 conv as shifted MXU matmuls.

    x_ref : (1, slab_h, slab_w, Cin)   resident padded phase slab (bf16)
    w_ref : (n_groups, kpack*Cin, Cout) resident packed tap weights (bf16)
    y_ref : (1, TH*Wo, Cout)           bf16 conv-output strip
    st_ref: (1, 1, 2, Cout)            f32 per-strip [sum, sum-of-squares]
    acc_ref: (TH*Wo, Cout)             f32 VMEM scratch accumulator
    """
    rows = th * wo
    cin = x_ref.shape[-1]
    row0 = pl.program_id(1) * th
    if (th & (th - 1)) == 0:                    # power-of-two strip height:
        row0 = pl.multiple_of(row0, th)         # alignment hint for the slice

    n_groups = len(taps) // kpack
    for g in range(n_groups):                   # static, unrolled tap groups
        parts = []
        for rb, cb in taps[g * kpack:(g + 1) * kpack]:
            parts.append(
                x_ref[0, pl.ds(row0 + rb, th), cb:cb + wo, :].reshape(rows, cin))
        patch = parts[0] if kpack == 1 else jnp.concatenate(parts, axis=-1)
        contrib = jnp.dot(patch, w_ref[g], preferred_element_type=jnp.float32)
        if g == 0:
            acc_ref[...] = contrib              # no zero-init pass needed
        else:
            acc_ref[...] += contrib             # chained MXU accumulation

    acc = acc_ref[...]
    y_ref[0] = acc.astype(y_ref.dtype)          # bf16 intermediate to HBM
    ssum = jnp.sum(acc, axis=0, keepdims=True)
    ssq = jnp.sum(acc * acc, axis=0, keepdims=True)
    st_ref[0, 0] = jnp.concatenate([ssum, ssq], axis=0)   # [2, Cout] partials


def _bn_relu_kernel(y_ref, sc_ref, sh_ref, o_ref):
    """y * scale + shift (scale/shift from global batch stats), ReLU."""
    y = y_ref[...].astype(jnp.float32)
    o_ref[...] = jnp.maximum(y * sc_ref[...] + sh_ref[...], 0.0
                             ).astype(o_ref.dtype)


def _bn_res_relu_kernel(y_ref, xds_ref, wds_ref, sc_ref, sh_ref, o_ref):
    """BN affine + fused 1x1 stride-s downsample matmul residual + ReLU."""
    res = jnp.dot(xds_ref[...], wds_ref[...], preferred_element_type=jnp.float32)
    y = y_ref[...].astype(jnp.float32)
    o_ref[...] = jnp.maximum(y * sc_ref[...] + sh_ref[...] + res, 0.0
                             ).astype(o_ref.dtype)


# ---------------- pallas_call wrappers ----------------

def _pick_th(ho, wo, target_rows=1024):
    """Largest strip height TH dividing Ho with TH*Wo <= target rows and
    TH*Wo a multiple of 8 (clean (8,128) output blocks).  Falls back to the
    full image (block == full dim is always legal)."""
    best = ho
    for cand in range(1, ho + 1):
        if ho % cand or (cand * wo) % 8 or cand * wo > target_rows:
            continue
        best = cand
    return best


def _conv_bnstats(xph, w_taps, taps, ho, wo, th, kpack):
    n, slab_h, slab_w, cin = xph.shape
    cout = w_taps.shape[-1]
    n_strip = ho // th
    kernel = functools.partial(_conv_bnstats_kernel, taps=tuple(taps),
                               kpack=kpack, th=th, wo=wo)
    return pl.pallas_call(
        kernel,
        out_shape=(jax.ShapeDtypeStruct((n, ho * wo, cout), jnp.bfloat16),
                   jax.ShapeDtypeStruct((n, n_strip, 2, cout), jnp.float32)),
        grid=(n, n_strip),
        in_specs=[
            # Whole padded slab of image i, resident across the strip axis
            # (block index constant in j -> fetched once per image, no per-strip
            # halo re-DMA).
            pl.BlockSpec((1, slab_h, slab_w, cin), lambda i, j: (i, 0, 0, 0)),
            # Packed tap weights stay resident in VMEM.
            pl.BlockSpec(w_taps.shape, lambda i, j: (0, 0, 0)),
        ],
        out_specs=(
            pl.BlockSpec((1, th * wo, cout), lambda i, j: (i, j, 0)),
            pl.BlockSpec((1, 1, 2, cout), lambda i, j: (i, j, 0, 0)),
        ),
        scratch_shapes=[pltpu.VMEM((th * wo, cout), jnp.float32)],
        compiler_params=_cparams(2),
    )(xph, w_taps)


def _bn_relu(y, scale, shift, out_dtype, tm=512):
    m, c = y.shape
    tm = m if m < tm else tm
    return pl.pallas_call(
        _bn_relu_kernel,
        out_shape=jax.ShapeDtypeStruct((m, c), out_dtype),
        grid=(pl.cdiv(m, tm),),
        in_specs=[pl.BlockSpec((tm, c), lambda i: (i, 0)),
                  pl.BlockSpec((1, c), lambda i: (0, 0)),      # resident scale
                  pl.BlockSpec((1, c), lambda i: (0, 0))],     # resident shift
        out_specs=pl.BlockSpec((tm, c), lambda i: (i, 0)),
        compiler_params=_cparams(1),
    )(y, scale, shift)


def _bn_res_relu(y, x_ds, wds, scale, shift, tm=512):
    m, cout = y.shape
    cin = x_ds.shape[-1]
    tm = m if m < tm else tm
    return pl.pallas_call(
        _bn_res_relu_kernel,
        out_shape=jax.ShapeDtypeStruct((m, cout), jnp.float32),
        grid=(pl.cdiv(m, tm),),
        in_specs=[pl.BlockSpec((tm, cout), lambda i: (i, 0)),
                  pl.BlockSpec((tm, cin), lambda i: (i, 0)),
                  pl.BlockSpec((cin, cout), lambda i: (0, 0)),  # resident 1x1 w
                  pl.BlockSpec((1, cout), lambda i: (0, 0)),
                  pl.BlockSpec((1, cout), lambda i: (0, 0))],
        out_specs=pl.BlockSpec((tm, cout), lambda i: (i, 0)),
        compiler_params=_cparams(1),
    )(y, x_ds, wds, scale, shift)


# ---------------- Glue (layout, phase split, weight packing) ----------------

def _phase_split(x_pad, s, ho, wo):
    """Split a spatially padded NHWC tensor into stride-phase slabs stacked
    along H.  Tap (kh, kw) of a stride-s 3x3 conv then reads the contiguous
    window xph[:, rb + r0 : rb + r0 + TH, cb : cb + Wo, :] for a strip of TH
    output rows at r0 — no strided / im2col access in the kernel.  The slab
    width is rounded up to a multiple of 8 (sublane-friendly)."""
    n, hp, wp, c = x_pad.shape
    off = 2 // s
    hh = ho + off
    wh = _round_up(wo + off, 8)
    pad_h, pad_w = max(0, s * hh - hp), max(0, s * wh - wp)
    if pad_h or pad_w:
        x_pad = jnp.pad(x_pad, ((0, 0), (0, pad_h), (0, pad_w), (0, 0)))
    slabs = [x_pad[:, p::s, q::s, :][:, :hh, :wh, :]
             for p in range(s) for q in range(s)]
    xph = jnp.concatenate(slabs, axis=1) if len(slabs) > 1 else slabs[0]
    taps = tuple((((kh % s) * s + (kw % s)) * hh + kh // s, kw // s)
                 for kh in range(3) for kw in range(3))
    return xph, taps, hh


def _pad_taps(taps, kpack):
    taps = list(taps)
    while len(taps) % kpack:
        taps.append(taps[-1])        # duplicated patch; its paired weights are 0
    return tuple(taps)


def _pack_taps(w_oihw, cin_p, cout_p, kpack):
    """OIHW 3x3 weights -> [n_groups, kpack*Cin_p, Cout_p] bf16 tap slabs."""
    cout, cin = w_oihw.shape[:2]
    w = jnp.transpose(w_oihw, (2, 3, 1, 0)).reshape(9, cin, cout)   # tap-major
    w = jnp.pad(w, ((0, 0), (0, cin_p - cin), (0, cout_p - cout)))
    n_tap = 9
    pad_t = (-n_tap) % kpack
    if pad_t:
        w = jnp.concatenate(
            [w, jnp.zeros((pad_t, cin_p, cout_p), w.dtype)], axis=0)
        n_tap += pad_t
    w = w.reshape(n_tap // kpack, kpack * cin_p, cout_p)
    return w.astype(jnp.bfloat16)


def _bn_affine(stats, m, gamma, beta, cpad):
    """Reduce per-strip partial stats -> (scale, shift): BN is one FMA/elem."""
    tot = jnp.sum(stats.astype(jnp.float32), axis=(0, 1))           # [2, Cpad]
    mean = tot[0] / m
    var = jnp.maximum(tot[1] / m - mean * mean, 0.0)
    g = jnp.pad(gamma.astype(jnp.float32), (0, cpad - gamma.shape[0]),
                constant_values=1.0)
    b = jnp.pad(beta.astype(jnp.float32), (0, cpad - beta.shape[0]))
    scale = g * lax.rsqrt(var + EPS)
    shift = b - mean * scale
    return scale.reshape(1, cpad), shift.reshape(1, cpad)


def downsample_residual_block(x_nchw, params, stride=2):
    w1, g1, b1 = params["w1"], params["g1"], params["b1"]
    w2, g2, b2 = params["w2"], params["g2"], params["b2"]
    wds = params["wds"]

    n, c, h, w = x_nchw.shape
    cout = w2.shape[0]
    s = stride
    ho = (h + 2 - 3) // s + 1
    wo = (w + 2 - 3) // s + 1
    m = n * ho * wo
    cp = _round_up(c, LANES)
    cop = _round_up(cout, LANES)
    kpack = _KPACK
    th = _pick_th(ho, wo)

    # NHWC, channel-pad to lane width, bf16 activations (f32 accum in-kernel).
    x = jnp.transpose(x_nchw, (0, 2, 3, 1)).astype(jnp.float32)
    x = jnp.pad(x, ((0, 0), (0, 0), (0, 0), (0, cp - c))).astype(jnp.bfloat16)

    # ---- conv1 (3x3, stride s) + per-strip batch-stat partials ----
    x_sp = jnp.pad(x, ((0, 0), (1, 1), (1, 1), (0, 0)))
    xph1, taps1, hh1 = _phase_split(x_sp, s, ho, wo)
    w1t = _pack_taps(w1, cp, cp, kpack)
    y1_raw, st1 = _conv_bnstats(xph1, w1t, _pad_taps(taps1, kpack),
                                ho, wo, th, kpack)          # bf16 [N,HoWo,Cp]

    # ---- bn1 (global batch stats) + relu : tiled, lane-dense, single FMA ----
    sc1, sh1 = _bn_affine(st1, m, g1, b1, cp)
    y1n = _bn_relu(y1_raw.reshape(m, cp), sc1, sh1, jnp.bfloat16)

    # ---- conv2 (3x3, stride 1) + per-strip batch-stat partials ----
    y1_sp = jnp.pad(y1n.reshape(n, ho, wo, cp), ((0, 0), (1, 1), (1, 1), (0, 0)))
    xph2, taps2, _ = _phase_split(y1_sp, 1, ho, wo)
    w2t = _pack_taps(w2, cp, cop, kpack)
    y2_raw, st2 = _conv_bnstats(xph2, w2t, _pad_taps(taps2, kpack),
                                ho, wo, th, kpack)          # bf16 [N,HoWo,Cop]

    # ---- bn2 + residual (1x1 stride-s conv fused into normalize pass) + relu ----
    sc2, sh2 = _bn_affine(st2, m, g2, b2, cop)
    # Residual input comes from the already-materialized phase slab of xph1
    # (rows/cols corresponding to x[:, ::s, ::s, :]) instead of a fresh
    # strided gather over x.
    pq = 1 % s
    ph_idx = pq * s + pq
    o0 = (1 - pq) // s
    x_ds = xph1[:, ph_idx * hh1 + o0: ph_idx * hh1 + o0 + ho,
                o0:o0 + wo, :].reshape(m, cp)                     # bf16 [M,Cp]
    wds_mat = jnp.pad(jnp.transpose(wds[:, :, 0, 0], (1, 0)),
                      ((0, cp - c), (0, cop - cout))).astype(jnp.bfloat16)
    out = _bn_res_relu(y2_raw.reshape(m, cop), x_ds, wds_mat, sc2, sh2)

    out = out.reshape(n, ho, wo, cop)[:, :, :, :cout]
    return jnp.transpose(out, (0, 3, 1, 2))                  # back to NCHW


# ---------------- Pure-JAX reference (for verification) ----------------

def _reference(x, params, stride=2):
    def conv(x, w, s, p):
        return lax.conv_general_dilated(
            x, w, window_strides=(s, s), padding=((p, p), (p, p)),
            dimension_numbers=("NCHW", "OIHW", "NCHW"))

    def bn(x, g, b):
        m = jnp.mean(x, axis=(0, 2, 3), keepdims=True)
        v = jnp.mean((x - m) ** 2, axis=(0, 2, 3), keepdims=True)
        return (x - m) * lax.rsqrt(v + EPS) * g.reshape(1, -1, 1, 1) \
            + b.reshape(1, -1, 1, 1)

    out = jax.nn.relu(bn(conv(x, params["w1"], stride, 1), params["g1"], params["b1"]))
    out = bn(conv(out, params["w2"], 1, 1), params["g2"], params["b2"])
    res = conv(x, params["wds"], stride, 0)
    return jax.nn.relu(out + res)


if __name__ == "__main__":
    N, C, H, W = 2, 4, 16, 16
    dim_out = C  # module default: dim_out=None -> dim

    key = jax.random.PRNGKey(0)
    ks = jax.random.split(key, 8)
    x = jax.random.normal(ks[0], (N, C, H, W), jnp.float32)
    params = dict(
        w1=0.1 * jax.random.normal(ks[1], (C, C, 3, 3), jnp.float32),
        g1=1.0 + 0.1 * jax.random.normal(ks[2], (C,), jnp.float32),
        b1=0.1 * jax.random.normal(ks[3], (C,), jnp.float32),
        w2=0.1 * jax.random.normal(ks[4], (dim_out, C, 3, 3), jnp.float32),
        g2=1.0 + 0.1 * jax.random.normal(ks[5], (dim_out,), jnp.float32),
        b2=0.1 * jax.random.normal(ks[6], (dim_out,), jnp.float32),
        wds=0.1 * jax.random.normal(ks[7], (dim_out, C, 1, 1), jnp.float32),
    )

    fn = jax.jit(downsample_residual_block)
    out = jax.block_until_ready(fn(x, params))
    ref = jax.block_until_ready(_reference(x, params))

    assert out.shape == (N, dim_out, H // 2, W // 2), out.shape
    err = float(jnp.max(jnp.abs(out - ref)))
    # bf16 activations/weights AND bf16-stored conv intermediates (all matmul
    # accumulation / BN math in f32) -> relaxed tolerance vs. the f32 reference.
    assert err < 1.5e-1, f"max abs err {err}"
    print("KERNEL_OK")
</pallas_src>

<mosaic_0001>
module attributes {stable_mosaic.version = 11 : i64} {
  func.func @_conv_bnstats_kernel(%arg0: i32, %arg1: i32, %arg2: memref<1x36x16x128xbf16, #tpu.memory_space<vmem>>, %arg3: memref<9x128x128xbf16, #tpu.memory_space<vmem>>, %arg4: memref<1x64x128xbf16, #tpu.memory_space<vmem>>, %arg5: memref<1x1x2x128xf32, #tpu.memory_space<vmem>>, %arg6: memref<64x128xf32, #tpu.memory_space<vmem>>) attributes {dimension_semantics = [#tpu.dimension_semantics<parallel>, #tpu.dimension_semantics<parallel>], iteration_bounds = array<i64: 2, 1>, scalar_prefetch = 0 : i64, scratch_operands = 1 : i64, tpu.core_type = #tpu.core_type<tc>, window_params = [{transform_indices = @transform_0, window_bounds = array<i64: 1, 36, 16, 128>}, {pipeline_mode = #tpu.pipeline_mode<synchronous>, transform_indices = @transform_1, window_bounds = array<i64: 9, 128, 128>}, {transform_indices = @transform_2, window_bounds = array<i64: 1, 64, 128>}, {transform_indices = @transform_3, window_bounds = array<i64: 1, 1, 2, 128>}]} {
    %c8_i32 = arith.constant 8 : i32
    %0 = arith.muli %arg1, %c8_i32 : i32
    %1 = tpu.assume_multiple %0, 8 : i32
    %c0_i32 = arith.constant 0 : i32
    %2 = arith.addi %1, %c0_i32 : i32
    %c0 = arith.constant 0 : index
    %3 = arith.index_cast %2 : i32 to index
    %c0_0 = arith.constant 0 : index
    %c0_1 = arith.constant 0 : index
    %4 = vector.load %arg2[%c0, %3, %c0_0, %c0_1] : memref<1x36x16x128xbf16, #tpu.memory_space<vmem>>, vector<1x8x8x128xbf16>
    %5 = vector.shape_cast %4 : vector<1x8x8x128xbf16> to vector<8x8x128xbf16>
    %6 = vector.shape_cast %5 : vector<8x8x128xbf16> to vector<64x128xbf16>
    %c0_2 = arith.constant 0 : index
    %c0_3 = arith.constant 0 : index
    %c0_4 = arith.constant 0 : index
    %7 = vector.load %arg3[%c0_2, %c0_3, %c0_4] : memref<9x128x128xbf16, #tpu.memory_space<vmem>>, vector<1x128x128xbf16>
    %8 = vector.shape_cast %7 : vector<1x128x128xbf16> to vector<128x128xbf16>
    %cst = arith.constant dense<0.000000e+00> : vector<64x128xf32>
    %9 = tpu.matmul %6, %8, %cst {dimension_numbers = #tpu.dot_dimension_numbers<[1], [0], [0], [1], [0, 0, 1, 1], [], []>} : vector<64x128xbf16>, vector<128x128xbf16>, vector<64x128xf32> -> vector<64x128xf32>
    %c0_5 = arith.constant 0 : index
    %c0_6 = arith.constant 0 : index
    %10 = vector.load %arg6[%c0_5, %c0_6] : memref<64x128xf32, #tpu.memory_space<vmem>>, vector<64x128xf32>
    tpu.vector_store %arg6[%c0_5, %c0_6], %9 {strides = array<i32>} : memref<64x128xf32, #tpu.memory_space<vmem>>, vector<64x128xf32>,
    %c9_i32 = arith.constant 9 : i32
    %11 = arith.addi %1, %c9_i32 : i32
    %c0_7 = arith.constant 0 : index
    %12 = arith.index_cast %11 : i32 to index
    %c0_8 = arith.constant 0 : index
    %c0_9 = arith.constant 0 : index
    %13 = vector.load %arg2[%c0_7, %12, %c0_8, %c0_9] : memref<1x36x16x128xbf16, #tpu.memory_space<vmem>>, vector<1x8x8x128xbf16>
    %14 = vector.shape_cast %13 : vector<1x8x8x128xbf16> to vector<8x8x128xbf16>
    %15 = vector.shape_cast %14 : vector<8x8x128xbf16> to vector<64x128xbf16>
    %c1 = arith.constant 1 : index
    %c0_10 = arith.constant 0 : index
    %c0_11 = arith.constant 0 : index
    %16 = vector.load %arg3[%c1, %c0_10, %c0_11] : memref<9x128x128xbf16, #tpu.memory_space<vmem>>, vector<1x128x128xbf16>
    %17 = vector.shape_cast %16 : vector<1x128x128xbf16> to vector<128x128xbf16>
    %cst_12 = arith.constant dense<0.000000e+00> : vector<64x128xf32>
    %18 = tpu.matmul %15, %17, %cst_12 {dimension_numbers = #tpu.dot_dimension_numbers<[1], [0], [0], [1], [0, 0, 1, 1], [], []>} : vector<64x128xbf16>, vector<128x128xbf16>, vector<64x128xf32> -> vector<64x128xf32>
    %c0_13 = arith.constant 0 : index
    %c0_14 = arith.constant 0 : index
    %19 = vector.load %arg6[%c0_13, %c0_14] : memref<64x128xf32, #tpu.memory_space<vmem>>, vector<64x128xf32>
    %20 = arith.addf %19, %18 : vector<64x128xf32>
    %c0_15 = arith.constant 0 : index
    %c0_16 = arith.constant 0 : index
    %21 = vector.load %arg6[%c0_15, %c0_16] : memref<64x128xf32, #tpu.memory_space<vmem>>, vector<64x128xf32>
    tpu.vector_store %arg6[%c0_15, %c0_16], %20 {strides = array<i32>} : memref<64x128xf32, #tpu.memory_space<vmem>>, vector<64x128xf32>,
    %c0_i32_17 = arith.constant 0 : i32
    %22 = arith.addi %1, %c0_i32_17 : i32
    %c0_18 = arith.constant 0 : index
    %23 = arith.index_cast %22 : i32 to index
    %c1_19 = arith.constant 1 : index
    %c0_20 = arith.constant 0 : index
    %24 = vector.load %arg2[%c0_18, %23, %c1_19, %c0_20] : memref<1x36x16x128xbf16, #tpu.memory_space<vmem>>, vector<1x8x8x128xbf16>
    %25 = vector.shape_cast %24 : vector<1x8x8x128xbf16> to vector<8x8x128xbf16>
    %26 = vector.shape_cast %25 : vector<8x8x128xbf16> to vector<64x128xbf16>
    %c2 = arith.constant 2 : index
    %c0_21 = arith.constant 0 : index
    %c0_22 = arith.constant 0 : index
    %27 = vector.load %arg3[%c2, %c0_21, %c0_22] : memref<9x128x128xbf16, #tpu.memory_space<vmem>>, vector<1x128x128xbf16>
    %28 = vector.shape_cast %27 : vector<1x128x128xbf16> to vector<128x128xbf16>
    %cst_23 = arith.constant dense<0.000000e+00> : vector<64x128xf32>
    %29 = tpu.matmul %26, %28, %cst_23 {dimension_numbers = #tpu.dot_dimension_numbers<[1], [0], [0], [1], [0, 0, 1, 1], [], []>} : vector<64x128xbf16>, vector<128x128xbf16>, vector<64x128xf32> -> vector<64x128xf32>
    %c0_24 = arith.constant 0 : index
    %c0_25 = arith.constant 0 : index
    %30 = vector.load %arg6[%c0_24, %c0_25] : memref<64x128xf32, #tpu.memory_space<vmem>>, vector<64x128xf32>
    %31 = arith.addf %30, %29 : vector<64x128xf32>
    %c0_26 = arith.constant 0 : index
    %c0_27 = arith.constant 0 : index
    %32 = vector.load %arg6[%c0_26, %c0_27] : memref<64x128xf32, #tpu.memory_space<vmem>>, vector<64x128xf32>
    tpu.vector_store %arg6[%c0_26, %c0_27], %31 {strides = array<i32>} : memref<64x128xf32, #tpu.memory_space<vmem>>, vector<64x128xf32>,
    %c18_i32 = arith.constant 18 : i32
    %33 = arith.addi %1, %c18_i32 : i32
    %c0_28 = arith.constant 0 : index
    %34 = arith.index_cast %33 : i32 to index
    %c0_29 = arith.constant 0 : index
    %c0_30 = arith.constant 0 : index
    %35 = vector.load %arg2[%c0_28, %34, %c0_29, %c0_30] : memref<1x36x16x128xbf16, #tpu.memory_space<vmem>>, vector<1x8x8x128xbf16>
    %36 = vector.shape_cast %35 : vector<1x8x8x128xbf16> to vector<8x8x128xbf16>
    %37 = vector.shape_cast %36 : vector<8x8x128xbf16> to vector<64x128xbf16>
    %c3 = arith.constant 3 : index
    %c0_31 = arith.constant 0 : index
    %c0_32 = arith.constant 0 : index
    %38 = vector.load %arg3[%c3, %c0_31, %c0_32] : memref<9x128x128xbf16, #tpu.memory_space<vmem>>, vector<1x128x128xbf16>
    %39 = vector.shape_cast %38 : vector<1x128x128xbf16> to vector<128x128xbf16>
    %cst_33 = arith.constant dense<0.000000e+00> : vector<64x128xf32>
    %40 = tpu.matmul %37, %39, %cst_33 {dimension_numbers = #tpu.dot_dimension_numbers<[1], [0], [0], [1], [0, 0, 1, 1], [], []>} : vector<64x128xbf16>, vector<128x128xbf16>, vector<64x128xf32> -> vector<64x128xf32>
    %c0_34 = arith.constant 0 : index
    %c0_35 = arith.constant 0 : index
    %41 = vector.load %arg6[%c0_34, %c0_35] : memref<64x128xf32, #tpu.memory_space<vmem>>, vector<64x128xf32>
    %42 = arith.addf %41, %40 : vector<64x128xf32>
    %c0_36 = arith.constant 0 : index
    %c0_37 = arith.constant 0 : index
    %43 = vector.load %arg6[%c0_36, %c0_37] : memref<64x128xf32, #tpu.memory_space<vmem>>, vector<64x128xf32>
    tpu.vector_store %arg6[%c0_36, %c0_37], %42 {strides = array<i32>} : memref<64x128xf32, #tpu.memory_space<vmem>>, vector<64x128xf32>,
    %c27_i32 = arith.constant 27 : i32
    %44 = arith.addi %1, %c27_i32 : i32
    %c0_38 = arith.constant 0 : index
    %45 = arith.index_cast %44 : i32 to index
    %c0_39 = arith.constant 0 : index
    %c0_40 = arith.constant 0 : index
    %46 = vector.load %arg2[%c0_38, %45, %c0_39, %c0_40] : memref<1x36x16x128xbf16, #tpu.memory_space<vmem>>, vector<1x8x8x128xbf16>
    %47 = vector.shape_cast %46 : vector<1x8x8x128xbf16> to vector<8x8x128xbf16>
    %48 = vector.shape_cast %47 : vector<8x8x128xbf16> to vector<64x128xbf16>
    %c4 = arith.constant 4 : index
    %c0_41 = arith.constant 0 : index
    %c0_42 = arith.constant 0 : index
    %49 = vector.load %arg3[%c4, %c0_41, %c0_42] : memref<9x128x128xbf16, #tpu.memory_space<vmem>>, vector<1x128x128xbf16>
    %50 = vector.shape_cast %49 : vector<1x128x128xbf16> to vector<128x128xbf16>
    %cst_43 = arith.constant dense<0.000000e+00> : vector<64x128xf32>
    %51 = tpu.matmul %48, %50, %cst_43 {dimension_numbers = #tpu.dot_dimension_numbers<[1], [0], [0], [1], [0, 0, 1, 1], [], []>} : vector<64x128xbf16>, vector<128x128xbf16>, vector<64x128xf32> -> vector<64x128xf32>
    %c0_44 = arith.constant 0 : index
    %c0_45 = arith.constant 0 : index
    %52 = vector.load %arg6[%c0_44, %c0_45] : memref<64x128xf32, #tpu.memory_space<vmem>>, vector<64x128xf32>
    %53 = arith.addf %52, %51 : vector<64x128xf32>
    %c0_46 = arith.constant 0 : index
    %c0_47 = arith.constant 0 : index
    %54 = vector.load %arg6[%c0_46, %c0_47] : memref<64x128xf32, #tpu.memory_space<vmem>>, vector<64x128xf32>
    tpu.vector_store %arg6[%c0_46, %c0_47], %53 {strides = array<i32>} : memref<64x128xf32, #tpu.memory_space<vmem>>, vector<64x128xf32>,
    %c18_i32_48 = arith.constant 18 : i32
    %55 = arith.addi %1, %c18_i32_48 : i32
    %c0_49 = arith.constant 0 : index
    %56 = arith.index_cast %55 : i32 to index
    %c1_50 = arith.constant 1 : index
    %c0_51 = arith.constant 0 : index
    %57 = vector.load %arg2[%c0_49, %56, %c1_50, %c0_51] : memref<1x36x16x128xbf16, #tpu.memory_space<vmem>>, vector<1x8x8x128xbf16>
    %58 = vector.shape_cast %57 : vector<1x8x8x128xbf16> to vector<8x8x128xbf16>
    %59 = vector.shape_cast %58 : vector<8x8x128xbf16> to vector<64x128xbf16>
    %c5 = arith.constant 5 : index
    %c0_52 = arith.constant 0 : index
    %c0_53 = arith.constant 0 : index
    %60 = vector.load %arg3[%c5, %c0_52, %c0_53] : memref<9x128x128xbf16, #tpu.memory_space<vmem>>, vector<1x128x128xbf16>
    %61 = vector.shape_cast %60 : vector<1x128x128xbf16> to vector<128x128xbf16>
    %cst_54 = arith.constant dense<0.000000e+00> : vector<64x128xf32>
    %62 = tpu.matmul %59, %61, %cst_54 {dimension_numbers = #tpu.dot_dimension_numbers<[1], [0], [0], [1], [0, 0, 1, 1], [], []>} : vector<64x128xbf16>, vector<128x128xbf16>, vector<64x128xf32> -> vector<64x128xf32>
    %c0_55 = arith.constant 0 : index
    %c0_56 = arith.constant 0 : index
    %63 = vector.load %arg6[%c0_55, %c0_56] : memref<64x128xf32, #tpu.memory_space<vmem>>, vector<64x128xf32>
    %64 = arith.addf %63, %62 : vector<64x128xf32>
    %c0_57 = arith.constant 0 : index
    %c0_58 = arith.constant 0 : index
    %65 = vector.load %arg6[%c0_57, %c0_58] : memref<64x128xf32, #tpu.memory_space<vmem>>, vector<64x128xf32>
    tpu.vector_store %arg6[%c0_57, %c0_58], %64 {strides = array<i32>} : memref<64x128xf32, #tpu.memory_space<vmem>>, vector<64x128xf32>,
    %c1_i32 = arith.constant 1 : i32
    %66 = arith.addi %1, %c1_i32 : i32
    %c0_59 = arith.constant 0 : index
    %67 = arith.index_cast %66 : i32 to index
    %c0_60 = arith.constant 0 : index
    %c0_61 = arith.constant 0 : index
    %68 = vector.load %arg2[%c0_59, %67, %c0_60, %c0_61] : memref<1x36x16x128xbf16, #tpu.memory_space<vmem>>, vector<1x8x8x128xbf16>
    %69 = vector.shape_cast %68 : vector<1x8x8x128xbf16> to vector<8x8x128xbf16>
    %70 = vector.shape_cast %69 : vector<8x8x128xbf16> to vector<64x128xbf16>
    %c6 = arith.constant 6 : index
    %c0_62 = arith.constant 0 : index
    %c0_63 = arith.constant 0 : index
    %71 = vector.load %arg3[%c6, %c0_62, %c0_63] : memref<9x128x128xbf16, #tpu.memory_space<vmem>>, vector<1x128x128xbf16>
    %72 = vector.shape_cast %71 : vector<1x128x128xbf16> to vector<128x128xbf16>
    %cst_64 = arith.constant dense<0.000000e+00> : vector<64x128xf32>
    %73 = tpu.matmul %70, %72, %cst_64 {dimension_numbers = #tpu.dot_dimension_numbers<[1], [0], [0], [1], [0, 0, 1, 1], [], []>} : vector<64x128xbf16>, vector<128x128xbf16>, vector<64x128xf32> -> vector<64x128xf32>
    %c0_65 = arith.constant 0 : index
    %c0_66 = arith.constant 0 : index
    %74 = vector.load %arg6[%c0_65, %c0_66] : memref<64x128xf32, #tpu.memory_space<vmem>>, vector<64x128xf32>
    %75 = arith.addf %74, %73 : vector<64x128xf32>
    %c0_67 = arith.constant 0 : index
    %c0_68 = arith.constant 0 : index
    %76 = vector.load %arg6[%c0_67, %c0_68] : memref<64x128xf32, #tpu.memory_space<vmem>>, vector<64x128xf32>
    tpu.vector_store %arg6[%c0_67, %c0_68], %75 {strides = array<i32>} : memref<64x128xf32, #tpu.memory_space<vmem>>, vector<64x128xf32>,
    %c10_i32 = arith.constant 10 : i32
    %77 = arith.addi %1, %c10_i32 : i32
    %c0_69 = arith.constant 0 : index
    %78 = arith.index_cast %77 : i32 to index
    %c0_70 = arith.constant 0 : index
    %c0_71 = arith.constant 0 : index
    %79 = vector.load %arg2[%c0_69, %78, %c0_70, %c0_71] : memref<1x36x16x128xbf16, #tpu.memory_space<vmem>>, vector<1x8x8x128xbf16>
    %80 = vector.shape_cast %79 : vector<1x8x8x128xbf16> to vector<8x8x128xbf16>
    %81 = vector.shape_cast %80 : vector<8x8x128xbf16> to vector<64x128xbf16>
    %c7 = arith.constant 7 : index
    %c0_72 = arith.constant 0 : index
    %c0_73 = arith.constant 0 : index
    %82 = vector.load %arg3[%c7, %c0_72, %c0_73] : memref<9x128x128xbf16, #tpu.memory_space<vmem>>, vector<1x128x128xbf16>
    %83 = vector.shape_cast %82 : vector<1x128x128xbf16> to vector<128x128xbf16>
    %cst_74 = arith.constant dense<0.000000e+00> : vector<64x128xf32>
    %84 = tpu.matmul %81, %83, %cst_74 {dimension_numbers = #tpu.dot_dimension_numbers<[1], [0], [0], [1], [0, 0, 1, 1], [], []>} : vector<64x128xbf16>, vector<128x128xbf16>, vector<64x128xf32> -> vector<64x128xf32>
    %c0_75 = arith.constant 0 : index
    %c0_76 = arith.constant 0 : index
    %85 = vector.load %arg6[%c0_75, %c0_76] : memref<64x128xf32, #tpu.memory_space<vmem>>, vector<64x128xf32>
    %86 = arith.addf %85, %84 : vector<64x128xf32>
    %c0_77 = arith.constant 0 : index
    %c0_78 = arith.constant 0 : index
    %87 = vector.load %arg6[%c0_77, %c0_78] : memref<64x128xf32, #tpu.memory_space<vmem>>, vector<64x128xf32>
    tpu.vector_store %arg6[%c0_77, %c0_78], %86 {strides = array<i32>} : memref<64x128xf32, #tpu.memory_space<vmem>>, vector<64x128xf32>,
    %c1_i32_79 = arith.constant 1 : i32
    %88 = arith.addi %1, %c1_i32_79 : i32
    %c0_80 = arith.constant 0 : index
    %89 = arith.index_cast %88 : i32 to index
    %c1_81 = arith.constant 1 : index
    %c0_82 = arith.constant 0 : index
    %90 = vector.load %arg2[%c0_80, %89, %c1_81, %c0_82] : memref<1x36x16x128xbf16, #tpu.memory_space<vmem>>, vector<1x8x8x128xbf16>
    %91 = vector.shape_cast %90 : vector<1x8x8x128xbf16> to vector<8x8x128xbf16>
    %92 = vector.shape_cast %91 : vector<8x8x128xbf16> to vector<64x128xbf16>
    %c8 = arith.constant 8 : index
    %c0_83 = arith.constant 0 : index
    %c0_84 = arith.constant 0 : index
    %93 = vector.load %arg3[%c8, %c0_83, %c0_84] : memref<9x128x128xbf16, #tpu.memory_space<vmem>>, vector<1x128x128xbf16>
    %94 = vector.shape_cast %93 : vector<1x128x128xbf16> to vector<128x128xbf16>
    %cst_85 = arith.constant dense<0.000000e+00> : vector<64x128xf32>
    %95 = tpu.matmul %92, %94, %cst_85 {dimension_numbers = #tpu.dot_dimension_numbers<[1], [0], [0], [1], [0, 0, 1, 1], [], []>} : vector<64x128xbf16>, vector<128x128xbf16>, vector<64x128xf32> -> vector<64x128xf32>
    %c0_86 = arith.constant 0 : index
    %c0_87 = arith.constant 0 : index
    %96 = vector.load %arg6[%c0_86, %c0_87] : memref<64x128xf32, #tpu.memory_space<vmem>>, vector<64x128xf32>
    %97 = arith.addf %96, %95 : vector<64x128xf32>
    %c0_88 = arith.constant 0 : index
    %c0_89 = arith.constant 0 : index
    %98 = vector.load %arg6[%c0_88, %c0_89] : memref<64x128xf32, #tpu.memory_space<vmem>>, vector<64x128xf32>
    tpu.vector_store %arg6[%c0_88, %c0_89], %97 {strides = array<i32>} : memref<64x128xf32, #tpu.memory_space<vmem>>, vector<64x128xf32>,
    %c0_90 = arith.constant 0 : index
    %c0_91 = arith.constant 0 : index
    %99 = vector.load %arg6[%c0_90, %c0_91] : memref<64x128xf32, #tpu.memory_space<vmem>>, vector<64x128xf32>
    %100 = arith.truncf %99 : vector<64x128xf32> to vector<64x128xbf16>
    %c0_92 = arith.constant 0 : index
    %c0_93 = arith.constant 0 : index
    %c0_94 = arith.constant 0 : index
    %101 = vector.load %arg4[%c0_92, %c0_93, %c0_94] : memref<1x64x128xbf16, #tpu.memory_space<vmem>>, vector<1x64x128xbf16>
    %102 = vector.shape_cast %101 : vector<1x64x128xbf16> to vector<64x128xbf16>
    %103 = vector.shape_cast %100 : vector<64x128xbf16> to vector<1x64x128xbf16>
    tpu.vector_store %arg4[%c0_92, %c0_93, %c0_94], %103 {strides = array<i32>} : memref<1x64x128xbf16, #tpu.memory_space<vmem>>, vector<1x64x128xbf16>,
    %cst_95 = arith.constant dense<0.000000e+00> : vector<128xf32>
    %104 = vector.multi_reduction <add>, %99, %cst_95 [0] : vector<64x128xf32> to vector<128xf32>
    %105 = vector.shape_cast %104 : vector<128xf32> to vector<1x128xf32>
    %106 = arith.mulf %99, %99 : vector<64x128xf32>
    %cst_96 = arith.constant dense<0.000000e+00> : vector<128xf32>
    %107 = vector.multi_reduction <add>, %106, %cst_96 [0] : vector<64x128xf32> to vector<128xf32>
    %108 = vector.shape_cast %107 : vector<128xf32> to vector<1x128xf32>
    %109 = tpu.concatenate %105, %108 in 0 : vector<1x128xf32>, vector<1x128xf32> -> vector<2x128xf32>
    %c0_97 = arith.constant 0 : index
    %c0_98 = arith.constant 0 : index
    %c0_99 = arith.constant 0 : index
    %c0_100 = arith.constant 0 : index
    %110 = vector.load %arg5[%c0_97, %c0_98, %c0_99, %c0_100] : memref<1x1x2x128xf32, #tpu.memory_space<vmem>>, vector<1x1x2x128xf32>
    %111 = vector.shape_cast %110 : vector<1x1x2x128xf32> to vector<2x128xf32>
    %112 = vector.shape_cast %109 : vector<2x128xf32> to vector<1x1x2x128xf32>
    tpu.vector_store %arg5[%c0_97, %c0_98, %c0_99, %c0_100], %112 {strides = array<i32>} : memref<1x1x2x128xf32, #tpu.memory_space<vmem>>, vector<1x1x2x128xf32>,
    return
  }
  func.func @transform_0(%arg0: i32, %arg1: i32) -> (i32, i32, i32, i32) {
    %c0_i32 = arith.constant 0 : i32
    %c0_i32_0 = arith.constant 0 : i32
    %c0_i32_1 = arith.constant 0 : i32
    %c0_i32_2 = arith.constant 0 : i32
    return %arg0, %c0_i32, %c0_i32_0, %c0_i32_1 : i32, i32, i32, i32
  }
  func.func @transform_1(%arg0: i32, %arg1: i32) -> (i32, i32, i32) {
    %c0_i32 = arith.constant 0 : i32
    %c0_i32_0 = arith.constant 0 : i32
    %c0_i32_1 = arith.constant 0 : i32
    %c0_i32_2 = arith.constant 0 : i32
    return %c0_i32, %c0_i32_0, %c0_i32_1 : i32, i32, i32
  }
  func.func @transform_2(%arg0: i32, %arg1: i32) -> (i32, i32, i32) {
    %c0_i32 = arith.constant 0 : i32
    %c0_i32_0 = arith.constant 0 : i32
    return %arg0, %arg1, %c0_i32 : i32, i32, i32
  }
  func.func @transform_3(%arg0: i32, %arg1: i32) -> (i32, i32, i32, i32) {
    %c0_i32 = arith.constant 0 : i32
    %c0_i32_0 = arith.constant 0 : i32
    %c0_i32_1 = arith.constant 0 : i32
    return %arg0, %arg1, %c0_i32, %c0_i32_0 : i32, i32, i32, i32
  }
}

module attributes {stable_mosaic.version = 11 : i64} {
  func.func @_bn_relu_kernel(%arg0: i32, %arg1: memref<128x128xbf16, #tpu.memory_space<vmem>>, %arg2: memref<1x128xf32, #tpu.memory_space<vmem>>, %arg3: memref<1x128xf32, #tpu.memory_space<vmem>>, %arg4: memref<128x128xbf16, #tpu.memory_space<vmem>>) attributes {dimension_semantics = [#tpu.dimension_semantics<parallel>], iteration_bounds = array<i64: 1>, scalar_prefetch = 0 : i64, scratch_operands = 0 : i64, tpu.core_type = #tpu.core_type<tc>, window_params = [{transform_indices = @transform_0, window_bounds = array<i64: 128, 128>}, {pipeline_mode = #tpu.pipeline_mode<synchronous>, transform_indices = @transform_1, window_bounds = array<i64: 1, 128>}, {pipeline_mode = #tpu.pipeline_mode<synchronous>, transform_indices = @transform_2, window_bounds = array<i64: 1, 128>}, {transform_indices = @transform_3, window_bounds = array<i64: 128, 128>}]} {
    %c0 = arith.constant 0 : index
    %c0_0 = arith.constant 0 : index
    %0 = vector.load %arg1[%c0, %c0_0] : memref<128x128xbf16, #tpu.memory_space<vmem>>, vector<128x128xbf16>
    %1 = arith.extf %0 : vector<128x128xbf16> to vector<128x128xf32>
    %c0_1 = arith.constant 0 : index
    %c0_2 = arith.constant 0 : index
    %2 = vector.load %arg2[%c0_1, %c0_2] : memref<1x128xf32, #tpu.memory_space<vmem>>, vector<1x128xf32>
    %3 = vector.broadcast %2 : vector<1x128xf32> to vector<128x128xf32>
    %4 = arith.mulf %1, %3 : vector<128x128xf32>
    %c0_3 = arith.constant 0 : index
    %c0_4 = arith.constant 0 : index
    %5 = vector.load %arg3[%c0_3, %c0_4] : memref<1x128xf32, #tpu.memory_space<vmem>>, vector<1x128xf32>
    %6 = vector.broadcast %5 : vector<1x128xf32> to vector<128x128xf32>
    %7 = arith.addf %4, %6 : vector<128x128xf32>
    %cst = arith.constant 0.000000e+00 : f32
    %8 = vector.broadcast %cst : f32 to vector<128x128xf32>
    %9 = arith.maximumf %7, %8 : vector<128x128xf32>
    %10 = arith.truncf %9 : vector<128x128xf32> to vector<128x128xbf16>
    %c0_5 = arith.constant 0 : index
    %c0_6 = arith.constant 0 : index
    %11 = vector.load %arg4[%c0_5, %c0_6] : memref<128x128xbf16, #tpu.memory_space<vmem>>, vector<128x128xbf16>
    tpu.vector_store %arg4[%c0_5, %c0_6], %10 {strides = array<i32>} : memref<128x128xbf16, #tpu.memory_space<vmem>>, vector<128x128xbf16>,
    return
  }
  func.func @transform_0(%arg0: i32) -> (i32, i32) {
    %c0_i32 = arith.constant 0 : i32
    %c0_i32_0 = arith.constant 0 : i32
    return %arg0, %c0_i32 : i32, i32
  }
  func.func @transform_1(%arg0: i32) -> (i32, i32) {
    %c0_i32 = arith.constant 0 : i32
    %c0_i32_0 = arith.constant 0 : i32
    %c0_i32_1 = arith.constant 0 : i32
    return %c0_i32, %c0_i32_0 : i32, i32
  }
  func.func @transform_2(%arg0: i32) -> (i32, i32) {
    %c0_i32 = arith.constant 0 : i32
    %c0_i32_0 = arith.constant 0 : i32
    %c0_i32_1 = arith.constant 0 : i32
    return %c0_i32, %c0_i32_0 : i32, i32
  }
  func.func @transform_3(%arg0: i32) -> (i32, i32) {
    %c0_i32 = arith.constant 0 : i32
    %c0_i32_0 = arith.constant 0 : i32
    return %arg0, %c0_i32 : i32, i32
  }
}

module attributes {stable_mosaic.version = 11 : i64} {
  func.func @_conv_bnstats_kernel(%arg0: i32, %arg1: i32, %arg2: memref<1x10x16x128xbf16, #tpu.memory_space<vmem>>, %arg3: memref<9x128x128xbf16, #tpu.memory_space<vmem>>, %arg4: memref<1x64x128xbf16, #tpu.memory_space<vmem>>, %arg5: memref<1x1x2x128xf32, #tpu.memory_space<vmem>>, %arg6: memref<64x128xf32, #tpu.memory_space<vmem>>) attributes {dimension_semantics = [#tpu.dimension_semantics<parallel>, #tpu.dimension_semantics<parallel>], iteration_bounds = array<i64: 2, 1>, scalar_prefetch = 0 : i64, scratch_operands = 1 : i64, tpu.core_type = #tpu.core_type<tc>, window_params = [{transform_indices = @transform_0, window_bounds = array<i64: 1, 10, 16, 128>}, {pipeline_mode = #tpu.pipeline_mode<synchronous>, transform_indices = @transform_1, window_bounds = array<i64: 9, 128, 128>}, {transform_indices = @transform_2, window_bounds = array<i64: 1, 64, 128>}, {transform_indices = @transform_3, window_bounds = array<i64: 1, 1, 2, 128>}]} {
    %c8_i32 = arith.constant 8 : i32
    %0 = arith.muli %arg1, %c8_i32 : i32
    %1 = tpu.assume_multiple %0, 8 : i32
    %c0_i32 = arith.constant 0 : i32
    %2 = arith.addi %1, %c0_i32 : i32
    %c0 = arith.constant 0 : index
    %3 = arith.index_cast %2 : i32 to index
    %c0_0 = arith.constant 0 : index
    %c0_1 = arith.constant 0 : index
    %4 = vector.load %arg2[%c0, %3, %c0_0, %c0_1] : memref<1x10x16x128xbf16, #tpu.memory_space<vmem>>, vector<1x8x8x128xbf16>
    %5 = vector.shape_cast %4 : vector<1x8x8x128xbf16> to vector<8x8x128xbf16>
    %6 = vector.shape_cast %5 : vector<8x8x128xbf16> to vector<64x128xbf16>
    %c0_2 = arith.constant 0 : index
    %c0_3 = arith.constant 0 : index
    %c0_4 = arith.constant 0 : index
    %7 = vector.load %arg3[%c0_2, %c0_3, %c0_4] : memref<9x128x128xbf16, #tpu.memory_space<vmem>>, vector<1x128x128xbf16>
    %8 = vector.shape_cast %7 : vector<1x128x128xbf16> to vector<128x128xbf16>
    %cst = arith.constant dense<0.000000e+00> : vector<64x128xf32>
    %9 = tpu.matmul %6, %8, %cst {dimension_numbers = #tpu.dot_dimension_numbers<[1], [0], [0], [1], [0, 0, 1, 1], [], []>} : vector<64x128xbf16>, vector<128x128xbf16>, vector<64x128xf32> -> vector<64x128xf32>
    %c0_5 = arith.constant 0 : index
    %c0_6 = arith.constant 0 : index
    %10 = vector.load %arg6[%c0_5, %c0_6] : memref<64x128xf32, #tpu.memory_space<vmem>>, vector<64x128xf32>
    tpu.vector_store %arg6[%c0_5, %c0_6], %9 {strides = array<i32>} : memref<64x128xf32, #tpu.memory_space<vmem>>, vector<64x128xf32>,
    %c0_i32_7 = arith.constant 0 : i32
    %11 = arith.addi %1, %c0_i32_7 : i32
    %c0_8 = arith.constant 0 : index
    %12 = arith.index_cast %11 : i32 to index
    %c1 = arith.constant 1 : index
    %c0_9 = arith.constant 0 : index
    %13 = vector.load %arg2[%c0_8, %12, %c1, %c0_9] : memref<1x10x16x128xbf16, #tpu.memory_space<vmem>>, vector<1x8x8x128xbf16>
    %14 = vector.shape_cast %13 : vector<1x8x8x128xbf16> to vector<8x8x128xbf16>
    %15 = vector.shape_cast %14 : vector<8x8x128xbf16> to vector<64x128xbf16>
    %c1_10 = arith.constant 1 : index
    %c0_11 = arith.constant 0 : index
    %c0_12 = arith.constant 0 : index
    %16 = vector.load %arg3[%c1_10, %c0_11, %c0_12] : memref<9x128x128xbf16, #tpu.memory_space<vmem>>, vector<1x128x128xbf16>
    %17 = vector.shape_cast %16 : vector<1x128x128xbf16> to vector<128x128xbf16>
    %cst_13 = arith.constant dense<0.000000e+00> : vector<64x128xf32>
    %18 = tpu.matmul %15, %17, %cst_13 {dimension_numbers = #tpu.dot_dimension_numbers<[1], [0], [0], [1], [0, 0, 1, 1], [], []>} : vector<64x128xbf16>, vector<128x128xbf16>, vector<64x128xf32> -> vector<64x128xf32>
    %c0_14 = arith.constant 0 : index
    %c0_15 = arith.constant 0 : index
    %19 = vector.load %arg6[%c0_14, %c0_15] : memref<64x128xf32, #tpu.memory_space<vmem>>, vector<64x128xf32>
    %20 = arith.addf %19, %18 : vector<64x128xf32>
    %c0_16 = arith.constant 0 : index
    %c0_17 = arith.constant 0 : index
    %21 = vector.load %arg6[%c0_16, %c0_17] : memref<64x128xf32, #tpu.memory_space<vmem>>, vector<64x128xf32>
    tpu.vector_store %arg6[%c0_16, %c0_17], %20 {strides = array<i32>} : memref<64x128xf32, #tpu.memory_space<vmem>>, vector<64x128xf32>,
    %c0_i32_18 = arith.constant 0 : i32
    %22 = arith.addi %1, %c0_i32_18 : i32
    %c0_19 = arith.constant 0 : index
    %23 = arith.index_cast %22 : i32 to index
    %c2 = arith.constant 2 : index
    %c0_20 = arith.constant 0 : index
    %24 = vector.load %arg2[%c0_19, %23, %c2, %c0_20] : memref<1x10x16x128xbf16, #tpu.memory_space<vmem>>, vector<1x8x8x128xbf16>
    %25 = vector.shape_cast %24 : vector<1x8x8x128xbf16> to vector<8x8x128xbf16>
    %26 = vector.shape_cast %25 : vector<8x8x128xbf16> to vector<64x128xbf16>
    %c2_21 = arith.constant 2 : index
    %c0_22 = arith.constant 0 : index
    %c0_23 = arith.constant 0 : index
    %27 = vector.load %arg3[%c2_21, %c0_22, %c0_23] : memref<9x128x128xbf16, #tpu.memory_space<vmem>>, vector<1x128x128xbf16>
    %28 = vector.shape_cast %27 : vector<1x128x128xbf16> to vector<128x128xbf16>
    %cst_24 = arith.constant dense<0.000000e+00> : vector<64x128xf32>
    %29 = tpu.matmul %26, %28, %cst_24 {dimension_numbers = #tpu.dot_dimension_numbers<[1], [0], [0], [1], [0, 0, 1, 1], [], []>} : vector<64x128xbf16>, vector<128x128xbf16>, vector<64x128xf32> -> vector<64x128xf32>
    %c0_25 = arith.constant 0 : index
    %c0_26 = arith.constant 0 : index
    %30 = vector.load %arg6[%c0_25, %c0_26] : memref<64x128xf32, #tpu.memory_space<vmem>>, vector<64x128xf32>
    %31 = arith.addf %30, %29 : vector<64x128xf32>
    %c0_27 = arith.constant 0 : index
    %c0_28 = arith.constant 0 : index
    %32 = vector.load %arg6[%c0_27, %c0_28] : memref<64x128xf32, #tpu.memory_space<vmem>>, vector<64x128xf32>
    tpu.vector_store %arg6[%c0_27, %c0_28], %31 {strides = array<i32>} : memref<64x128xf32, #tpu.memory_space<vmem>>, vector<64x128xf32>,
    %c1_i32 = arith.constant 1 : i32
    %33 = arith.addi %1, %c1_i32 : i32
    %c0_29 = arith.constant 0 : index
    %34 = arith.index_cast %33 : i32 to index
    %c0_30 = arith.constant 0 : index
    %c0_31 = arith.constant 0 : index
    %35 = vector.load %arg2[%c0_29, %34, %c0_30, %c0_31] : memref<1x10x16x128xbf16, #tpu.memory_space<vmem>>, vector<1x8x8x128xbf16>
    %36 = vector.shape_cast %35 : vector<1x8x8x128xbf16> to vector<8x8x128xbf16>
    %37 = vector.shape_cast %36 : vector<8x8x128xbf16> to vector<64x128xbf16>
    %c3 = arith.constant 3 : index
    %c0_32 = arith.constant 0 : index
    %c0_33 = arith.constant 0 : index
    %38 = vector.load %arg3[%c3, %c0_32, %c0_33] : memref<9x128x128xbf16, #tpu.memory_space<vmem>>, vector<1x128x128xbf16>
    %39 = vector.shape_cast %38 : vector<1x128x128xbf16> to vector<128x128xbf16>
    %cst_34 = arith.constant dense<0.000000e+00> : vector<64x128xf32>
    %40 = tpu.matmul %37, %39, %cst_34 {dimension_numbers = #tpu.dot_dimension_numbers<[1], [0], [0], [1], [0, 0, 1, 1], [], []>} : vector<64x128xbf16>, vector<128x128xbf16>, vector<64x128xf32> -> vector<64x128xf32>
    %c0_35 = arith.constant 0 : index
    %c0_36 = arith.constant 0 : index
    %41 = vector.load %arg6[%c0_35, %c0_36] : memref<64x128xf32, #tpu.memory_space<vmem>>, vector<64x128xf32>
    %42 = arith.addf %41, %40 : vector<64x128xf32>
    %c0_37 = arith.constant 0 : index
    %c0_38 = arith.constant 0 : index
    %43 = vector.load %arg6[%c0_37, %c0_38] : memref<64x128xf32, #tpu.memory_space<vmem>>, vector<64x128xf32>
    tpu.vector_store %arg6[%c0_37, %c0_38], %42 {strides = array<i32>} : memref<64x128xf32, #tpu.memory_space<vmem>>, vector<64x128xf32>,
    %c1_i32_39 = arith.constant 1 : i32
    %44 = arith.addi %1, %c1_i32_39 : i32
    %c0_40 = arith.constant 0 : index
    %45 = arith.index_cast %44 : i32 to index
    %c1_41 = arith.constant 1 : index
    %c0_42 = arith.constant 0 : index
    %46 = vector.load %arg2[%c0_40, %45, %c1_41, %c0_42] : memref<1x10x16x128xbf16, #tpu.memory_space<vmem>>, vector<1x8x8x128xbf16>
    %47 = vector.shape_cast %46 : vector<1x8x8x128xbf16> to vector<8x8x128xbf16>
    %48 = vector.shape_cast %47 : vector<8x8x128xbf16> to vector<64x128xbf16>
    %c4 = arith.constant 4 : index
    %c0_43 = arith.constant 0 : index
    %c0_44 = arith.constant 0 : index
    %49 = vector.load %arg3[%c4, %c0_43, %c0_44] : memref<9x128x128xbf16, #tpu.memory_space<vmem>>, vector<1x128x128xbf16>
    %50 = vector.shape_cast %49 : vector<1x128x128xbf16> to vector<128x128xbf16>
    %cst_45 = arith.constant dense<0.000000e+00> : vector<64x128xf32>
    %51 = tpu.matmul %48, %50, %cst_45 {dimension_numbers = #tpu.dot_dimension_numbers<[1], [0], [0], [1], [0, 0, 1, 1], [], []>} : vector<64x128xbf16>, vector<128x128xbf16>, vector<64x128xf32> -> vector<64x128xf32>
    %c0_46 = arith.constant 0 : index
    %c0_47 = arith.constant 0 : index
    %52 = vector.load %arg6[%c0_46, %c0_47] : memref<64x128xf32, #tpu.memory_space<vmem>>, vector<64x128xf32>
    %53 = arith.addf %52, %51 : vector<64x128xf32>
    %c0_48 = arith.constant 0 : index
    %c0_49 = arith.constant 0 : index
    %54 = vector.load %arg6[%c0_48, %c0_49] : memref<64x128xf32, #tpu.memory_space<vmem>>, vector<64x128xf32>
    tpu.vector_store %arg6[%c0_48, %c0_49], %53 {strides = array<i32>} : memref<64x128xf32, #tpu.memory_space<vmem>>, vector<64x128xf32>,
    %c1_i32_50 = arith.constant 1 : i32
    %55 = arith.addi %1, %c1_i32_50 : i32
    %c0_51 = arith.constant 0 : index
    %56 = arith.index_cast %55 : i32 to index
    %c2_52 = arith.constant 2 : index
    %c0_53 = arith.constant 0 : index
    %57 = vector.load %arg2[%c0_51, %56, %c2_52, %c0_53] : memref<1x10x16x128xbf16, #tpu.memory_space<vmem>>, vector<1x8x8x128xbf16>
    %58 = vector.shape_cast %57 : vector<1x8x8x128xbf16> to vector<8x8x128xbf16>
    %59 = vector.shape_cast %58 : vector<8x8x128xbf16> to vector<64x128xbf16>
    %c5 = arith.constant 5 : index
    %c0_54 = arith.constant 0 : index
    %c0_55 = arith.constant 0 : index
    %60 = vector.load %arg3[%c5, %c0_54, %c0_55] : memref<9x128x128xbf16, #tpu.memory_space<vmem>>, vector<1x128x128xbf16>
    %61 = vector.shape_cast %60 : vector<1x128x128xbf16> to vector<128x128xbf16>
    %cst_56 = arith.constant dense<0.000000e+00> : vector<64x128xf32>
    %62 = tpu.matmul %59, %61, %cst_56 {dimension_numbers = #tpu.dot_dimension_numbers<[1], [0], [0], [1], [0, 0, 1, 1], [], []>} : vector<64x128xbf16>, vector<128x128xbf16>, vector<64x128xf32> -> vector<64x128xf32>
    %c0_57 = arith.constant 0 : index
    %c0_58 = arith.constant 0 : index
    %63 = vector.load %arg6[%c0_57, %c0_58] : memref<64x128xf32, #tpu.memory_space<vmem>>, vector<64x128xf32>
    %64 = arith.addf %63, %62 : vector<64x128xf32>
    %c0_59 = arith.constant 0 : index
    %c0_60 = arith.constant 0 : index
    %65 = vector.load %arg6[%c0_59, %c0_60] : memref<64x128xf32, #tpu.memory_space<vmem>>, vector<64x128xf32>
    tpu.vector_store %arg6[%c0_59, %c0_60], %64 {strides = array<i32>} : memref<64x128xf32, #tpu.memory_space<vmem>>, vector<64x128xf32>,
    %c2_i32 = arith.constant 2 : i32
    %66 = arith.addi %1, %c2_i32 : i32
    %c0_61 = arith.constant 0 : index
    %67 = arith.index_cast %66 : i32 to index
    %c0_62 = arith.constant 0 : index
    %c0_63 = arith.constant 0 : index
    %68 = vector.load %arg2[%c0_61, %67, %c0_62, %c0_63] : memref<1x10x16x128xbf16, #tpu.memory_space<vmem>>, vector<1x8x8x128xbf16>
    %69 = vector.shape_cast %68 : vector<1x8x8x128xbf16> to vector<8x8x128xbf16>
    %70 = vector.shape_cast %69 : vector<8x8x128xbf16> to vector<64x128xbf16>
    %c6 = arith.constant 6 : index
    %c0_64 = arith.constant 0 : index
    %c0_65 = arith.constant 0 : index
    %71 = vector.load %arg3[%c6, %c0_64, %c0_65] : memref<9x128x128xbf16, #tpu.memory_space<vmem>>, vector<1x128x128xbf16>
    %72 = vector.shape_cast %71 : vector<1x128x128xbf16> to vector<128x128xbf16>
    %cst_66 = arith.constant dense<0.000000e+00> : vector<64x128xf32>
    %73 = tpu.matmul %70, %72, %cst_66 {dimension_numbers = #tpu.dot_dimension_numbers<[1], [0], [0], [1], [0, 0, 1, 1], [], []>} : vector<64x128xbf16>, vector<128x128xbf16>, vector<64x128xf32> -> vector<64x128xf32>
    %c0_67 = arith.constant 0 : index
    %c0_68 = arith.constant 0 : index
    %74 = vector.load %arg6[%c0_67, %c0_68] : memref<64x128xf32, #tpu.memory_space<vmem>>, vector<64x128xf32>
    %75 = arith.addf %74, %73 : vector<64x128xf32>
    %c0_69 = arith.constant 0 : index
    %c0_70 = arith.constant 0 : index
    %76 = vector.load %arg6[%c0_69, %c0_70] : memref<64x128xf32, #tpu.memory_space<vmem>>, vector<64x128xf32>
    tpu.vector_store %arg6[%c0_69, %c0_70], %75 {strides = array<i32>} : memref<64x128xf32, #tpu.memory_space<vmem>>, vector<64x128xf32>,
    %c2_i32_71 = arith.constant 2 : i32
    %77 = arith.addi %1, %c2_i32_71 : i32
    %c0_72 = arith.constant 0 : index
    %78 = arith.index_cast %77 : i32 to index
    %c1_73 = arith.constant 1 : index
    %c0_74 = arith.constant 0 : index
    %79 = vector.load %arg2[%c0_72, %78, %c1_73, %c0_74] : memref<1x10x16x128xbf16, #tpu.memory_space<vmem>>, vector<1x8x8x128xbf16>
    %80 = vector.shape_cast %79 : vector<1x8x8x128xbf16> to vector<8x8x128xbf16>
    %81 = vector.shape_cast %80 : vector<8x8x128xbf16> to vector<64x128xbf16>
    %c7 = arith.constant 7 : index
    %c0_75 = arith.constant 0 : index
    %c0_76 = arith.constant 0 : index
    %82 = vector.load %arg3[%c7, %c0_75, %c0_76] : memref<9x128x128xbf16, #tpu.memory_space<vmem>>, vector<1x128x128xbf16>
    %83 = vector.shape_cast %82 : vector<1x128x128xbf16> to vector<128x128xbf16>
    %cst_77 = arith.constant dense<0.000000e+00> : vector<64x128xf32>
    %84 = tpu.matmul %81, %83, %cst_77 {dimension_numbers = #tpu.dot_dimension_numbers<[1], [0], [0], [1], [0, 0, 1, 1], [], []>} : vector<64x128xbf16>, vector<128x128xbf16>, vector<64x128xf32> -> vector<64x128xf32>
    %c0_78 = arith.constant 0 : index
    %c0_79 = arith.constant 0 : index
    %85 = vector.load %arg6[%c0_78, %c0_79] : memref<64x128xf32, #tpu.memory_space<vmem>>, vector<64x128xf32>
    %86 = arith.addf %85, %84 : vector<64x128xf32>
    %c0_80 = arith.constant 0 : index
    %c0_81 = arith.constant 0 : index
    %87 = vector.load %arg6[%c0_80, %c0_81] : memref<64x128xf32, #tpu.memory_space<vmem>>, vector<64x128xf32>
    tpu.vector_store %arg6[%c0_80, %c0_81], %86 {strides = array<i32>} : memref<64x128xf32, #tpu.memory_space<vmem>>, vector<64x128xf32>,
    %c2_i32_82 = arith.constant 2 : i32
    %88 = arith.addi %1, %c2_i32_82 : i32
    %c0_83 = arith.constant 0 : index
    %89 = arith.index_cast %88 : i32 to index
    %c2_84 = arith.constant 2 : index
    %c0_85 = arith.constant 0 : index
    %90 = vector.load %arg2[%c0_83, %89, %c2_84, %c0_85] : memref<1x10x16x128xbf16, #tpu.memory_space<vmem>>, vector<1x8x8x128xbf16>
    %91 = vector.shape_cast %90 : vector<1x8x8x128xbf16> to vector<8x8x128xbf16>
    %92 = vector.shape_cast %91 : vector<8x8x128xbf16> to vector<64x128xbf16>
    %c8 = arith.constant 8 : index
    %c0_86 = arith.constant 0 : index
    %c0_87 = arith.constant 0 : index
    %93 = vector.load %arg3[%c8, %c0_86, %c0_87] : memref<9x128x128xbf16, #tpu.memory_space<vmem>>, vector<1x128x128xbf16>
    %94 = vector.shape_cast %93 : vector<1x128x128xbf16> to vector<128x128xbf16>
    %cst_88 = arith.constant dense<0.000000e+00> : vector<64x128xf32>
    %95 = tpu.matmul %92, %94, %cst_88 {dimension_numbers = #tpu.dot_dimension_numbers<[1], [0], [0], [1], [0, 0, 1, 1], [], []>} : vector<64x128xbf16>, vector<128x128xbf16>, vector<64x128xf32> -> vector<64x128xf32>
    %c0_89 = arith.constant 0 : index
    %c0_90 = arith.constant 0 : index
    %96 = vector.load %arg6[%c0_89, %c0_90] : memref<64x128xf32, #tpu.memory_space<vmem>>, vector<64x128xf32>
    %97 = arith.addf %96, %95 : vector<64x128xf32>
    %c0_91 = arith.constant 0 : index
    %c0_92 = arith.constant 0 : index
    %98 = vector.load %arg6[%c0_91, %c0_92] : memref<64x128xf32, #tpu.memory_space<vmem>>, vector<64x128xf32>
    tpu.vector_store %arg6[%c0_91, %c0_92], %97 {strides = array<i32>} : memref<64x128xf32, #tpu.memory_space<vmem>>, vector<64x128xf32>,
    %c0_93 = arith.constant 0 : index
    %c0_94 = arith.constant 0 : index
    %99 = vector.load %arg6[%c0_93, %c0_94] : memref<64x128xf32, #tpu.memory_space<vmem>>, vector<64x128xf32>
    %100 = arith.truncf %99 : vector<64x128xf32> to vector<64x128xbf16>
    %c0_95 = arith.constant 0 : index
    %c0_96 = arith.constant 0 : index
    %c0_97 = arith.constant 0 : index
    %101 = vector.load %arg4[%c0_95, %c0_96, %c0_97] : memref<1x64x128xbf16, #tpu.memory_space<vmem>>, vector<1x64x128xbf16>
    %102 = vector.shape_cast %101 : vector<1x64x128xbf16> to vector<64x128xbf16>
    %103 = vector.shape_cast %100 : vector<64x128xbf16> to vector<1x64x128xbf16>
    tpu.vector_store %arg4[%c0_95, %c0_96, %c0_97], %103 {strides = array<i32>} : memref<1x64x128xbf16, #tpu.memory_space<vmem>>, vector<1x64x128xbf16>,
    %cst_98 = arith.constant dense<0.000000e+00> : vector<128xf32>
    %104 = vector.multi_reduction <add>, %99, %cst_98 [0] : vector<64x128xf32> to vector<128xf32>
    %105 = vector.shape_cast %104 : vector<128xf32> to vector<1x128xf32>
    %106 = arith.mulf %99, %99 : vector<64x128xf32>
    %cst_99 = arith.constant dense<0.000000e+00> : vector<128xf32>
    %107 = vector.multi_reduction <add>, %106, %cst_99 [0] : vector<64x128xf32> to vector<128xf32>
    %108 = vector.shape_cast %107 : vector<128xf32> to vector<1x128xf32>
    %109 = tpu.concatenate %105, %108 in 0 : vector<1x128xf32>, vector<1x128xf32> -> vector<2x128xf32>
    %c0_100 = arith.constant 0 : index
    %c0_101 = arith.constant 0 : index
    %c0_102 = arith.constant 0 : index
    %c0_103 = arith.constant 0 : index
    %110 = vector.load %arg5[%c0_100, %c0_101, %c0_102, %c0_103] : memref<1x1x2x128xf32, #tpu.memory_space<vmem>>, vector<1x1x2x128xf32>
    %111 = vector.shape_cast %110 : vector<1x1x2x128xf32> to vector<2x128xf32>
    %112 = vector.shape_cast %109 : vector<2x128xf32> to vector<1x1x2x128xf32>
    tpu.vector_store %arg5[%c0_100, %c0_101, %c0_102, %c0_103], %112 {strides = array<i32>} : memref<1x1x2x128xf32, #tpu.memory_space<vmem>>, vector<1x1x2x128xf32>,
    return
  }
  func.func @transform_0(%arg0: i32, %arg1: i32) -> (i32, i32, i32, i32) {
    %c0_i32 = arith.constant 0 : i32
    %c0_i32_0 = arith.constant 0 : i32
    %c0_i32_1 = arith.constant 0 : i32
    %c0_i32_2 = arith.constant 0 : i32
    return %arg0, %c0_i32, %c0_i32_0, %c0_i32_1 : i32, i32, i32, i32
  }
  func.func @transform_1(%arg0: i32, %arg1: i32) -> (i32, i32, i32) {
    %c0_i32 = arith.constant 0 : i32
    %c0_i32_0 = arith.constant 0 : i32
    %c0_i32_1 = arith.constant 0 : i32
    %c0_i32_2 = arith.constant 0 : i32
    return %c0_i32, %c0_i32_0, %c0_i32_1 : i32, i32, i32
  }
  func.func @transform_2(%arg0: i32, %arg1: i32) -> (i32, i32, i32) {
    %c0_i32 = arith.constant 0 : i32
    %c0_i32_0 = arith.constant 0 : i32
    return %arg0, %arg1, %c0_i32 : i32, i32, i32
  }
  func.func @transform_3(%arg0: i32, %arg1: i32) -> (i32, i32, i32, i32) {
    %c0_i32 = arith.constant 0 : i32
    %c0_i32_0 = arith.constant 0 : i32
    %c0_i32_1 = arith.constant 0 : i32
    return %arg0, %arg1, %c0_i32, %c0_i32_0 : i32, i32, i32, i32
  }
}

module attributes {stable_mosaic.version = 11 : i64} {
  func.func @_bn_res_relu_kernel(%arg0: i32, %arg1: memref<128x128xbf16, #tpu.memory_space<vmem>>, %arg2: memref<128x128xbf16, #tpu.memory_space<vmem>>, %arg3: memref<128x128xbf16, #tpu.memory_space<vmem>>, %arg4: memref<1x128xf32, #tpu.memory_space<vmem>>, %arg5: memref<1x128xf32, #tpu.memory_space<vmem>>, %arg6: memref<128x128xf32, #tpu.memory_space<vmem>>) attributes {dimension_semantics = [#tpu.dimension_semantics<parallel>], iteration_bounds = array<i64: 1>, scalar_prefetch = 0 : i64, scratch_operands = 0 : i64, tpu.core_type = #tpu.core_type<tc>, window_params = [{transform_indices = @transform_0, window_bounds = array<i64: 128, 128>}, {transform_indices = @transform_1, window_bounds = array<i64: 128, 128>}, {pipeline_mode = #tpu.pipeline_mode<synchronous>, transform_indices = @transform_2, window_bounds = array<i64: 128, 128>}, {pipeline_mode = #tpu.pipeline_mode<synchronous>, transform_indices = @transform_3, window_bounds = array<i64: 1, 128>}, {pipeline_mode = #tpu.pipeline_mode<synchronous>, transform_indices = @transform_4, window_bounds = array<i64: 1, 128>}, {transform_indices = @transform_5, window_bounds = array<i64: 128, 128>}]} {
    %c0 = arith.constant 0 : index
    %c0_0 = arith.constant 0 : index
    %0 = vector.load %arg2[%c0, %c0_0] : memref<128x128xbf16, #tpu.memory_space<vmem>>, vector<128x128xbf16>
    %c0_1 = arith.constant 0 : index
    %c0_2 = arith.constant 0 : index
    %1 = vector.load %arg3[%c0_1, %c0_2] : memref<128x128xbf16, #tpu.memory_space<vmem>>, vector<128x128xbf16>
    %cst = arith.constant dense<0.000000e+00> : vector<128x128xf32>
    %2 = tpu.matmul %0, %1, %cst {dimension_numbers = #tpu.dot_dimension_numbers<[1], [0], [0], [1], [0, 0, 1, 1], [], []>} : vector<128x128xbf16>, vector<128x128xbf16>, vector<128x128xf32> -> vector<128x128xf32>
    %c0_3 = arith.constant 0 : index
    %c0_4 = arith.constant 0 : index
    %3 = vector.load %arg1[%c0_3, %c0_4] : memref<128x128xbf16, #tpu.memory_space<vmem>>, vector<128x128xbf16>
    %4 = arith.extf %3 : vector<128x128xbf16> to vector<128x128xf32>
    %c0_5 = arith.constant 0 : index
    %c0_6 = arith.constant 0 : index
    %5 = vector.load %arg4[%c0_5, %c0_6] : memref<1x128xf32, #tpu.memory_space<vmem>>, vector<1x128xf32>
    %6 = vector.broadcast %5 : vector<1x128xf32> to vector<128x128xf32>
    %7 = arith.mulf %4, %6 : vector<128x128xf32>
    %c0_7 = arith.constant 0 : index
    %c0_8 = arith.constant 0 : index
    %8 = vector.load %arg5[%c0_7, %c0_8] : memref<1x128xf32, #tpu.memory_space<vmem>>, vector<1x128xf32>
    %9 = vector.broadcast %8 : vector<1x128xf32> to vector<128x128xf32>
    %10 = arith.addf %7, %9 : vector<128x128xf32>
    %11 = arith.addf %10, %2 : vector<128x128xf32>
    %cst_9 = arith.constant 0.000000e+00 : f32
    %12 = vector.broadcast %cst_9 : f32 to vector<128x128xf32>
    %13 = arith.maximumf %11, %12 : vector<128x128xf32>
    %c0_10 = arith.constant 0 : index
    %c0_11 = arith.constant 0 : index
    %14 = vector.load %arg6[%c0_10, %c0_11] : memref<128x128xf32, #tpu.memory_space<vmem>>, vector<128x128xf32>
    tpu.vector_store %arg6[%c0_10, %c0_11], %13 {strides = array<i32>} : memref<128x128xf32, #tpu.memory_space<vmem>>, vector<128x128xf32>,
    return
  }
  func.func @transform_0(%arg0: i32) -> (i32, i32) {
    %c0_i32 = arith.constant 0 : i32
    %c0_i32_0 = arith.constant 0 : i32
    return %arg0, %c0_i32 : i32, i32
  }
  func.func @transform_1(%arg0: i32) -> (i32, i32) {
    %c0_i32 = arith.constant 0 : i32
    %c0_i32_0 = arith.constant 0 : i32
    return %arg0, %c0_i32 : i32, i32
  }
  func.func @transform_2(%arg0: i32) -> (i32, i32) {
    %c0_i32 = arith.constant 0 : i32
    %c0_i32_0 = arith.constant 0 : i32
    %c0_i32_1 = arith.constant 0 : i32
    return %c0_i32, %c0_i32_0 : i32, i32
  }
  func.func @transform_3(%arg0: i32) -> (i32, i32) {
    %c0_i32 = arith.constant 0 : i32
    %c0_i32_0 = arith.constant 0 : i32
    %c0_i32_1 = arith.constant 0 : i32
    return %c0_i32, %c0_i32_0 : i32, i32
  }
  func.func @transform_4(%arg0: i32) -> (i32, i32) {
    %c0_i32 = arith.constant 0 : i32
    %c0_i32_0 = arith.constant 0 : i32
    %c0_i32_1 = arith.constant 0 : i32
    return %c0_i32, %c0_i32_0 : i32, i32
  }
  func.func @transform_5(%arg0: i32) -> (i32, i32) {
    %c0_i32 = arith.constant 0 : i32
    %c0_i32_0 = arith.constant 0 : i32
    return %arg0, %c0_i32 : i32, i32
  }
}

</mosaic_0001>

<bundles_post_ra>
// kernel: downsample_residual_block.5
= control target key start
LH: loop header
LB: loop body
LE: loop exit
PB: predicated region body
PF: predicated region fallthrough
CT: control target
= control target key end

     0   :  { %s336_s0 = inlined_call_operand.vmem [shape: bf16[128,128], index: 0, kind: input, shape index: {}]   ;;  %s337_s1 = inlined_call_operand.vmem [shape: f32[1,128], index: 1, kind: input, shape index: {}]   ;;  %s338_s2 = inlined_call_operand.vmem [shape: f32[1,128], index: 2, kind: input, shape index: {}]   ;;  %s339_s3 = inlined_call_operand.vmem [shape: bf16[128,128], index: 3, kind: output, shape index: {}]  }
   0x1   :  { %v139_v0 = vld [vmem:[%s336_s0] sm:$0xff]   ;;  %v210_v5 = vld [vmem:[%s336_s0 + $0x8] sm:$0xff]   ;;  %v211_v8 = vld [vmem:[%s336_s0 + $0x10] sm:$0xff]  }
   0x2   :  { %v252_v1 = vld [vmem:[%s337_s1] ss:$0 sm:$0xff]  ;;  %v140_v2 = vunpack.c.l.bf16 %v139_v0  ;;  %v141_v3 = vunpack.c.h.bf16 %v139_v0  ;;  %v144_v6 = vunpack.c.l.bf16 %v210_v5  ;;  %v145_v7 = vunpack.c.h.bf16 %v210_v5  ;;  %v212_v9 = vld [vmem:[%s336_s0 + $0x18] sm:$0xff]   ;;  %v214_v35 = vld [vmem:[%s336_s0 + $0x28] sm:$0xff]  }
   0x3   :  { %v257_v4 = vld [vmem:[%s338_s2] ss:$0 sm:$0xff]  ;;  %v148_v12 = vunpack.c.l.bf16 %v211_v8  ;;  %v149_v13 = vunpack.c.h.bf16 %v211_v8  ;;  %v152_v16 = vunpack.c.l.bf16 %v212_v9  ;;  %v153_v17 = vunpack.c.h.bf16 %v212_v9  ;;  %v215_v40 = vld [vmem:[%s336_s0 + $0x30] sm:$0xff]   ;;  %v216_v45 = vld [vmem:[%s336_s0 + $0x38] sm:$0xff]  }
   0x4   :  { %v50_v10 = vmul.f32 %v252_v1, %v140_v2  ;;  %v51_v11 = vmul.f32 %v252_v1, %v141_v3  ;;  %v52_v14 = vmul.f32 %v252_v1, %v144_v6  ;;  %v53_v15 = vmul.f32 %v252_v1, %v145_v7  ;;  %v213_v26 = vld [vmem:[%s336_s0 + $0x20] sm:$0xff]  }
   0x5   :  { %v54_v20 = vmul.f32 %v252_v1, %v148_v12  ;;  %v55_v21 = vmul.f32 %v252_v1, %v149_v13  ;;  %v56_v24 = vmul.f32 %v252_v1, %v152_v16  ;;  %v57_v25 = vmul.f32 %v252_v1, %v153_v17 }
   0x6   :  { %v70_v18 = vadd.f32 %v257_v4, %v50_v10  ;;  %v71_v19 = vadd.f32 %v257_v4, %v51_v11  ;;  %v72_v22 = vadd.f32 %v257_v4, %v52_v14  ;;  %v73_v23 = vadd.f32 %v257_v4, %v53_v15 }
   0x7   :  { %v74_v29 = vadd.f32 %v257_v4, %v54_v20  ;;  %v75_v30 = vadd.f32 %v257_v4, %v55_v21  ;;  %v76_v33 = vadd.f32 %v257_v4, %v56_v24  ;;  %v77_v34 = vadd.f32 %v257_v4, %v57_v25 }
   0x8   :  { %v86_v27 = vmax.f32 %v70_v18, 0.0  ;;  %v87_v28 = vmax.f32 %v71_v19, 0.0  ;;  %v88_v31 = vmax.f32 %v72_v22, 0.0  ;;  %v89_v32 = vmax.f32 %v73_v23, 0.0 }
   0x9   :  { %v90_v37 = vmax.f32 %v74_v29, 0.0  ;;  %v91_v38 = vmax.f32 %v75_v30, 0.0  ;;  %v156_v39 = vunpack.c.l.bf16 %v213_v26  ;;  %v92_v42 = vmax.f32 %v76_v33, 0.0 }
   0xa   :  { %v173_v36 = vpack.c.bf16 %v87_v28, %v86_v27  ;;  %v178_v41 = vpack.c.bf16 %v89_v32, %v88_v31  ;;  %v93_v43 = vmax.f32 %v77_v34, 0.0  ;;  %v157_v44 = vunpack.c.h.bf16 %v213_v26 }
   0xb   :  { %v183_v46 = vpack.c.bf16 %v91_v38, %v90_v37  ;;  %v58_v47 = vmul.f32 %v252_v1, %v156_v39  ;;  %v160_v48 = vunpack.c.l.bf16 %v214_v35  ;;  %v161_v49 = vunpack.c.h.bf16 %v214_v35 }
   0xc   :  { %174 = vst [vmem:[%s339_s3] sm:$0xff] %v173_v36   ;;  %v188_v50 = vpack.c.bf16 %v93_v43, %v92_v42  ;;  %v59_v51 = vmul.f32 %v252_v1, %v157_v44  ;;  %v164_v52 = vunpack.c.l.bf16 %v215_v40  ;;  %v165_v53 = vunpack.c.h.bf16 %v215_v40 }
   0xd   :  { %217 = vst [vmem:[%s339_s3 + $0x8] sm:$0xff] %v178_v41   ;;  %v78_v54 = vadd.f32 %v257_v4, %v58_v47  ;;  %v60_v55 = vmul.f32 %v252_v1, %v160_v48  ;;  %v61_v56 = vmul.f32 %v252_v1, %v161_v49  ;;  %v168_v57 = vunpack.c.l.bf16 %v216_v45 }
   0xe   :  { %218 = vst [vmem:[%s339_s3 + $0x10] sm:$0xff] %v183_v46   ;;  %v79_v58 = vadd.f32 %v257_v4, %v59_v51  ;;  %v62_v59 = vmul.f32 %v252_v1, %v164_v52  ;;  %v63_v60 = vmul.f32 %v252_v1, %v165_v53  ;;  %v169_v61 = vunpack.c.h.bf16 %v216_v45 }
   0xf   :  { %219 = vst [vmem:[%s339_s3 + $0x18] sm:$0xff] %v188_v50   ;;  %v94_v62 = vmax.f32 %v78_v54, 0.0  ;;  %v80_v63 = vadd.f32 %v257_v4, %v60_v55  ;;  %v81_v0 = vadd.f32 %v257_v4, %v61_v56  ;;  %v64_v2 = vmul.f32 %v252_v1, %v168_v57 }
  0x10   :  { %v95_v3 = vmax.f32 %v79_v58, 0.0  ;;  %v82_v5 = vadd.f32 %v257_v4, %v62_v59  ;;  %v83_v6 = vadd.f32 %v257_v4, %v63_v60  ;;  %v65_v7 = vmul.f32 %v252_v1, %v169_v61 }
  0x11   :  { %v96_v8 = vmax.f32 %v80_v63, 0.0  ;;  %v97_v9 = vmax.f32 %v81_v0, 0.0  ;;  %v84_v10 = vadd.f32 %v257_v4, %v64_v2 }
  0x12   :  { %v193_v11 = vpack.c.bf16 %v95_v3, %v94_v62  ;;  %v98_v12 = vmax.f32 %v82_v5, 0.0  ;;  %v99_v13 = vmax.f32 %v83_v6, 0.0  ;;  %v85_v14 = vadd.f32 %v257_v4, %v65_v7 }
  0x13   :  { %v198_v15 = vpack.c.bf16 %v97_v9, %v96_v8  ;;  %v100_v16 = vmax.f32 %v84_v10, 0.0 }
  0x14   :  { %220 = vst [vmem:[%s339_s3 + $0x20] sm:$0xff] %v193_v11   ;;  %v203_v17 = vpack.c.bf16 %v99_v13, %v98_v12  ;;  %v101_v18 = vmax.f32 %v85_v14, 0.0 }
  0x15   :  { %221 = vst [vmem:[%s339_s3 + $0x28] sm:$0xff] %v198_v15  }
  0x16   :  { %222 = vst [vmem:[%s339_s3 + $0x30] sm:$0xff] %v203_v17   ;;  %v208_v1 = vpack.c.bf16 %v101_v18, %v100_v16 }
  0x18   :  { %223 = vst [vmem:[%s339_s3 + $0x38] sm:$0xff] %v208_v1  }

// kernel: downsample_residual_block.7
= control target key start
LH: loop header
LB: loop body
LE: loop exit
PB: predicated region body
PF: predicated region fallthrough
CT: control target
= control target key end

     0   :  { %s658_s2 = inlined_call_operand.vmem [shape: bf16[128,128], index: 2, kind: input, shape index: {}]   ;;  %s659_s3 = inlined_call_operand.vmem [shape: f32[1,128], index: 3, kind: input, shape index: {}]   ;;  %s660_s4 = inlined_call_operand.vmem [shape: f32[1,128], index: 4, kind: input, shape index: {}]   ;;  %s661_s1 = inlined_call_operand.vmem [shape: bf16[128,128], index: 1, kind: input, shape index: {}]   ;;  %s662_s0 = inlined_call_operand.vmem [shape: bf16[128,128], index: 0, kind: input, shape index: {}]   ;;  %s663_s5 = inlined_call_operand.vmem [shape: f32[128,128], index: 5, kind: output, shape index: {}]  }
   0x1   :  { %v400_v0 = vld [vmem:[%s658_s2 + $0x38] sm:$0xff]  ;;  %v399_v1 = vld [vmem:[%s658_s2 + $0x30] sm:$0xff]  ;;  %v398_v2 = vld [vmem:[%s658_s2 + $0x28] sm:$0xff] }
   0x2   :  { %148 = vmatpush.bf16.msra.mxu0 %v400_v0  ;;  %440 = vmatpush.bf16.msra.mxu1 %v400_v0  ;;  %v397_v3 = vld [vmem:[%s658_s2 + $0x20] sm:$0xff]  ;;  %v396_v4 = vld [vmem:[%s658_s2 + $0x18] sm:$0xff]  ;;  %v395_v5 = vld [vmem:[%s658_s2 + $0x10] sm:$0xff] }
   0x3   :  { %441 = vmatpush.bf16.msra.mxu2 %v400_v0  ;;  %442 = vmatpush.bf16.msra.mxu3 %v400_v0  ;;  %v394_v6 = vld [vmem:[%s658_s2 + $0x8] sm:$0xff]  ;;  %v393_v7 = vld [vmem:[%s658_s2] sm:$0xff]  ;;  %v387_v9 = vld [vmem:[%s661_s1 + $0x10] sm:$0xff] }
   0x4   :  { %v385_v8 = vld [vmem:[%s661_s1] sm:$0xff]  ;;  %v391_v11 = vld [vmem:[%s661_s1 + $0x30] sm:$0xff]  ;;  %v386_v12 = vld [vmem:[%s661_s1 + $0x8] sm:$0xff] }
   0x5   :  { %v389_v10 = vld [vmem:[%s661_s1 + $0x20] sm:$0xff]  ;;  %v388_v13 = vld [vmem:[%s661_s1 + $0x18] sm:$0xff]  ;;  %v390_v14 = vld [vmem:[%s661_s1 + $0x28] sm:$0xff] }
   0x6   :  { %149 = vmatpush.bf16.msra.mxu0 %v399_v1  ;;  %443 = vmatpush.bf16.msra.mxu1 %v399_v1  ;;  %v392_v15 = vld [vmem:[%s661_s1 + $0x38] sm:$0xff]  ;;  %v402_v16 = vld [vmem:[%s662_s0] sm:$0xff]   ;;  %v434_v17 = vld [vmem:[%s662_s0 + $0x10] sm:$0xff]  }
   0x7   :  { %444 = vmatpush.bf16.msra.mxu2 %v399_v1  ;;  %445 = vmatpush.bf16.msra.mxu3 %v399_v1  ;;  %v403_v18 = vunpack.c.l.bf16 %v402_v16  ;;  %v553_v19 = vld [vmem:[%s659_s3] ss:$0 sm:$0xff]  ;;  %v411_v20 = vunpack.c.l.bf16 %v434_v17  ;;  %v438_v25 = vld [vmem:[%s662_s0 + $0x30] sm:$0xff]   ;;  %v404_v30 = vunpack.c.h.bf16 %v402_v16  ;;  %v412_v31 = vunpack.c.h.bf16 %v434_v17  ;;  %v433_v40 = vld [vmem:[%s662_s0 + $0x8] sm:$0xff]  }
   0x8   :  { %v559_v22 = vld [vmem:[%s660_s4] ss:$0 sm:$0xff]  ;;  %v427_v27 = vunpack.c.l.bf16 %v438_v25  ;;  %v435_v41 = vld [vmem:[%s662_s0 + $0x18] sm:$0xff]   ;;  %v428_v47 = vunpack.c.h.bf16 %v438_v25  ;;  %v407_v50 = vunpack.c.l.bf16 %v433_v40  ;;  %v437_v0 = vld [vmem:[%s662_s0 + $0x28] sm:$0xff]  }
   0x9   :  { %v233_v21 = vmul.f32 %v553_v19, %v403_v18  ;;  %v237_v23 = vmul.f32 %v553_v19, %v411_v20  ;;  %v436_v24 = vld [vmem:[%s662_s0 + $0x20] sm:$0xff]   ;;  %v234_v38 = vmul.f32 %v553_v19, %v404_v30  ;;  %v238_v39 = vmul.f32 %v553_v19, %v412_v31  ;;  %v439_v1 = vld [vmem:[%s662_s0 + $0x38] sm:$0xff]  }
   0xa   :  { %150 = vmatpush.bf16.msra.mxu0 %v398_v2  ;;  %446 = vmatpush.bf16.msra.mxu1 %v398_v2  ;;  %v419_v26 = vunpack.c.l.bf16 %v436_v24  ;;  %v245_v35 = vmul.f32 %v553_v19, %v427_v27  ;;  %v420_v46 = vunpack.c.h.bf16 %v436_v24  ;;  %v415_v51 = vunpack.c.l.bf16 %v435_v41 }
   0xb   :  { %447 = vmatpush.bf16.msra.mxu2 %v398_v2  ;;  %448 = vmatpush.bf16.msra.mxu3 %v398_v2  ;;  %v253_v28 = vadd.f32 %v559_v22, %v233_v21  ;;  %v257_v29 = vadd.f32 %v559_v22, %v237_v23  ;;  %v254_v48 = vadd.f32 %v559_v22, %v234_v38 }
   0xc   :  { %v241_v34 = vmul.f32 %v553_v19, %v419_v26  ;;  %v265_v45 = vadd.f32 %v559_v22, %v245_v35  ;;  %v258_v49 = vadd.f32 %v559_v22, %v238_v39  ;;  %v242_v58 = vmul.f32 %v553_v19, %v420_v46 }
   0xd   :  { %v246_v59 = vmul.f32 %v553_v19, %v428_v47  ;;  %v235_v62 = vmul.f32 %v553_v19, %v407_v50  ;;  %v239_v63 = vmul.f32 %v553_v19, %v415_v51  ;;  %v432_v35 = vunpack.c.h.bf16 %v439_v1 }
   0xe   :  { %151 = vmatpush.bf16.msra.mxu0 %v397_v3  ;;  %449 = vmatpush.bf16.msra.mxu1 %v397_v3  ;;  %v261_v44 = vadd.f32 %v559_v22, %v241_v34  ;;  %v424_v34 = vunpack.c.h.bf16 %v437_v0 }
   0xf   :  { %450 = vmatpush.bf16.msra.mxu2 %v397_v3  ;;  %451 = vmatpush.bf16.msra.mxu3 %v397_v3 }
  0x12   :  { %152 = vmatpush.bf16.msra.mxu0 %v396_v4  ;;  %452 = vmatpush.bf16.msra.mxu1 %v396_v4 }
  0x13   :  { %453 = vmatpush.bf16.msra.mxu2 %v396_v4  ;;  %454 = vmatpush.bf16.msra.mxu3 %v396_v4 }
  0x16   :  { %153 = vmatpush.bf16.msra.mxu0 %v395_v5  ;;  %455 = vmatpush.bf16.msra.mxu1 %v395_v5 }
  0x17   :  { %456 = vmatpush.bf16.msra.mxu2 %v395_v5  ;;  %457 = vmatpush.bf16.msra.mxu3 %v395_v5 }
  0x1a   :  { %154 = vmatpush.bf16.msra.mxu0 %v394_v6  ;;  %458 = vmatpush.bf16.msra.mxu1 %v394_v6 }
  0x1b   :  { %459 = vmatpush.bf16.msra.mxu2 %v394_v6  ;;  %460 = vmatpush.bf16.msra.mxu3 %v394_v6  ;;  %v262_v6 = vadd.f32 %v559_v22, %v242_v58 }
  0x1e   :  { %155 = vmatpush.bf16.msra.mxu0 %v393_v7  ;;  %461 = vmatpush.bf16.msra.mxu1 %v393_v7 }
  0x1f   :  { %462 = vmatpush.bf16.msra.mxu2 %v393_v7  ;;  %463 = vmatpush.bf16.msra.mxu3 %v393_v7  ;;  %v266_v7 = vadd.f32 %v559_v22, %v246_v59 }
  0x21   :  { %156 = vmatmul.bf16.vlgmr.msra.gmra.mxu0 %v385_v8  ;;  %166 = vmatmul.bf16.vlgmr.msra.gmra.mxu1 %v387_v9  ;;  %v423_v8 = vunpack.c.l.bf16 %v437_v0  ;;  %v431_v9 = vunpack.c.l.bf16 %v439_v1 }
  0x22   :  { %176 = vmatmul.bf16.vlgmr.msra.gmra.mxu2 %v389_v10  ;;  %186 = vmatmul.bf16.vlgmr.msra.gmra.mxu3 %v391_v11  ;;  %v255_v10 = vadd.f32 %v559_v22, %v235_v62  ;;  %v259_v11 = vadd.f32 %v559_v22, %v239_v63 }
  0x23   :  { %v243_v21 = vmul.f32 %v553_v19, %v423_v8  ;;  %v247_v23 = vmul.f32 %v553_v19, %v431_v9 }
  0x31   :  { %161 = vmatmul.bf16.gmra.mxu0 %v386_v12  ;;  %171 = vmatmul.bf16.gmra.mxu1 %v388_v13  ;;  %v408_v12 = vunpack.c.h.bf16 %v433_v40  ;;  %v416_v13 = vunpack.c.h.bf16 %v435_v41 }
  0x32   :  { %181 = vmatmul.bf16.gmra.mxu2 %v390_v14  ;;  %191 = vmatmul.bf16.gmra.mxu3 %v392_v15 }
  0x33   :  { %v236_v26 = vmul.f32 %v553_v19, %v408_v12  ;;  %v240_v27 = vmul.f32 %v553_v19, %v416_v13 }
  0x9e   :  { %v157_v32 = vpop.f32.mrf.mxu0  ;;  %v167_v33 = vpop.f32.mrf.mxu1 }
  0x9f   :  { %v269_v36 = vadd.f32 %v253_v28, %v157_v32  ;;  %v273_v37 = vadd.f32 %v257_v29, %v167_v33  ;;  %v263_v32 = vadd.f32 %v559_v22, %v243_v21  ;;  %v267_v33 = vadd.f32 %v559_v22, %v247_v23 }
  0xa1   :  { %v285_v42 = vmax.f32 %v269_v36, 0.0  ;;  %v289_v43 = vmax.f32 %v273_v37, 0.0  ;;  %v256_v36 = vadd.f32 %v559_v22, %v236_v26  ;;  %v260_v37 = vadd.f32 %v559_v22, %v240_v27 }
  0xa3   :  { %301 = vst [vmem:[%s663_s5] sm:$0xff] %v285_v42 }
  0xa4   :  { %305 = vst [vmem:[%s663_s5 + $0x20] sm:$0xff] %v289_v43 }
  0xa5   :  { %v177_v52 = vpop.f32.mrf.mxu2  ;;  %v187_v53 = vpop.f32.mrf.mxu3 }
  0xa6   :  { %v277_v54 = vadd.f32 %v261_v44, %v177_v52  ;;  %v281_v55 = vadd.f32 %v265_v45, %v187_v53  ;;  %v159_v56 = vpop.f32.mrf.mxu0  ;;  %v169_v57 = vpop.f32.mrf.mxu1  ;;  %v244_v44 = vmul.f32 %v553_v19, %v424_v34  ;;  %v248_v45 = vmul.f32 %v553_v19, %v432_v35 }
  0xa7   :  { %v270_v60 = vadd.f32 %v254_v48, %v159_v56  ;;  %v274_v61 = vadd.f32 %v258_v49, %v169_v57 }
  0xa8   :  { %v293_v2 = vmax.f32 %v277_v54, 0.0  ;;  %v297_v3 = vmax.f32 %v281_v55, 0.0  ;;  %v264_v52 = vadd.f32 %v559_v22, %v244_v44  ;;  %v268_v53 = vadd.f32 %v559_v22, %v248_v45 }
  0xa9   :  { %v286_v4 = vmax.f32 %v270_v60, 0.0  ;;  %v290_v5 = vmax.f32 %v274_v61, 0.0 }
  0xaa   :  { %309 = vst [vmem:[%s663_s5 + $0x40] sm:$0xff] %v293_v2 }
  0xab   :  { %313 = vst [vmem:[%s663_s5 + $0x60] sm:$0xff] %v297_v3 }
  0xac   :  { %302 = vst [vmem:[%s663_s5 + $0x8] sm:$0xff] %v286_v4 }
  0xad   :  { %306 = vst [vmem:[%s663_s5 + $0x28] sm:$0xff] %v290_v5  ;;  %v179_v14 = vpop.f32.mrf.mxu2  ;;  %v189_v15 = vpop.f32.mrf.mxu3 }
  0xae   :  { %v278_v16 = vadd.f32 %v262_v6, %v179_v14  ;;  %v282_v17 = vadd.f32 %v266_v7, %v189_v15  ;;  %v162_v18 = vpop.f32.mrf.mxu0  ;;  %v172_v20 = vpop.f32.mrf.mxu1 }
  0xaf   :  { %v271_v24 = vadd.f32 %v255_v10, %v162_v18  ;;  %v275_v25 = vadd.f32 %v259_v11, %v172_v20 }
  0xb0   :  { %v294_v28 = vmax.f32 %v278_v16, 0.0  ;;  %v298_v29 = vmax.f32 %v282_v17, 0.0 }
  0xb1   :  { %v287_v30 = vmax.f32 %v271_v24, 0.0  ;;  %v291_v31 = vmax.f32 %v275_v25, 0.0 }
  0xb2   :  { %310 = vst [vmem:[%s663_s5 + $0x48] sm:$0xff] %v294_v28 }
  0xb3   :  { %314 = vst [vmem:[%s663_s5 + $0x68] sm:$0xff] %v298_v29 }
  0xb4   :  { %303 = vst [vmem:[%s663_s5 + $0x10] sm:$0xff] %v287_v30 }
  0xb5   :  { %307 = vst [vmem:[%s663_s5 + $0x30] sm:$0xff] %v291_v31  ;;  %v182_v38 = vpop.f32.mrf.mxu2  ;;  %v192_v39 = vpop.f32.mrf.mxu3 }
  0xb6   :  { %v279_v40 = vadd.f32 %v263_v32, %v182_v38  ;;  %v283_v41 = vadd.f32 %v267_v33, %v192_v39  ;;  %v164_v42 = vpop.f32.mrf.mxu0  ;;  %v174_v43 = vpop.f32.mrf.mxu1 }
  0xb7   :  { %v272_v46 = vadd.f32 %v256_v36, %v164_v42  ;;  %v276_v47 = vadd.f32 %v260_v37, %v174_v43 }
  0xb8   :  { %v295_v48 = vmax.f32 %v279_v40, 0.0  ;;  %v299_v49 = vmax.f32 %v283_v41, 0.0 }
  0xb9   :  { %v288_v50 = vmax.f32 %v272_v46, 0.0  ;;  %v292_v51 = vmax.f32 %v276_v47, 0.0 }
  0xba   :  { %311 = vst [vmem:[%s663_s5 + $0x50] sm:$0xff] %v295_v48 }
  0xbb   :  { %315 = vst [vmem:[%s663_s5 + $0x70] sm:$0xff] %v299_v49 }
  0xbc   :  { %304 = vst [vmem:[%s663_s5 + $0x18] sm:$0xff] %v288_v50 }
  0xbd   :  { %308 = vst [vmem:[%s663_s5 + $0x38] sm:$0xff] %v292_v51  ;;  %v184_v19 = vpop.f32.mrf.mxu2  ;;  %v194_v54 = vpop.f32.mrf.mxu3 }
  0xbe   :  { %v280_v55 = vadd.f32 %v264_v52, %v184_v19  ;;  %v284_v56 = vadd.f32 %v268_v53, %v194_v54 }
  0xc0   :  { %v296_v57 = vmax.f32 %v280_v55, 0.0  ;;  %v300_v58 = vmax.f32 %v284_v56, 0.0 }
  0xc2   :  { %312 = vst [vmem:[%s663_s5 + $0x58] sm:$0xff] %v296_v57 }
  0xc3   :  { %316 = vst [vmem:[%s663_s5 + $0x78] sm:$0xff] %v300_v58 }

// kernel: downsample_residual_block.4
= control target key start
LH: loop header
LB: loop body
LE: loop exit
PB: predicated region body
PF: predicated region fallthrough
CT: control target
= control target key end

     0   :  { %s2914_s12 = smov 0   ;;  %s2916_s13 = smov 0   ;;  %s3363_s0 = inlined_call_operand.vmem [shape: bf16[2,36,16,128], index: 0, kind: input, shape index: {}]   ;;  %s3364_s1 = inlined_call_operand.vmem [shape: bf16[9,128,128], index: 1, kind: input, shape index: {}]   ;;  %s3365_s2 = inlined_call_operand.vmem [shape: bf16[2,64,128], index: 2, kind: output, shape index: {0}]   ;;  %s3366_s3 = inlined_call_operand.vmem [shape: f32[2,1,2,128], index: 3, kind: output, shape index: {1}]  }
   0x1   :  { %s2918_s14 = smov 0  }
   0x2 LB: > { %s26_s15 = sadd.s32 1, %s2888_s13  ;;  %p2118_p0 = scmp.ge.s32.totalorder %s2892_s14, 1  ;;  %s2892_s14 = sphi %s2918_s14, %s14_s14   ;;  %s2888_s13 = sphi %s2916_s13, %s3370_s13   ;;  %s2884_s12 = sphi %s2914_s12, %s3369_s12  }
   0x3   : > { %p28_p1 = scmp.ge.s32.totalorder %s26_s15, 2  ;;  %p156_p2 = scmp.lt.s32.totalorder %s2892_s14, 3 }
   0x5   : > { %s3372_s15 = smov (%p28_p1, %s26_s15), 0  ;;  %p157_p3 = pnand %p2118_p0, %p156_p2 }
   0x6   : > { %p191_p4 = scmp.lt.s32.totalorder (!%p157_p3), %s2884_s12, 1 }
   0x7   : > { %160 = sbr.rel (%p157_p3) target bundleno = 348 (0x15c), region = 28 }
   0xc   : > { %v2721_v0 = vld [vmem:[%s3364_s1 + $0x38] sm:$0xff]  ;;  %v2720_v2 = vld [vmem:[%s3364_s1 + $0x30] sm:$0xff]  ;;  %s3374_s12 = smov (!%p191_p4, %s2884_s12), 1  ;;  %v2719_v6 = vld [vmem:[%s3364_s1 + $0x28] sm:$0xff]  ;;  %vm520_vm0 = vsmask.f32 3328 }
   0xd   : > { %v2741_v1 = vld [vmem:[%s3364_s1 + $0xb8] sm:$0xff]  ;;  %2829 = vmatpush.bf16.msra.mxu1 %v2721_v0  ;;  %313 = vmatpush.bf16.msra.mxu0 %v2721_v0  ;;  %v2740_v3 = vld [vmem:[%s3364_s1 + $0xb0] sm:$0xff]  ;;  %s2845_s26 = smul.u32 288, %s3374_s12  ;;  %v2739_v7 = vld [vmem:[%s3364_s1 + $0xa8] sm:$0xff]  ;;  %vm521_vm1 = vsmask.f32 7440 }
   0xe   : > { %716 = vmatpush.bf16.msra.mxu2 %v2741_v1  ;;  %v2753_v4 = vld [vmem:[%s3364_s1 + $0xf8] sm:$0xff]  ;;  %v2752_v5 = vld [vmem:[%s3364_s1 + $0xf0] sm:$0xff]  ;;  %v2751_v8 = vld [vmem:[%s3364_s1 + $0xe8] sm:$0xff]  ;;  %s2122_s8 = sshll.u32 %s3374_s12, 1  ;;  %vm1967_vm3 = vcmask 1040384  }
   0xf   : > { %870 = vmatpush.bf16.msra.mxu3 %v2753_v4  ;;  %s2959_s6 = scalar_lea.vmem %s3363_s0, %s2845_s26  ;;  %v2718_v10 = vld [vmem:[%s3364_s1 + $0x20] sm:$0xff]  ;;  %v2717_v23 = vld [vmem:[%s3364_s1 + $0x18] sm:$0xff]  ;;  %v2716_v31 = vld [vmem:[%s3364_s1 + $0x10] sm:$0xff]  ;;  %s212_s11 = scalar_lea.vmem %s3366_s3, %s2122_s8 }
  0x10   : > { %v504_v9 = vld [vmem:[%s2959_s6] sm:$0xf]  ;;  %v506_v11 = vld [vmem:[%s2959_s6 + $0x8] sm:$0xf]  ;;  %v505_v16 = vld [vmem:[%s2959_s6 + $0x4] sm:$0x1] }
  0x11   : > { %2830 = vmatpush.bf16.msra.mxu1 %v2720_v2  ;;  %314 = vmatpush.bf16.msra.mxu0 %v2720_v2  ;;  %v2738_v12 = vld [vmem:[%s3364_s1 + $0xa0] sm:$0xff]  ;;  %v524_v13 = vshrl.u32 %v504_v9, 16  ;;  %v527_v14 = vshll.u32 %v504_v9, 16  ;;  %v538_v15 = vshrl.u32 %v506_v11, 16  ;;  %v507_v17 = vld [vmem:[%s2959_s6 + $0xc] sm:$0x1]  ;;  %vm2997_vm2 = vmor %vm520_vm0, %vm521_vm1 }
  0x12   : > { %717 = vmatpush.bf16.msra.mxu2 %v2740_v3  ;;  %v541_v18 = vshll.u32 %v506_v11, 16  ;;  %v2750_v19 = vld [vmem:[%s3364_s1 + $0xe0] sm:$0xff]  ;;  %v2737_v25 = vld [vmem:[%s3364_s1 + $0x98] sm:$0xff]  ;;  %v533_v27 = vshll.u32 %v505_v16, 16  ;;  %v547_v28 = vshll.u32 %v507_v17, 16  ;;  %v2736_v34 = vld [vmem:[%s3364_s1 + $0x90] sm:$0xff] }
  0x13   : > { %871 = vmatpush.bf16.msra.mxu3 %v2752_v5  ;;  %v526_v20 = vrot.slane %v524_v13, 4  ;;  %v529_v21 = vrot.slane %v527_v14, 5  ;;  %v540_v22 = vrot.slane %v538_v15, 4  ;;  %v2749_v30 = vld [vmem:[%s3364_s1 + $0xd8] sm:$0xff]  ;;  %v508_v32 = vld [vmem:[%s2959_s6 + $0x10] sm:$0xf] }
  0x14   : > { %v543_v24 = vrot.slane %v541_v18, 5  ;;  %v510_v33 = vld [vmem:[%s2959_s6 + $0x18] sm:$0xf]  ;;  %v535_v36 = vrot.slane %v533_v27, 5  ;;  %v549_v38 = vrot.slane %v547_v28, 5  ;;  %v2748_v40 = vld [vmem:[%s3364_s1 + $0xd0] sm:$0xff] }
  0x15   : > { %2831 = vmatpush.bf16.msra.mxu1 %v2719_v6  ;;  %315 = vmatpush.bf16.msra.mxu0 %v2719_v6  ;;  %v530_v26 = vor.u32 %v529_v21, %v526_v20  ;;  %v552_v41 = vshrl.u32 %v508_v32, 16  ;;  %v555_v42 = vshll.u32 %v508_v32, 16  ;;  %v566_v43 = vshrl.u32 %v510_v33, 16  ;;  %v2715_v45 = vld [vmem:[%s3364_s1 + $0x8] sm:$0xff]  ;;  %v2714_v49 = vld [vmem:[%s3364_s1] sm:$0xff]  ;;  %v2733_v63 = vld [vmem:[%s3364_s1 + $0x78] sm:$0xff] }
  0x16   : > { %718 = vmatpush.bf16.msra.mxu2 %v2739_v7  ;;  %v544_v29 = vor.u32 %v543_v24, %v540_v22  ;;  %v569_v44 = vshll.u32 %v510_v33, 16  ;;  %v2735_v46 = vld [vmem:[%s3364_s1 + $0x88] sm:$0xff]  ;;  %v2133_v50 = vld [vmem:[%s2959_s6 + $0x20] sm:$0xf]  ;;  %v509_v53 = vld [vmem:[%s2959_s6 + $0x14] sm:$0x1] }
  0x17   : > { %872 = vmatpush.bf16.msra.mxu3 %v2751_v8  ;;  %v531_v35 = vrot.slane %v530_v26, 4  ;;  %v2712_v51 = vld [vmem:[%s2959_s6 + $0x24] sm:$0xf0]  ;;  %v554_v54 = vrot.slane %v552_v41, 4  ;;  %v557_v55 = vrot.slane %v555_v42, 5  ;;  %v568_v56 = vrot.slane %v566_v43, 4 }
  0x18   : > { %v545_v37 = vrot.slane %v544_v29, 4  ;;  %v2747_v52 = vld [vmem:[%s3364_s1 + $0xc8] sm:$0xff]  ;;  %v571_v57 = vrot.slane %v569_v44, 5  ;;  %v2125_v58 = vld [vmem:[%s2959_s6] sm:$0xf]  ;;  %v2134_v1 = vor.u32 %v2712_v51, %v2133_v50  ;;  %v2765_v2 = vld [vmem:[%s3364_s1 + $0x138] sm:$0xff] }
  0x19   : > { %2832 = vmatpush.bf16.msra.mxu1 %v2718_v10  ;;  %316 = vmatpush.bf16.msra.mxu0 %v2718_v10  ;;  %v536_v47 = vsel %vm2997_vm2, %v531_v35, %v535_v36  ;;  %v2710_v59 = vld [vmem:[%s2959_s6 + $0x4] sm:$0xf0]  ;;  %v511_v62 = vld [vmem:[%s2959_s6 + $0x1c] sm:$0x1]  ;;  %v2734_v0 = vld [vmem:[%s3364_s1 + $0x80] sm:$0xff]  ;;  %v561_v4 = vshll.u32 %v509_v53, 16  ;;  %v558_v6 = vor.u32 %v557_v55, %v554_v54 }
  0x1a   : > { %719 = vmatpush.bf16.msra.mxu2 %v2738_v12  ;;  %v550_v48 = vsel %vm2997_vm2, %v545_v37, %v549_v38  ;;  %v652_v60 = vunpack.c.l.b16 %v536_v47  ;;  %v2785_v3 = vld [vmem:[%s3364_s1 + $0x1b8] sm:$0xff]  ;;  %v2126_v5 = vor.u32 %v2710_v59, %v2125_v58  ;;  %v572_v7 = vor.u32 %v571_v57, %v568_v56  ;;  %v2746_v10 = vld [vmem:[%s3364_s1 + $0xc0] sm:$0xff]  ;;  %v2317_v11 = vld [vmem:[%s2959_s6 + $0x90] sm:$0xf] }
  0x1b   : > { %873 = vmatpush.bf16.msra.mxu3 %v2750_v19  ;;  %v653_v61 = vunpack.c.l.b16 %v550_v48  ;;  %v575_v8 = vshll.u32 %v511_v62, 16  ;;  %v2742_v12 = vld [vmem:[%s2959_s6 + $0x94] sm:$0xf0]  ;;  %v2732_v13 = vld [vmem:[%s3364_s1 + $0x70] sm:$0xff]  ;;  %v563_v16 = vrot.slane %v561_v4, 5  ;;  %v559_v19 = vrot.slane %v558_v6, 4 }
  0x1c   : > { %v2797_v14 = vld [vmem:[%s3364_s1 + $0x1f8] sm:$0xff]  ;;  %v2764_v15 = vld [vmem:[%s3364_s1 + $0x130] sm:$0xff]  ;;  %v2318_v18 = vor.u32 %v2742_v12, %v2317_v11  ;;  %v573_v20 = vrot.slane %v572_v7, 4  ;;  %v2731_v22 = vld [vmem:[%s3364_s1 + $0x68] sm:$0xff] }
  0x1d   : > { %2833 = vmatpush.bf16.msra.mxu1 %v2717_v23  ;;  %317 = vmatpush.bf16.msra.mxu0 %v2717_v23  ;;  %v660_v9 = vpack.c.b16 %v653_v61, %v652_v60  ;;  %v2784_v17 = vld [vmem:[%s3364_s1 + $0x1b0] sm:$0xff]  ;;  %v577_v21 = vrot.slane %v575_v8, 5  ;;  %v512_v24 = vld [vmem:[%s2959_s6 + $0x20] sm:$0xf]  ;;  %v2763_v26 = vld [vmem:[%s3364_s1 + $0x128] sm:$0xff]  ;;  %v564_v28 = vsel %vm2997_vm2, %v559_v19, %v563_v16 }
  0x1e   : > { %720 = vmatpush.bf16.msra.mxu2 %v2737_v25  ;;  %v2796_v23 = vld [vmem:[%s3364_s1 + $0x1f0] sm:$0xff]  ;;  %v514_v25 = vld [vmem:[%s2959_s6 + $0x28] sm:$0xf]  ;;  %v2762_v36 = vld [vmem:[%s3364_s1 + $0x120] sm:$0xff]  ;;  %v654_v42 = vunpack.c.l.b16 %v564_v28 }
  0x1f   : > { %874 = vmatpush.bf16.msra.mxu3 %v2749_v30  ;;  %v2783_v27 = vld [vmem:[%s3364_s1 + $0x1a8] sm:$0xff]  ;;  %v578_v29 = vsel %vm2997_vm2, %v573_v20, %v577_v21  ;;  %v580_v30 = vshrl.u32 %v512_v24, 16  ;;  %v594_v32 = vshrl.u32 %v514_v25, 16  ;;  %v597_v33 = vshll.u32 %v514_v25, 16  ;;  %v2782_v37 = vld [vmem:[%s3364_s1 + $0x1a0] sm:$0xff]  ;;  %v2728_v62 = vld [vmem:[%s3364_s1 + $0x50] sm:$0xff] }
  0x20   : > { %v2795_v35 = vld [vmem:[%s3364_s1 + $0x1e8] sm:$0xff]  ;;  %v2137_v38 = vld [vmem:[%s2959_s6 + $0x30] sm:$0xf]  ;;  %v655_v43 = vunpack.c.l.b16 %v578_v29  ;;  %v2711_v44 = vld [vmem:[%s2959_s6 + $0x14] sm:$0xf0] }
  0x21   : > { %2834 = vmatpush.bf16.msra.mxu1 %v2716_v31  ;;  %318 = vmatpush.bf16.msra.mxu0 %v2716_v31  ;;  %v583_v31 = vshll.u32 %v512_v24, 16  ;;  %v2129_v41 = vld [vmem:[%s2959_s6 + $0x10] sm:$0xf]  ;;  %v596_v47 = vrot.slane %v594_v32, 4  ;;  %v599_v48 = vrot.slane %v597_v33, 5  ;;  %v2727_v6 = vld [vmem:[%s3364_s1 + $0x48] sm:$0xff] }
  0x22   : > { %721 = vmatpush.bf16.msra.mxu2 %v2736_v34  ;;  %v2730_v34 = vld [vmem:[%s3364_s1 + $0x60] sm:$0xff]  ;;  %v515_v51 = vld [vmem:[%s2959_s6 + $0x2c] sm:$0x1]  ;;  %v2130_v54 = vor.u32 %v2711_v44, %v2129_v41  ;;  %v661_v55 = vpack.c.b16 %v655_v43, %v654_v42  ;;  %v2743_v57 = vld [vmem:[%s2959_s6 + $0xa4] sm:$0xf0] }
  0x23   : > { %875 = vmatpush.bf16.msra.mxu3 %v2748_v40  ;;  %v2713_v40 = vld [vmem:[%s2959_s6 + $0x34] sm:$0xf0]  ;;  %v513_v50 = vld [vmem:[%s2959_s6 + $0x24] sm:$0x1]  ;;  %v2321_v56 = vld [vmem:[%s2959_s6 + $0xa0] sm:$0xf]  ;;  %v600_v60 = vor.u32 %v599_v48, %v596_v47 }
  0x24   : > { %v2138_v53 = vor.u32 %v2713_v40, %v2137_v38  ;;  %v589_v59 = vshll.u32 %v513_v50, 16  ;;  %v603_v61 = vshll.u32 %v515_v51, 16  ;;  %v2759_v7 = vld [vmem:[%s3364_s1 + $0x108] sm:$0xff]  ;;  %v2794_v8 = vld [vmem:[%s3364_s1 + $0x1e0] sm:$0xff]  ;;  %v2780_v11 = vld [vmem:[%s3364_s1 + $0x190] sm:$0xff] }
  0x25   : > { %2835 = vmatpush.bf16.msra.mxu1 %v2715_v45  ;;  %319 = vmatpush.bf16.msra.mxu0 %v2715_v45  ;;  %v582_v45 = vrot.slane %v580_v30, 4  ;;  %v601_v4 = vrot.slane %v600_v60, 4  ;;  %v2773_v20 = vld [vmem:[%s3364_s1 + $0x178] sm:$0xff]  ;;  %v2758_v21 = vld [vmem:[%s3364_s1 + $0x100] sm:$0xff]  ;;  %v2722_v24 = vld [vmem:[%s2959_s6 + $0x4c] sm:$0xf0] }
  0x26   : > { %722 = vmatpush.bf16.msra.mxu2 %v2735_v46  ;;  %v585_v46 = vrot.slane %v583_v31, 5  ;;  %v2389_v25 = vld [vmem:[%s2959_s6 + $0xd8] sm:$0xf]  ;;  %v2772_v33 = vld [vmem:[%s3364_s1 + $0x170] sm:$0xff]  ;;  %v2771_v47 = vld [vmem:[%s3364_s1 + $0x168] sm:$0xff] }
  0x27   : > { %876 = vmatpush.bf16.msra.mxu3 %v2747_v52  ;;  %v2761_v52 = vld [vmem:[%s3364_s1 + $0x118] sm:$0xff]  ;;  %v2325_v40 = vld [vmem:[%s2959_s6 + $0xb0] sm:$0xf]  ;;  %v2779_v48 = vld [vmem:[%s3364_s1 + $0x188] sm:$0xff] }
  0x28   : > { %v586_v58 = vor.u32 %v585_v46, %v582_v45  ;;  %v2744_v41 = vld [vmem:[%s2959_s6 + $0xb4] sm:$0xf0]  ;;  %v2804_v42 = vld [vmem:[%s3364_s1 + $0x230] sm:$0xff]  ;;  %v2803_v50 = vld [vmem:[%s3364_s1 + $0x228] sm:$0xff] }
  0x29   : > { %2836 = vmatpush.bf16.msra.mxu1 %v2714_v49  ;;  %320 = vmatpush.bf16.msra.mxu0 %v2714_v49  ;;  %v2729_v49 = vld [vmem:[%s3364_s1 + $0x58] sm:$0xff] }
  0x2a   : > { %723 = vmatpush.bf16.msra.mxu2 %v2734_v0  ;;  %v2322_v0 = vor.u32 %v2743_v57, %v2321_v56  ;;  %v2792_v56 = vld [vmem:[%s3364_s1 + $0x1d0] sm:$0xff]  ;;  %v2770_v57 = vld [vmem:[%s3364_s1 + $0x160] sm:$0xff] }
  0x2b   : > { %877 = vmatpush.bf16.msra.mxu3 %v2746_v10  ;;  %v518_v10 = vld [vmem:[%s2959_s6 + $0x38] sm:$0xf] }
  0x2c   : > { %331 = vmatmul.bf16.vlgmr.msra.gmra.mxu1 %v2134_v1  ;;  %321 = vmatmul.bf16.vlgmr.msra.gmra.mxu0 %v2126_v5  ;;  %v2781_v1 = vld [vmem:[%s3364_s1 + $0x198] sm:$0xff]  ;;  %v605_v5 = vrot.slane %v603_v61, 5  ;;  %v625_v19 = vshll.u32 %v518_v10, 16 }
  0x2d   : > { %451 = vmatpush.bf16.msrb.mxu1 %v2733_v63  ;;  %1024 = vmatpush.bf16.msrb.mxu0 %v2765_v2  ;;  %v2760_v63 = vld [vmem:[%s3364_s1 + $0x110] sm:$0xff]  ;;  %v587_v2 = vrot.slane %v586_v58, 4  ;;  %v2802_v58 = vld [vmem:[%s3364_s1 + $0x220] sm:$0xff] }
  0x2e   : > { %1440 = vmatpush.bf16.msrb.mxu2 %v2785_v3  ;;  %878 = vmatmul.bf16.vlgmr.msra.gmra.mxu3 %v2318_v18  ;;  %v591_v3 = vrot.slane %v589_v59, 5  ;;  %v622_v18 = vshrl.u32 %v518_v10, 16  ;;  %v627_v32 = vrot.slane %v625_v19, 5  ;;  %v2791_v59 = vld [vmem:[%s3364_s1 + $0x1c8] sm:$0xff]  ;;  %v2724_v19 = vld [vmem:[%s2959_s6 + $0x6c] sm:$0xf0] }
  0x2f   : > { %724 = vmatmul.bf16.vlgmr.msra.gmra.mxu2 %v660_v9  ;;  %1594 = vmatpush.bf16.msrb.mxu3 %v2797_v14  ;;  %v516_v9 = vld [vmem:[%s2959_s6 + $0x30] sm:$0xf]  ;;  %v2793_v14 = vld [vmem:[%s3364_s1 + $0x1d8] sm:$0xff]  ;;  %v2745_v10 = vld [vmem:[%s2959_s6 + $0xc4] sm:$0xf0] }
  0x30   : > { %v592_v12 = vsel %vm2997_vm2, %v587_v2, %v591_v3  ;;  %v608_v16 = vshrl.u32 %v516_v9, 16  ;;  %v624_v31 = vrot.slane %v622_v18, 4  ;;  %v2755_v2 = vld [vmem:[%s2959_s6 + $0xec] sm:$0xf0]  ;;  %v2205_v18 = vld [vmem:[%s2959_s6 + $0x68] sm:$0xf] }
  0x31   : > { %452 = vmatpush.bf16.msrb.mxu1 %v2732_v13  ;;  %1025 = vmatpush.bf16.msrb.mxu0 %v2764_v15  ;;  %v606_v13 = vsel %vm2997_vm2, %v601_v4, %v605_v5  ;;  %v2726_v15 = vld [vmem:[%s3364_s1 + $0x40] sm:$0xff]  ;;  %v2768_v5 = vld [vmem:[%s3364_s1 + $0x150] sm:$0xff] }
  0x32   : > { %1441 = vmatpush.bf16.msrb.mxu2 %v2784_v17  ;;  %v611_v17 = vshll.u32 %v516_v9, 16  ;;  %v657_v28 = vunpack.c.l.b16 %v606_v13  ;;  %v610_v29 = vrot.slane %v608_v16, 4  ;;  %v628_v45 = vor.u32 %v627_v32, %v624_v31  ;;  %v2329_v9 = vld [vmem:[%s2959_s6 + $0xc0] sm:$0xf]  ;;  %v2801_v13 = vld [vmem:[%s3364_s1 + $0x218] sm:$0xff]  ;;  %v2800_v16 = vld [vmem:[%s3364_s1 + $0x210] sm:$0xff] }
  0x33   : > { %1595 = vmatpush.bf16.msrb.mxu3 %v2796_v23  ;;  %v2805_v23 = vld [vmem:[%s3364_s1 + $0x238] sm:$0xff]  ;;  %v2435_v31 = vld [vmem:[%s2959_s6 + $0x90] sm:$0xf] }
  0x34   : > { %v613_v30 = vrot.slane %v611_v17, 5  ;;  %v2799_v17 = vld [vmem:[%s3364_s1 + $0x208] sm:$0xff]  ;;  %v2437_v32 = vld [vmem:[%s2959_s6 + $0x98] sm:$0xf] }
  0x35   : > { %453 = vmatpush.bf16.msrb.mxu1 %v2731_v22  ;;  %1026 = vmatpush.bf16.msrb.mxu0 %v2763_v26  ;;  %v2197_v22 = vld [vmem:[%s2959_s6 + $0x48] sm:$0xf]  ;;  %v2754_v26 = vld [vmem:[%s2959_s6 + $0xdc] sm:$0xf0] }
  0x36   : > { %1442 = vmatpush.bf16.msrb.mxu2 %v2783_v27  ;;  %v656_v27 = vunpack.c.l.b16 %v592_v12  ;;  %v614_v43 = vor.u32 %v613_v30, %v610_v29  ;;  %v2767_v12 = vld [vmem:[%s3364_s1 + $0x148] sm:$0xff]  ;;  %v2798_v30 = vld [vmem:[%s3364_s1 + $0x200] sm:$0xff] }
  0x37   : > { %1596 = vmatpush.bf16.msrb.mxu3 %v2795_v35  ;;  %v519_v35 = vld [vmem:[%s2959_s6 + $0x3c] sm:$0x1] }
  0x38   : > { %v662_v38 = vpack.c.b16 %v657_v28, %v656_v27  ;;  %v631_v46 = vshll.u32 %v519_v35, 16  ;;  %v615_v51 = vrot.slane %v614_v43, 4  ;;  %v2597_v27 = vld [vmem:[%s2959_s6 + $0x50] sm:$0xf]  ;;  %v2786_v28 = vld [vmem:[%s2959_s6 + $0x54] sm:$0xf0] }
  0x39   : > { %454 = vmatpush.bf16.msrb.mxu1 %v2730_v34  ;;  %1027 = vmatpush.bf16.msrb.mxu0 %v2762_v36  ;;  %v517_v34 = vld [vmem:[%s2959_s6 + $0x34] sm:$0x1]  ;;  %v2198_v36 = vor.u32 %v2722_v24, %v2197_v22  ;;  %v2525_v22 = vld [vmem:[%s2959_s6 + $0x8] sm:$0xf]  ;;  %v2206_v24 = vor.u32 %v2724_v19, %v2205_v18  ;;  %v2598_v29 = vor.u32 %v2786_v28, %v2597_v27  ;;  %v1094_v35 = vshrl.u32 %v2435_v31, 16 }
  0x3a   : > { %1443 = vmatpush.bf16.msrb.mxu2 %v2782_v37  ;;  %v2390_v37 = vor.u32 %v2754_v26, %v2389_v25  ;;  %v617_v44 = vshll.u32 %v517_v34, 16  ;;  %v2645_v34 = vld [vmem:[%s2959_s6 + $0x10] sm:$0xf]  ;;  %v2647_v18 = vld [vmem:[%s2959_s6 + $0x18] sm:$0xf] }
  0x3b   : > { %1597 = vmatpush.bf16.msrb.mxu3 %v2794_v8  ;;  %v1681_v43 = vshll.u32 %v2645_v34, 16  ;;  %v2649_v19 = vld [vmem:[%s2959_s6 + $0x20] sm:$0xf]  ;;  %v1692_v28 = vshrl.u32 %v2647_v18, 16 }
  0x3c   : > { %336 = vmatmul.bf16.gmra.mxu1 %v2138_v53  ;;  %326 = vmatmul.bf16.gmra.mxu0 %v2130_v54  ;;  %v629_v53 = vrot.slane %v628_v45, 4  ;;  %v633_v54 = vrot.slane %v631_v46, 5  ;;  %v2725_v45 = vld [vmem:[%s2959_s6 + $0x7c] sm:$0xf0]  ;;  %v2401_v46 = vld [vmem:[%s2959_s6 + $0x108] sm:$0xf] }
  0x3d   : > { %455 = vmatpush.bf16.msrb.mxu1 %v2729_v49  ;;  %1028 = vmatpush.bf16.msrb.mxu0 %v2761_v52  ;;  %v2326_v49 = vor.u32 %v2744_v41, %v2325_v40  ;;  %v619_v52 = vrot.slane %v617_v44, 5  ;;  %v2209_v44 = vld [vmem:[%s2959_s6 + $0x78] sm:$0xf] }
  0x3e   : > { %1444 = vmatpush.bf16.msrb.mxu2 %v2781_v1  ;;  %883 = vmatmul.bf16.gmra.mxu3 %v2322_v0  ;;  %v634_v61 = vsel %vm2997_vm2, %v629_v53, %v633_v54  ;;  %v2723_v0 = vld [vmem:[%s2959_s6 + $0x5c] sm:$0xf0]  ;;  %v2393_v1 = vld [vmem:[%s2959_s6 + $0xe8] sm:$0xf] }
  0x3f   : > { %729 = vmatmul.bf16.gmra.mxu2 %v661_v55  ;;  %1598 = vmatpush.bf16.msrb.mxu3 %v2793_v14  ;;  %v2778_v55 = vld [vmem:[%s3364_s1 + $0x180] sm:$0xff]  ;;  %v620_v60 = vsel %vm2997_vm2, %v615_v51, %v619_v52  ;;  %v659_v4 = vunpack.c.l.b16 %v634_v61  ;;  %v1096_v51 = vrot.slane %v1094_v35, 4  ;;  %v2646_v61 = vld [vmem:[%s2959_s6 + $0x14] sm:$0x1] }
  0x40   : > { %v658_v3 = vunpack.c.l.b16 %v620_v60  ;;  %v2790_v14 = vld [vmem:[%s3364_s1 + $0x1c0] sm:$0xff]  ;;  %v2644_v60 = vld [vmem:[%s2959_s6 + $0xc] sm:$0x1] }
  0x41   : > { %456 = vmatpush.bf16.msrb.mxu1 %v2728_v62  ;;  %1029 = vmatpush.bf16.msrb.mxu0 %v2760_v63  ;;  %v2769_v62 = vld [vmem:[%s3364_s1 + $0x158] sm:$0xff] }
  0x42   : > { %1445 = vmatpush.bf16.msrb.mxu2 %v2780_v11  ;;  %v2201_v63 = vld [vmem:[%s2959_s6 + $0x58] sm:$0xf]  ;;  %v663_v8 = vpack.c.b16 %v659_v4, %v658_v3  ;;  %v2330_v11 = vor.u32 %v2745_v10, %v2329_v9  ;;  %v1687_v10 = vshll.u32 %v2646_v61, 16 }
  0x43   : > { %1599 = vmatpush.bf16.msrb.mxu3 %v2792_v56 }
  0x45   : > { %457 = vmatpush.bf16.msrb.mxu1 %v2727_v6  ;;  %1030 = vmatpush.bf16.msrb.mxu0 %v2759_v7  ;;  %v2202_v6 = vor.u32 %v2723_v0, %v2201_v63  ;;  %v2394_v7 = vor.u32 %v2755_v2, %v2393_v1 }
  0x46   : > { %1446 = vmatpush.bf16.msrb.mxu2 %v2779_v48  ;;  %v2529_v48 = vld [vmem:[%s2959_s6 + $0x18] sm:$0xf] }
  0x47   : > { %1600 = vmatpush.bf16.msrb.mxu3 %v2791_v59  ;;  %v1683_v59 = vrot.slane %v1681_v43, 5  ;;  %v1694_v43 = vrot.slane %v1692_v28, 4 }
  0x49   : > { %458 = vmatpush.bf16.msrb.mxu1 %v2726_v15  ;;  %1031 = vmatpush.bf16.msrb.mxu0 %v2758_v21  ;;  %v2766_v15 = vld [vmem:[%s3364_s1 + $0x140] sm:$0xff] }
  0x4a   : > { %1447 = vmatpush.bf16.msrb.mxu2 %v2778_v55  ;;  %v2756_v21 = vld [vmem:[%s2959_s6 + $0xfc] sm:$0xf0] }
  0x4b   : > { %1601 = vmatpush.bf16.msrb.mxu3 %v2790_v14  ;;  %v2775_v55 = vld [vmem:[%s2959_s6 + $0x1c] sm:$0xf0]  ;;  %v2441_v14 = vld [vmem:[%s2959_s6 + $0xa8] sm:$0xf] }
  0x4c   : > { %459 = vmatmul.bf16.vlgmr.msrb.gmra.mxu1 %v2198_v36  ;;  %1032 = vmatmul.bf16.vlgmr.msrb.gmra.mxu0 %v2390_v37  ;;  %v1097_v36 = vshll.u32 %v2435_v31, 16  ;;  %v1108_v37 = vshrl.u32 %v2437_v32, 16  ;;  %v2530_v2 = vor.u32 %v2775_v55, %v2529_v48  ;;  %v1139_v27 = vshll.u32 %v2441_v14, 16 }
  0x4d   : > { %1286 = vmatpush.bf16.msra.mxu1 %v2773_v20  ;;  %1856 = vmatpush.bf16.msra.mxu0 %v2805_v23  ;;  %v2397_v20 = vld [vmem:[%s2959_s6 + $0xf8] sm:$0xf]  ;;  %v1709_v31 = vshll.u32 %v2649_v19, 16 }
  0x4e   : > { %888 = vmatmul.bf16.gmra.mxu3 %v2326_v49  ;;  %2837 = vmatpush.bf16.msra.mxu2 %v2805_v23  ;;  %v2774_v23 = vld [vmem:[%s2959_s6 + $0xc] sm:$0xf0]  ;;  %v2398_v25 = vor.u32 %v2756_v21, %v2397_v20  ;;  %v2436_v49 = vld [vmem:[%s2959_s6 + $0x94] sm:$0x1]  ;;  %v1099_v52 = vrot.slane %v1097_v36, 5  ;;  %v1110_v53 = vrot.slane %v1108_v37, 4 }
  0x4f   : > { %734 = vmatmul.bf16.gmra.mxu2 %v662_v38  ;;  %v2526_v26 = vor.u32 %v2774_v23, %v2525_v22  ;;  %v1111_v38 = vshll.u32 %v2437_v32, 16  ;;  %v1103_v63 = vshll.u32 %v2436_v49, 16  ;;  %v1689_v23 = vrot.slane %v1687_v10, 5  ;;  %v2440_v36 = vld [vmem:[%s2959_s6 + $0xa4] sm:$0x1] }
  0x50   : > { %v1100_v3 = vor.u32 %v1099_v52, %v1096_v51  ;;  %v2648_v51 = vld [vmem:[%s2959_s6 + $0x1c] sm:$0x1]  ;;  %v2650_v52 = vld [vmem:[%s2959_s6 + $0x24] sm:$0x1] }
  0x51   : > { %1287 = vmatpush.bf16.msra.mxu1 %v2772_v33  ;;  %1857 = vmatpush.bf16.msra.mxu0 %v2804_v42  ;;  %v2643_v33 = vld [vmem:[%s2959_s6 + $0x8] sm:$0xf]  ;;  %v1113_v54 = vrot.slane %v1111_v38, 5 }
  0x52   : > { %2838 = vmatpush.bf16.msra.mxu2 %v2804_v42  ;;  %v1664_v40 = vshrl.u32 %v2643_v33, 16  ;;  %v1667_v41 = vshll.u32 %v2643_v33, 16  ;;  %v1678_v42 = vshrl.u32 %v2645_v34, 16 }
  0x53   : > { %v1114_v4 = vor.u32 %v1113_v54, %v1110_v53  ;;  %v2533_v53 = vld [vmem:[%s2959_s6 + $0x28] sm:$0xf]  ;;  %v2776_v54 = vld [vmem:[%s2959_s6 + $0x2c] sm:$0xf0] }
  0x54   : > { %v1666_v56 = vrot.slane %v1664_v40, 4 }
  0x55   : > { %1288 = vmatpush.bf16.msra.mxu1 %v2771_v47  ;;  %1858 = vmatpush.bf16.msra.mxu0 %v2803_v50  ;;  %v2757_v47 = vld [vmem:[%s2959_s6 + $0x10c] sm:$0xf0] }
  0x56   : > { %2839 = vmatpush.bf16.msra.mxu2 %v2803_v50  ;;  %v2438_v50 = vld [vmem:[%s2959_s6 + $0x9c] sm:$0x1]  ;;  %v2402_v1 = vor.u32 %v2757_v47, %v2401_v46  ;;  %v1711_v46 = vrot.slane %v1709_v31, 5 }
  0x57   : > { %v1117_v0 = vshll.u32 %v2438_v50, 16 }
  0x59   : > { %1289 = vmatpush.bf16.msra.mxu1 %v2770_v57  ;;  %1859 = vmatpush.bf16.msra.mxu0 %v2802_v58  ;;  %v1669_v57 = vrot.slane %v1667_v41, 5  ;;  %v1141_v41 = vrot.slane %v1139_v27, 5 }
  0x5a   : > { %2840 = vmatpush.bf16.msra.mxu2 %v2802_v58  ;;  %v1680_v58 = vrot.slane %v1678_v42, 4  ;;  %v2442_v42 = vld [vmem:[%s2959_s6 + $0xac] sm:$0x1] }
  0x5c   : > { %464 = vmatmul.bf16.gmra.mxu1 %v2202_v6  ;;  %1037 = vmatmul.bf16.gmra.mxu0 %v2394_v7  ;;  %v2787_v6 = vld [vmem:[%s2959_s6 + $0x64] sm:$0xf0]  ;;  %v1670_v7 = vor.u32 %v1669_v57, %v1666_v56  ;;  %v1684_v9 = vor.u32 %v1683_v59, %v1680_v58  ;;  %v1131_v56 = vshll.u32 %v2440_v36, 16  ;;  %v1145_v58 = vshll.u32 %v2442_v42, 16  ;;  %v2444_v42 = vld [vmem:[%s2959_s6 + $0xb4] sm:$0x1] }
  0x5d   : > { %1290 = vmatpush.bf16.msra.mxu1 %v2769_v62  ;;  %1860 = vmatpush.bf16.msra.mxu0 %v2801_v13  ;;  %v2210_v62 = vor.u32 %v2725_v45, %v2209_v44 }
  0x5e   : > { %893 = vmatmul.bf16.gmra.mxu3 %v2330_v11  ;;  %2841 = vmatpush.bf16.msra.mxu2 %v2801_v13  ;;  %v1105_v11 = vrot.slane %v1103_v63, 5  ;;  %v2439_v13 = vld [vmem:[%s2959_s6 + $0xa0] sm:$0xf]  ;;  %v1671_v20 = vrot.slane %v1670_v7, 4  ;;  %v1685_v22 = vrot.slane %v1684_v9, 4  ;;  %v1147_v7 = vrot.slane %v1145_v58, 5 }
  0x5f   : > { %739 = vmatmul.bf16.gmra.mxu2 %v663_v8  ;;  %v1673_v8 = vshll.u32 %v2644_v60, 16  ;;  %v1701_v60 = vshll.u32 %v2648_v51, 16  ;;  %v2537_v51 = vld [vmem:[%s2959_s6 + $0x38] sm:$0xf]  ;;  %v2656_v58 = vld [vmem:[%s2959_s6 + $0x3c] sm:$0x1] }
  0x60   : > { %v1690_v35 = vsel %vm2997_vm2, %v1685_v22, %v1689_v23 }
  0x61   : > { %1291 = vmatpush.bf16.msra.mxu1 %v2768_v5  ;;  %1861 = vmatpush.bf16.msra.mxu0 %v2800_v16  ;;  %v2601_v5 = vld [vmem:[%s2959_s6 + $0x60] sm:$0xf]  ;;  %v1675_v21 = vrot.slane %v1673_v8, 5  ;;  %v1793_v50 = vunpack.c.l.b16 %v1690_v35  ;;  %v1703_v9 = vrot.slane %v1701_v60, 5 }
  0x62   : > { %2842 = vmatpush.bf16.msra.mxu2 %v2800_v16  ;;  %v1115_v16 = vrot.slane %v1114_v4, 4 }
  0x63   : > { %v1676_v34 = vsel %vm2997_vm2, %v1671_v20, %v1675_v21  ;;  %v2655_v21 = vld [vmem:[%s2959_s6 + $0x38] sm:$0xf] }
  0x64   : > { %v1792_v49 = vunpack.c.l.b16 %v1676_v34  ;;  %v1751_v34 = vshll.u32 %v2655_v21, 16 }
  0x65   : > { %1292 = vmatpush.bf16.msra.mxu1 %v2767_v12  ;;  %1862 = vmatpush.bf16.msra.mxu0 %v2799_v17  ;;  %v1119_v12 = vrot.slane %v1117_v0, 5 }
  0x66   : > { %2843 = vmatpush.bf16.msra.mxu2 %v2799_v17  ;;  %v2602_v17 = vor.u32 %v2787_v6, %v2601_v5  ;;  %v1800_v0 = vpack.c.b16 %v1793_v50, %v1792_v49  ;;  %v1133_v5 = vrot.slane %v1131_v56, 5  ;;  %v2777_v56 = vld [vmem:[%s2959_s6 + $0x3c] sm:$0xf0] }
  0x67   : > { %v1120_v33 = vsel %vm2997_vm2, %v1115_v16, %v1119_v12  ;;  %v2443_v12 = vld [vmem:[%s2959_s6 + $0xb0] sm:$0xf] }
  0x68   : > { %v1223_v48 = vunpack.c.l.b16 %v1120_v33  ;;  %v2653_v16 = vld [vmem:[%s2959_s6 + $0x30] sm:$0xf]  ;;  %v1153_v20 = vshll.u32 %v2443_v12, 16  ;;  %v1748_v33 = vshrl.u32 %v2655_v21, 16 }
  0x69   : > { %1293 = vmatpush.bf16.msra.mxu1 %v2766_v15  ;;  %1863 = vmatpush.bf16.msra.mxu0 %v2798_v30  ;;  %v1101_v15 = vrot.slane %v1100_v3, 4  ;;  %v2788_v3 = vld [vmem:[%s2959_s6 + $0x74] sm:$0xf0] }
  0x6a   : > { %2844 = vmatpush.bf16.msra.mxu2 %v2798_v30  ;;  %v1706_v30 = vshrl.u32 %v2649_v19, 16  ;;  %v1150_v19 = vshrl.u32 %v2443_v12, 16  ;;  %v1155_v36 = vrot.slane %v1153_v20, 5 }
  0x6b   : > { %v1106_v32 = vsel %vm2997_vm2, %v1101_v15, %v1105_v11  ;;  %v2651_v15 = vld [vmem:[%s2959_s6 + $0x28] sm:$0xf] }
  0x6c   : > { %469 = vmatmul.bf16.gmra.mxu1 %v2206_v24  ;;  %1042 = vmatmul.bf16.gmra.mxu0 %v2398_v25  ;;  %v1122_v24 = vshrl.u32 %v2439_v13, 16  ;;  %v1125_v25 = vshll.u32 %v2439_v13, 16  ;;  %v1708_v45 = vrot.slane %v1706_v30, 4  ;;  %v1222_v47 = vunpack.c.l.b16 %v1106_v32 }
  0x6d   : > { %v1720_v27 = vshrl.u32 %v2651_v15, 16  ;;  %v1723_v28 = vshll.u32 %v2651_v15, 16  ;;  %v1737_v30 = vshll.u32 %v2653_v16, 16  ;;  %v1152_v35 = vrot.slane %v1150_v19, 4 }
  0x6e   : > { %1602 = vmatmul.bf16.vlgmr.msrb.gmra.mxu3 %v2598_v29  ;;  %v1695_v29 = vshll.u32 %v2647_v18, 16  ;;  %v1124_v37 = vrot.slane %v1122_v24, 4  ;;  %v1127_v38 = vrot.slane %v1125_v25, 5  ;;  %v1712_v61 = vor.u32 %v1711_v46, %v1708_v45  ;;  %v2652_v46 = vld [vmem:[%s2959_s6 + $0x2c] sm:$0x1] }
  0x6f   : > { %1448 = vmatmul.bf16.vlgmr.msrb.gmra.mxu2 %v2526_v26  ;;  %v1136_v26 = vshrl.u32 %v2441_v14, 16  ;;  %v1230_v63 = vpack.c.b16 %v1223_v48, %v1222_v47  ;;  %v2445_v14 = vld [vmem:[%s2959_s6 + $0xb8] sm:$0xf]  ;;  %v1722_v47 = vrot.slane %v1720_v27, 4  ;;  %v1725_v48 = vrot.slane %v1723_v28, 5 }
  0x70   : > { %v1697_v44 = vrot.slane %v1695_v29, 5  ;;  %v1128_v55 = vor.u32 %v1127_v38, %v1124_v37  ;;  %v1713_v10 = vrot.slane %v1712_v61, 4  ;;  %v1164_v24 = vshrl.u32 %v2445_v14, 16  ;;  %v2449_v27 = vld [vmem:[%s2959_s6 + $0xc8] sm:$0xf] }
  0x71   : > { %v1138_v40 = vrot.slane %v1136_v26, 4  ;;  %v1167_v25 = vshll.u32 %v2445_v14, 16  ;;  %v2657_v26 = vld [vmem:[%s2959_s6 + $0x40] sm:$0xf]  ;;  %v1734_v29 = vshrl.u32 %v2653_v16, 16  ;;  %v1739_v50 = vrot.slane %v1737_v30, 5 }
  0x72   : > { %v1698_v59 = vor.u32 %v1697_v44, %v1694_v43  ;;  %v1129_v4 = vrot.slane %v1128_v55, 4  ;;  %v1762_v37 = vshrl.u32 %v2657_v26, 16  ;;  %v1765_v38 = vshll.u32 %v2657_v26, 16  ;;  %v2446_v43 = vld [vmem:[%s2959_s6 + $0xbc] sm:$0x1] }
  0x73   : > { %v1142_v57 = vor.u32 %v1141_v41, %v1138_v40  ;;  %v1166_v44 = vrot.slane %v1164_v24, 4  ;;  %v1169_v45 = vrot.slane %v1167_v25, 5  ;;  %v1736_v49 = vrot.slane %v1734_v29, 4  ;;  %v2447_v24 = vld [vmem:[%s2959_s6 + $0xc0] sm:$0xf] }
  0x74   : > { %v1699_v8 = vrot.slane %v1698_v59, 4  ;;  %v1764_v59 = vrot.slane %v1762_v37, 4  ;;  %v1767_v60 = vrot.slane %v1765_v38, 5  ;;  %v1159_v61 = vshll.u32 %v2444_v42, 16 }
  0x75   : > { %v1143_v6 = vrot.slane %v1142_v57, 4  ;;  %v1156_v57 = vor.u32 %v1155_v36, %v1152_v35  ;;  %v1192_v35 = vshrl.u32 %v2449_v27, 16  ;;  %v1195_v36 = vshll.u32 %v2449_v27, 16 }
  0x76   : > { %v1704_v22 = vsel %vm2997_vm2, %v1699_v8, %v1703_v9  ;;  %v2789_v8 = vld [vmem:[%s2959_s6 + $0x84] sm:$0xf0]  ;;  %v1768_v12 = vor.u32 %v1767_v60, %v1764_v59  ;;  %v1161_v14 = vrot.slane %v1159_v61, 5 }
  0x77   : > { %v1148_v18 = vsel %vm2997_vm2, %v1143_v6, %v1147_v7  ;;  %v1794_v40 = vunpack.c.l.b16 %v1704_v22  ;;  %v2538_v6 = vor.u32 %v2777_v56, %v2537_v51  ;;  %v2609_v7 = vld [vmem:[%s2959_s6 + $0x80] sm:$0xf] }
  0x78   : > { %v1225_v32 = vunpack.c.l.b16 %v1148_v18  ;;  %v2610_v18 = vor.u32 %v2789_v8, %v2609_v7  ;;  %v1769_v25 = vrot.slane %v1768_v12, 4 }
  0x7c   : > { %474 = vmatmul.bf16.gmra.mxu1 %v2210_v62  ;;  %1047 = vmatmul.bf16.gmra.mxu0 %v2402_v1  ;;  %v1715_v62 = vshll.u32 %v2650_v52, 16  ;;  %v2534_v1 = vor.u32 %v2776_v54, %v2533_v53  ;;  %v2654_v52 = vld [vmem:[%s2959_s6 + $0x34] sm:$0x1]  ;;  %v1750_v53 = vrot.slane %v1748_v33, 4  ;;  %v1753_v54 = vrot.slane %v1751_v34, 5 }
  0x7d   : > { %v1181_v34 = vshll.u32 %v2447_v24, 16 }
  0x7e   : > { %1607 = vmatmul.bf16.gmra.mxu3 %v2602_v17  ;;  %v1717_v11 = vrot.slane %v1715_v62, 5  ;;  %v1134_v17 = vsel %vm2997_vm2, %v1129_v4, %v1133_v5  ;;  %v1170_v62 = vor.u32 %v1169_v45, %v1166_v44  ;;  %v1740_v4 = vor.u32 %v1739_v50, %v1736_v49  ;;  %v2450_v50 = vld [vmem:[%s2959_s6 + $0xcc] sm:$0x1] }
  0x7f   : > { %1453 = vmatmul.bf16.gmra.mxu2 %v2530_v2  ;;  %v2605_v2 = vld [vmem:[%s2959_s6 + $0x70] sm:$0xf]  ;;  %v1224_v31 = vunpack.c.l.b16 %v1134_v17  ;;  %v1743_v5 = vshll.u32 %v2654_v52, 16  ;;  %v1754_v9 = vor.u32 %v1753_v54, %v1750_v53  ;;  %v1197_v49 = vrot.slane %v1195_v36, 5 }
  0x80   : > { %v2606_v13 = vor.u32 %v2788_v3, %v2605_v2  ;;  %v1718_v23 = vsel %vm2997_vm2, %v1713_v10, %v1717_v11  ;;  %v1726_v3 = vor.u32 %v1725_v48, %v1722_v47  ;;  %v1757_v10 = vshll.u32 %v2656_v58, 16 }
  0x81   : > { %v1795_v41 = vunpack.c.l.b16 %v1718_v23  ;;  %v1231_v55 = vpack.c.b16 %v1225_v32, %v1224_v31  ;;  %v1157_v11 = vrot.slane %v1156_v57, 4  ;;  %v1171_v15 = vrot.slane %v1170_v62, 4 }
  0x82   : > { %v1727_v19 = vrot.slane %v1726_v3, 4  ;;  %v1741_v20 = vrot.slane %v1740_v4, 4  ;;  %v1745_v21 = vrot.slane %v1743_v5, 5  ;;  %v1755_v22 = vrot.slane %v1754_v9, 4 }
  0x83   : > { %v1801_v2 = vpack.c.b16 %v1795_v41, %v1794_v40  ;;  %v1759_v23 = vrot.slane %v1757_v10, 5  ;;  %v1162_v28 = vsel %vm2997_vm2, %v1157_v11, %v1161_v14  ;;  %v1178_v32 = vshrl.u32 %v2447_v24, 16 }
  0x84   : > { %v1746_v31 = vsel %vm2997_vm2, %v1741_v20, %v1745_v21  ;;  %v1226_v38 = vunpack.c.l.b16 %v1162_v28  ;;  %v1183_v47 = vrot.slane %v1181_v34, 5  ;;  %v1194_v48 = vrot.slane %v1192_v35, 4 }
  0x85   : > { %v1760_v33 = vsel %vm2997_vm2, %v1755_v22, %v1759_v23  ;;  %v1797_v42 = vunpack.c.l.b16 %v1746_v31  ;;  %v1180_v44 = vrot.slane %v1178_v32, 4  ;;  %v1201_v59 = vshll.u32 %v2450_v50, 16 }
  0x86   : > { %v1198_v58 = vor.u32 %v1197_v49, %v1194_v48 }
  0x87   : > { %v1184_v57 = vor.u32 %v1183_v47, %v1180_v44 }
  0x88   : > { %v1199_v62 = vrot.slane %v1198_v58, 4 }
  0x89   : > { %v1185_v60 = vrot.slane %v1184_v57, 4 }
  0x8c   : > { %1294 = vmatmul.bf16.vlgmr.msra.gmra.mxu1 %v1230_v63  ;;  %1864 = vmatmul.bf16.vlgmr.msra.gmra.mxu0 %v1800_v0  ;;  %v1173_v63 = vshll.u32 %v2446_v43, 16  ;;  %v1729_v0 = vshll.u32 %v2652_v46, 16  ;;  %v1798_v43 = vunpack.c.l.b16 %v1760_v33  ;;  %v2448_v46 = vld [vmem:[%s2959_s6 + $0xc4] sm:$0x1] }
  0x8d   : > { %v1187_v53 = vshll.u32 %v2448_v46, 16 }
  0x8e   : > { %1612 = vmatmul.bf16.gmra.mxu3 %v2606_v13  ;;  %v1175_v16 = vrot.slane %v1173_v63, 5  ;;  %v1731_v17 = vrot.slane %v1729_v0, 5  ;;  %v1203_v63 = vrot.slane %v1201_v59, 5 }
  0x8f   : > { %1458 = vmatmul.bf16.gmra.mxu2 %v2534_v1  ;;  %v2658_v1 = vld [vmem:[%s2959_s6 + $0x44] sm:$0x1]  ;;  %v1189_v61 = vrot.slane %v1187_v53, 5  ;;  %s2709_s6 = sshll.u32 %s3374_s12, 5 }
  0x90   : > { %v1771_v13 = vshll.u32 %v2658_v1, 16  ;;  %v1176_v29 = vsel %vm2997_vm2, %v1171_v15, %v1175_v16  ;;  %v1732_v30 = vsel %vm2997_vm2, %v1727_v19, %v1731_v17  ;;  %v1204_v4 = vsel %vm2997_vm2, %v1199_v62, %v1203_v63  ;;  %s3333_s7 = scalar_lea.vmem %s3365_s2, %s2709_s6 }
  0x91   : > { %v1227_v40 = vunpack.c.l.b16 %v1176_v29  ;;  %v1796_v41 = vunpack.c.l.b16 %v1732_v30  ;;  %v1190_v3 = vsel %vm2997_vm2, %v1185_v60, %v1189_v61  ;;  %v1229_v7 = vunpack.c.l.b16 %v1204_v4 }
  0x92   : > { %v1773_v26 = vrot.slane %v1771_v13, 5 }
  0x93   : > { %v1232_v51 = vpack.c.b16 %v1227_v40, %v1226_v38  ;;  %v1802_v52 = vpack.c.b16 %v1797_v42, %v1796_v41 }
  0x94   : > { %v1774_v37 = vsel %vm2997_vm2, %v1769_v25, %v1773_v26 }
  0x95   : > { %v1799_v45 = vunpack.c.l.b16 %v1774_v37 }
  0x97   : > { %v1803_v56 = vpack.c.b16 %v1799_v45, %v1798_v43 }
  0x9c   : > { %1299 = vmatmul.bf16.gmra.mxu1 %v1231_v55  ;;  %1869 = vmatmul.bf16.gmra.mxu0 %v1801_v2 }
  0x9e   : > { %1617 = vmatmul.bf16.gmra.mxu3 %v2610_v18 }
  0x9f   : > { %1463 = vmatmul.bf16.gmra.mxu2 %v2538_v6  ;;  %v1228_v6 = vunpack.c.l.b16 %v1190_v3 }
  0xa1   : > { %v1233_v8 = vpack.c.b16 %v1229_v7, %v1228_v6 }
  0xa9   : > { %v332_v54 = vpop.f32.mrf.mxu1  ;;  %v322_v55 = vpop.f32.mrf.mxu0 }
  0xac   : > { %1304 = vmatmul.bf16.gmra.mxu1 %v1232_v51  ;;  %1874 = vmatmul.bf16.gmra.mxu0 %v1802_v52 }
  0xaf   : > { %1879 = vmatmul.bf16.vlgmr.msra.gmra.mxu2 %v1803_v56 }
  0xb1   : > { %v334_v1 = vpop.f32.mrf.mxu1  ;;  %v324_v2 = vpop.f32.mrf.mxu0 }
  0xb2   : > { %v725_v0 = vpop.f32.mrf.mxu2  ;;  %v879_v5 = vpop.f32.mrf.mxu3 }
  0xb9   : > { %v337_v10 = vpop.f32.mrf.mxu1  ;;  %v327_v11 = vpop.f32.mrf.mxu0 }
  0xba   : > { %v727_v9 = vpop.f32.mrf.mxu2  ;;  %v3304_v12 = vpop.f32.mrf.mxu3 }
  0xbc   : > { %1309 = vmatmul.bf16.gmra.mxu1 %v1233_v8 }
  0xc1   : > { %v339_v14 = vpop.f32.mrf.mxu1  ;;  %v329_v15 = vpop.f32.mrf.mxu0 }
  0xc2   : > { %v730_v13 = vpop.f32.mrf.mxu2  ;;  %v884_v16 = vpop.f32.mrf.mxu3 }
  0xc9   : > { %v460_v18 = vpop.f32.mrf.mxu1  ;;  %v1033_v19 = vpop.f32.mrf.mxu0 }
  0xca   : > { %v732_v17 = vpop.f32.mrf.mxu2  ;;  %v488_v20 = vadd.f32 %v460_v18, %v322_v55  ;;  %v3306_v21 = vpop.f32.mrf.mxu3 }
  0xcc   : > { %v753_v39 = vadd.f32 %v725_v0, %v488_v20 }
  0xce   : > { %v907_v22 = vadd.f32 %v879_v5, %v753_v39 }
  0xd0   : > { %v1061_v23 = vadd.f32 %v1033_v19, %v907_v22 }
  0xd1   : > { %v462_v25 = vpop.f32.mrf.mxu1  ;;  %v1035_v26 = vpop.f32.mrf.mxu0 }
  0xd2   : > { %v735_v24 = vpop.f32.mrf.mxu2  ;;  %v489_v27 = vadd.f32 %v462_v25, %v324_v2  ;;  %v889_v29 = vpop.f32.mrf.mxu3 }
  0xd4   : > { %v754_v28 = vadd.f32 %v727_v9, %v489_v27 }
  0xd9   : > { %v465_v31 = vpop.f32.mrf.mxu1  ;;  %v1038_v32 = vpop.f32.mrf.mxu0 }
  0xda   : > { %v737_v30 = vpop.f32.mrf.mxu2  ;;  %v490_v33 = vadd.f32 %v465_v31, %v327_v11  ;;  %v3308_v38 = vpop.f32.mrf.mxu3  ;;  %v908_v11 = vadd.f32 %v3304_v12, %v754_v28 }
  0xdc   : > { %v755_v34 = vadd.f32 %v730_v13, %v490_v33 }
  0xde   : > { %v909_v35 = vadd.f32 %v884_v16, %v755_v34 }
  0xe0   : > { %v1063_v36 = vadd.f32 %v1038_v32, %v909_v35 }
  0xe1   : > { %v467_v40 = vpop.f32.mrf.mxu1  ;;  %v1040_v41 = vpop.f32.mrf.mxu0 }
  0xe2   : > { %v740_v37 = vpop.f32.mrf.mxu2  ;;  %v491_v42 = vadd.f32 %v467_v40, %v329_v15  ;;  %v3310_v48 = vpop.f32.mrf.mxu3 }
  0xe4   : > { %v756_v43 = vadd.f32 %v732_v17, %v491_v42 }
  0xe9   : > { %v470_v45 = vpop.f32.mrf.mxu1  ;;  %v1043_v46 = vpop.f32.mrf.mxu0 }
  0xea   : > { %v742_v44 = vpop.f32.mrf.mxu2  ;;  %v492_v47 = vadd.f32 %v470_v45, %v332_v54  ;;  %v3318_v58 = vpop.f32.mrf.mxu3 }
  0xec   : > { %v757_v49 = vadd.f32 %v735_v24, %v492_v47 }
  0xee   : > { %v911_v50 = vadd.f32 %v889_v29, %v757_v49 }
  0xf0   : > { %v3312_v51 = vadd.f32 %v1043_v46, %v911_v50 }
  0xf1   : > { %v472_v53 = vpop.f32.mrf.mxu1  ;;  %v3314_v55 = vpop.f32.mrf.mxu0 }
  0xf2   : > { %v1449_v52 = vpop.f32.mrf.mxu2  ;;  %v493_v56 = vadd.f32 %v472_v53, %v334_v1  ;;  %v1603_v63 = vpop.f32.mrf.mxu3 }
  0xf4   : > { %v3316_v57 = vadd.f32 %v737_v30, %v493_v56  ;;  %v910_v30 = vadd.f32 %v3306_v21, %v756_v43 }
  0xf9   : > { %v475_v60 = vpop.f32.mrf.mxu1  ;;  %v3320_v61 = vpop.f32.mrf.mxu0 }
  0xfa   : > { %v1451_v59 = vpop.f32.mrf.mxu2  ;;  %v494_v54 = vadd.f32 %v475_v60, %v337_v10  ;;  %v1605_v1 = vpop.f32.mrf.mxu3  ;;  %v1062_v10 = vadd.f32 %v1035_v26, %v908_v11 }
  0xfc   : > { %v3322_v62 = vadd.f32 %v740_v37, %v494_v54  ;;  %v1064_v37 = vadd.f32 %v1040_v41, %v910_v30 }
 0x101   : > { %v477_v2 = vpop.f32.mrf.mxu1  ;;  %v3324_v3 = vpop.f32.mrf.mxu0 }
 0x102   : > { %v1454_v0 = vpop.f32.mrf.mxu2  ;;  %v495_v4 = vadd.f32 %v477_v2, %v339_v14  ;;  %v1608_v19 = vpop.f32.mrf.mxu3 }
 0x104   : > { %v3326_v5 = vadd.f32 %v742_v44, %v495_v4 }
 0x109   : > { %v1295_v6 = vpop.f32.mrf.mxu1  ;;  %v1865_v7 = vpop.f32.mrf.mxu0 }
 0x10a   : > { %v1323_v8 = vadd.f32 %v1295_v6, %v1061_v23  ;;  %v1456_v9 = vpop.f32.mrf.mxu2  ;;  %v1610_v33 = vpop.f32.mrf.mxu3 }
 0x10c   : > { %v1477_v13 = vadd.f32 %v1449_v52, %v1323_v8 }
 0x10e   : > { %v1631_v15 = vadd.f32 %v1603_v63, %v1477_v13  ;;  %v912_v63 = vadd.f32 %v3308_v38, %v3316_v57 }
 0x110   : > { %v1893_v39 = vadd.f32 %v1865_v7, %v1631_v15 }
 0x111   : > { %v1297_v16 = vpop.f32.mrf.mxu1  ;;  %v1867_v17 = vpop.f32.mrf.mxu0 }
 0x112   : > { %v1324_v18 = vadd.f32 %v1297_v16, %v1062_v10  ;;  %v1459_v14 = vpop.f32.mrf.mxu2  ;;  %v1946_v25 = vmul.f32 %v1893_v39, %v1893_v39 }
 0x114   : > { %v1478_v20 = vadd.f32 %v1451_v59, %v1324_v18 }
 0x116   : > { %v1632_v22 = vadd.f32 %v1605_v1, %v1478_v20  ;;  %v1066_v1 = vadd.f32 %v3314_v55, %v912_v63 }
 0x118   : > { %v1894_v24 = vadd.f32 %v1867_v17, %v1632_v22 }
 0x119   : > { %v1300_v12 = vpop.f32.mrf.mxu1  ;;  %v1870_v23 = vpop.f32.mrf.mxu0 }
 0x11a   : > { %v2809_v26 = vpack.c.bf16 %v1894_v24, %v1893_v39  ;;  %v1933_v27 = vadd.f32 %v1894_v24, %v1893_v39  ;;  %v1947_v28 = vmul.f32 %v1894_v24, %v1894_v24  ;;  %v1325_v29 = vadd.f32 %v1300_v12, %v1063_v36  ;;  %v1461_v35 = vpop.f32.mrf.mxu2  ;;  %v1613_v36 = vpop.f32.mrf.mxu3 }
 0x11b   : > { %v914_v24 = vadd.f32 %v3318_v58, %v3326_v5 }
 0x11c   : > { %2810 = vst [vmem:[%s3333_s7] sm:$0xff] %v2809_v26   ;;  %v1954_v31 = vadd.f32 %v1947_v28, %v1946_v25  ;;  %v1479_v32 = vadd.f32 %v1454_v0, %v1325_v29 }
 0x11e   : > { %v1633_v34 = vadd.f32 %v1608_v19, %v1479_v32 }
 0x120   : > { %v1895_v40 = vadd.f32 %v1870_v23, %v1633_v34  ;;  %v1068_v23 = vadd.f32 %v3324_v3, %v914_v24 }
 0x121   : > { %v1302_v42 = vpop.f32.mrf.mxu1  ;;  %v1872_v44 = vpop.f32.mrf.mxu0 }
 0x122   : > { %v1934_v45 = vadd.f32 %v1933_v27, %v1895_v40  ;;  %v1948_v46 = vmul.f32 %v1895_v40, %v1895_v40  ;;  %v1326_v47 = vadd.f32 %v1302_v42, %v1064_v37  ;;  %v1464_v21 = vpop.f32.mrf.mxu2  ;;  %v1615_v7 = vpop.f32.mrf.mxu3 }
 0x124   : > { %v1955_v49 = vadd.f32 %v1954_v31, %v1948_v46  ;;  %v1480_v50 = vadd.f32 %v1456_v9, %v1326_v47 }
 0x126   : > { %v1634_v52 = vadd.f32 %v1610_v33, %v1480_v50 }
 0x128   : > { %v1896_v53 = vadd.f32 %v1872_v44, %v1634_v52 }
 0x129   : > { %v1305_v43 = vpop.f32.mrf.mxu1  ;;  %v1875_v41 = vpop.f32.mrf.mxu0 }
 0x12a   : > { %v2814_v56 = vpack.c.bf16 %v1896_v53, %v1895_v40  ;;  %v1935_v59 = vadd.f32 %v1934_v45, %v1896_v53  ;;  %v1949_v60 = vmul.f32 %v1896_v53, %v1896_v53  ;;  %v1327_v54 = vadd.f32 %v1305_v43, %v3312_v51  ;;  %v1466_v10 = vpop.f32.mrf.mxu2  ;;  %v1618_v22 = vpop.f32.mrf.mxu3 }
 0x12b   : > { %v913_v51 = vadd.f32 %v3310_v48, %v3322_v62 }
 0x12c   : > { %2826 = vst [vmem:[%s3333_s7 + $0x8] sm:$0xff] %v2814_v56   ;;  %v1956_v0 = vadd.f32 %v1955_v49, %v1949_v60  ;;  %v1481_v2 = vadd.f32 %v1459_v14, %v1327_v54 }
 0x12d   : > { %v1067_v17 = vadd.f32 %v3320_v61, %v913_v51 }
 0x12e   : > { %v1635_v4 = vadd.f32 %v1613_v36, %v1481_v2 }
 0x130   : > { %v1897_v6 = vadd.f32 %v1875_v41, %v1635_v4 }
 0x131   : > { %v1307_v8 = vpop.f32.mrf.mxu1  ;;  %v1877_v38 = vpop.f32.mrf.mxu0 }
 0x132   : > { %v1936_v9 = vadd.f32 %v1935_v59, %v1897_v6  ;;  %v1950_v11 = vmul.f32 %v1897_v6, %v1897_v6  ;;  %v1328_v13 = vadd.f32 %v1307_v8, %v1066_v1  ;;  %v1880_v48 = vpop.f32.mrf.mxu2  ;;  %v1620_v32 = vpop.f32.mrf.mxu3 }
 0x134   : > { %v1957_v15 = vadd.f32 %v1956_v0, %v1950_v11  ;;  %v1482_v16 = vadd.f32 %v1461_v35, %v1328_v13 }
 0x136   : > { %v1636_v57 = vadd.f32 %v1615_v7, %v1482_v16 }
 0x138   : > { %v1898_v18 = vadd.f32 %v1877_v38, %v1636_v57 }
 0x139   : > { %v1310_v19 = vpop.f32.mrf.mxu1 }
 0x13a   : > { %v2819_v55 = vpack.c.bf16 %v1898_v18, %v1897_v6  ;;  %v1937_v20 = vadd.f32 %v1936_v9, %v1898_v18  ;;  %v1951_v39 = vmul.f32 %v1898_v18, %v1898_v18  ;;  %v1329_v14 = vadd.f32 %v1310_v19, %v1067_v17  ;;  %v1882_v34 = vpop.f32.mrf.mxu2 }
 0x13c   : > { %2827 = vst [vmem:[%s3333_s7 + $0x10] sm:$0xff] %v2819_v55   ;;  %v1958_v25 = vadd.f32 %v1957_v15, %v1951_v39  ;;  %v1483_v12 = vadd.f32 %v1464_v21, %v1329_v14 }
 0x13e   : > { %v1637_v62 = vadd.f32 %v1618_v22, %v1483_v12 }
 0x140   : > { %v1899_v26 = vadd.f32 %v1880_v48, %v1637_v62 }
 0x141   : > { %v1312_v61 = vpop.f32.mrf.mxu1 }
 0x142   : > { %v1938_v27 = vadd.f32 %v1937_v20, %v1899_v26  ;;  %v1952_v28 = vmul.f32 %v1899_v26, %v1899_v26  ;;  %v1330_v29 = vadd.f32 %v1312_v61, %v1068_v23 }
 0x144   : > { %v1959_v30 = vadd.f32 %v1958_v25, %v1952_v28  ;;  %v1484_v31 = vadd.f32 %v1466_v10, %v1330_v29 }
 0x146   : > { %v1638_v33 = vadd.f32 %v1620_v32, %v1484_v31 }
 0x148   : > { %v1900_v58 = vadd.f32 %v1882_v34, %v1638_v33 }
 0x14a   : > { %v2824_v5 = vpack.c.bf16 %v1900_v58, %v1899_v26  ;;  %v1939_v35 = vadd.f32 %v1938_v27, %v1900_v58  ;;  %v1953_v37 = vmul.f32 %v1900_v58, %v1900_v58 }
 0x14c   : > { %2828 = vst [vmem:[%s3333_s7 + $0x18] sm:$0xff] %v2824_v5   ;;  %v1940_v40 = vrot.slane %v1939_v35, 4  ;;  %v1960_v42 = vadd.f32 %v1959_v30, %v1953_v37 }
 0x14e   : > { %v1941_v44 = vadd.f32 %v1940_v40, %v1939_v35  ;;  %v1961_v3 = vrot.slane %v1960_v42, 4 }
 0x150   : > { %v1942_v45 = vrot.slane %v1941_v44, 2  ;;  %v1962_v46 = vadd.f32 %v1961_v3, %v1960_v42 }
 0x152   : > { %v1943_v47 = vadd.f32 %v1942_v45, %v1941_v44  ;;  %v1963_v49 = vrot.slane %v1962_v46, 2 }
 0x154   : > { %v1944_v50 = vrot.slane %v1943_v47, 1  ;;  %v1964_v52 = vadd.f32 %v1963_v49, %v1962_v46 }
 0x156   : > { %v1965_v36 = vrot.slane %v1964_v52, 1  ;;  %v1945_v53 = vadd.f32 %v1944_v50, %v1943_v47 }
 0x158   : > { %v1966_v21 = vadd.f32 %v1965_v36, %v1964_v52 }
 0x15a   : > { %v1968_v43 = vsel %vm1967_vm3, %v1945_v53, %v1966_v21 }
 0x15b   : > { %1969 = vst [vmem:[%s212_s11] sm:$0x3] %v1968_v43 }
 0x15c PF: > { %s14_s14 = sadd.s32 1, %s2892_s14   ;;  %s3369_s12 = smov %s2888_s13 }
 0x15d   : > { %p11_p5 = scmp.ge.s32.totalorder %s14_s14, 4   ;;  %s3370_s13 = smov %s3372_s15 }
 0x15f   :  { %13 = sbr.rel (!%p11_p5) target bundleno = 2 (0x2), region = 84 }

// kernel: downsample_residual_block.6
= control target key start
LH: loop header
LB: loop body
LE: loop exit
PB: predicated region body
PF: predicated region fallthrough
CT: control target
= control target key end

     0   :  { %s3009_s12 = smov 0   ;;  %s3011_s13 = smov 0   ;;  %s3614_s0 = inlined_call_operand.vmem [shape: bf16[2,10,16,128], index: 0, kind: input, shape index: {}]   ;;  %s3615_s1 = inlined_call_operand.vmem [shape: bf16[9,128,128], index: 1, kind: input, shape index: {}]   ;;  %s3616_s2 = inlined_call_operand.vmem [shape: bf16[2,64,128], index: 2, kind: output, shape index: {0}]   ;;  %s3617_s3 = inlined_call_operand.vmem [shape: f32[2,1,2,128], index: 3, kind: output, shape index: {1}]  }
   0x1   :  { %s3013_s14 = smov 0  }
   0x2 LB: > { %s26_s15 = sadd.s32 1, %s2983_s13  ;;  %p2241_p0 = scmp.ge.s32.totalorder %s2987_s14, 1  ;;  %s2987_s14 = sphi %s3013_s14, %s14_s14   ;;  %s2983_s13 = sphi %s3011_s13, %s3623_s13   ;;  %s2979_s12 = sphi %s3009_s12, %s3622_s12  }
   0x3   : > { %p28_p1 = scmp.ge.s32.totalorder %s26_s15, 2  ;;  %p156_p2 = scmp.lt.s32.totalorder %s2987_s14, 3 }
   0x5   : > { %s3625_s15 = smov (%p28_p1, %s26_s15), 0  ;;  %p157_p3 = pnand %p2241_p0, %p156_p2 }
   0x6   : > { %p191_p4 = scmp.lt.s32.totalorder (!%p157_p3), %s2979_s12, 1 }
   0x7   : > { %160 = sbr.rel (%p157_p3) target bundleno = 348 (0x15c), region = 28 }
   0xc   : > { %v2828_v0 = vld [vmem:[%s3615_s1 + $0x38] sm:$0xff]  ;;  %v2827_v2 = vld [vmem:[%s3615_s1 + $0x30] sm:$0xff]  ;;  %v2826_v6 = vld [vmem:[%s3615_s1 + $0x28] sm:$0xff]  ;;  %s3627_s12 = smov (!%p191_p4, %s2979_s12), 1  ;;  %vm647_vm0 = vcmask 1042432   ;;  %vm648_vm1 = vcmask 1046532  }
   0xd   : > { %v2844_v1 = vld [vmem:[%s3615_s1 + $0xb8] sm:$0xff]  ;;  %2924 = vmatpush.bf16.msra.mxu1 %v2828_v0  ;;  %313 = vmatpush.bf16.msra.mxu0 %v2828_v0  ;;  %v2843_v3 = vld [vmem:[%s3615_s1 + $0xb0] sm:$0xff]  ;;  %v2842_v7 = vld [vmem:[%s3615_s1 + $0xa8] sm:$0xff]  ;;  %s2940_s9 = smul.u32 80, %s3627_s12  ;;  %vm366_vm3 = vsmask.f32 3328 }
   0xe   : > { %763 = vmatpush.bf16.msra.mxu2 %v2844_v1  ;;  %v2856_v4 = vld [vmem:[%s3615_s1 + $0xf8] sm:$0xff]  ;;  %v2855_v5 = vld [vmem:[%s3615_s1 + $0xf0] sm:$0xff]  ;;  %v2854_v8 = vld [vmem:[%s3615_s1 + $0xe8] sm:$0xff]  ;;  %vm367_vm4 = vsmask.f32 7440  ;;  %s2245_s7 = sshll.u32 %s3627_s12, 1 }
   0xf   : > { %917 = vmatpush.bf16.msra.mxu3 %v2856_v4  ;;  %v2825_v9 = vld [vmem:[%s3615_s1 + $0x20] sm:$0xff]  ;;  %v2824_v12 = vld [vmem:[%s3615_s1 + $0x18] sm:$0xff]  ;;  %s3072_s22 = scalar_lea.vmem %s3614_s0, %s2940_s9  ;;  %v2823_v19 = vld [vmem:[%s3615_s1 + $0x10] sm:$0xff]  ;;  %vm2102_vm6 = vcmask 1040384   ;;  %s212_s10 = scalar_lea.vmem %s3617_s3, %s2245_s7 }
  0x10   : > { %v2841_v10 = vld [vmem:[%s3615_s1 + $0xa0] sm:$0xff]  ;;  %v2840_v13 = vld [vmem:[%s3615_s1 + $0x98] sm:$0xff]  ;;  %v617_v16 = vld [vmem:[%s3072_s22 + $0x8] sm:$0xe] }
  0x11   : > { %2925 = vmatpush.bf16.msra.mxu1 %v2827_v2  ;;  %314 = vmatpush.bf16.msra.mxu0 %v2827_v2  ;;  %v2853_v11 = vld [vmem:[%s3615_s1 + $0xe0] sm:$0xff]  ;;  %v618_v17 = vld [vmem:[%s3072_s22 + $0xc] sm:$0x1]  ;;  %v2852_v18 = vld [vmem:[%s3615_s1 + $0xd8] sm:$0xff]  ;;  %v2343_v23 = vrot.slane %v617_v16, 9 }
  0x12   : > { %764 = vmatpush.bf16.msra.mxu2 %v2843_v3  ;;  %v615_v14 = vld [vmem:[%s3072_s22] sm:$0xe]  ;;  %v616_v15 = vld [vmem:[%s3072_s22 + $0x4] sm:$0x1]  ;;  %v2839_v20 = vld [vmem:[%s3615_s1 + $0x90] sm:$0xff]  ;;  %v656_v24 = vrot.slane %v618_v17, 5 }
  0x13   : > { %918 = vmatpush.bf16.msra.mxu3 %v2855_v5  ;;  %v2342_v21 = vrot.slane %v615_v14, 9  ;;  %v652_v22 = vrot.slane %v616_v15, 5  ;;  %vm3090_vm2 = vmor %vm647_vm0, %vm648_vm1  ;;  %v2851_v26 = vld [vmem:[%s3615_s1 + $0xd0] sm:$0xff]  ;;  %v2822_v27 = vld [vmem:[%s3615_s1 + $0x8] sm:$0xff] }
  0x14   : > { %v2838_v28 = vld [vmem:[%s3615_s1 + $0x88] sm:$0xff]  ;;  %v657_v30 = vsel %vm3090_vm2, %v2343_v23, %v656_v24  ;;  %v2821_v31 = vld [vmem:[%s3615_s1] sm:$0xff]  ;;  %v2836_v33 = vld [vmem:[%s3615_s1 + $0x78] sm:$0xff] }
  0x15   : > { %2926 = vmatpush.bf16.msra.mxu1 %v2826_v6  ;;  %315 = vmatpush.bf16.msra.mxu0 %v2826_v6  ;;  %v653_v29 = vsel %vm3090_vm2, %v2342_v21, %v652_v22  ;;  %v2256_v32 = vld [vmem:[%s3072_s22 + $0x20] sm:$0xf]  ;;  %v2850_v34 = vld [vmem:[%s3615_s1 + $0xc8] sm:$0xff]  ;;  %v700_v39 = vunpack.c.l.b16 %v657_v30  ;;  %v2864_v41 = vld [vmem:[%s3615_s1 + $0x138] sm:$0xff] }
  0x16   : > { %765 = vmatpush.bf16.msra.mxu2 %v2842_v7  ;;  %v2819_v35 = vld [vmem:[%s3072_s22 + $0x24] sm:$0xf0]  ;;  %v2248_v36 = vld [vmem:[%s3072_s22] sm:$0xf]  ;;  %v699_v38 = vunpack.c.l.b16 %v653_v29  ;;  %v2884_v42 = vld [vmem:[%s3615_s1 + $0x1b8] sm:$0xff] }
  0x17   : > { %919 = vmatpush.bf16.msra.mxu3 %v2854_v8  ;;  %v2817_v37 = vld [vmem:[%s3072_s22 + $0x4] sm:$0xf0]  ;;  %v2837_v40 = vld [vmem:[%s3615_s1 + $0x80] sm:$0xff]  ;;  %v2257_v46 = vor.u32 %v2819_v35, %v2256_v32  ;;  %v619_v49 = vld [vmem:[%s3072_s22 + $0x10] sm:$0xe] }
  0x18   : > { %v2849_v43 = vld [vmem:[%s3615_s1 + $0xc0] sm:$0xff]  ;;  %v352_v45 = vld [vmem:[%s3072_s22 + $0x8] sm:$0xf]  ;;  %v2249_v47 = vor.u32 %v2817_v37, %v2248_v36  ;;  %v620_v50 = vld [vmem:[%s3072_s22 + $0x14] sm:$0x1]  ;;  %v707_v51 = vpack.c.b16 %v700_v39, %v699_v38  ;;  %v2344_v62 = vrot.slane %v619_v49, 9 }
  0x19   : > { %2927 = vmatpush.bf16.msra.mxu1 %v2825_v9  ;;  %316 = vmatpush.bf16.msra.mxu0 %v2825_v9  ;;  %v350_v44 = vld [vmem:[%s3072_s22] sm:$0xf]  ;;  %v2424_v48 = vld [vmem:[%s3072_s22 + $0x8] sm:$0xf]  ;;  %v2845_v52 = vld [vmem:[%s3072_s22 + $0xc] sm:$0xf0] }
  0x1a   : > { %766 = vmatpush.bf16.msra.mxu2 %v2841_v10  ;;  %v621_v53 = vld [vmem:[%s3072_s22 + $0x18] sm:$0xe]  ;;  %v622_v54 = vld [vmem:[%s3072_s22 + $0x1c] sm:$0x1]  ;;  %v2835_v55 = vld [vmem:[%s3615_s1 + $0x70] sm:$0xff]  ;;  %v370_v57 = vshrl.u32 %v350_v44, 16  ;;  %v2425_v0 = vor.u32 %v2845_v52, %v2424_v48 }
  0x1b   : > { %920 = vmatpush.bf16.msra.mxu3 %v2853_v11  ;;  %v2892_v56 = vld [vmem:[%s3615_s1 + $0x1f8] sm:$0xff]  ;;  %v373_v58 = vshll.u32 %v350_v44, 16  ;;  %v384_v59 = vshrl.u32 %v352_v45, 16  ;;  %v387_v60 = vshll.u32 %v352_v45, 16  ;;  %v2863_v61 = vld [vmem:[%s3615_s1 + $0x130] sm:$0xff]  ;;  %v660_v1 = vrot.slane %v620_v50, 5  ;;  %vm3227_vm5 = vmor %vm366_vm3, %vm367_vm4 }
  0x1c   : > { %v2883_v63 = vld [vmem:[%s3615_s1 + $0x1b0] sm:$0xff]  ;;  %v2345_v2 = vrot.slane %v621_v53, 9  ;;  %v664_v3 = vrot.slane %v622_v54, 5  ;;  %v2470_v4 = vld [vmem:[%s3072_s22 + $0x8] sm:$0xf]  ;;  %v372_v9 = vrot.slane %v370_v57, 4 }
  0x1d   : > { %2928 = vmatpush.bf16.msra.mxu1 %v2824_v12  ;;  %317 = vmatpush.bf16.msra.mxu0 %v2824_v12  ;;  %v351_v5 = vld [vmem:[%s3072_s22 + $0x4] sm:$0x1]  ;;  %v353_v6 = vld [vmem:[%s3072_s22 + $0xc] sm:$0x1]  ;;  %v2472_v7 = vld [vmem:[%s3072_s22 + $0x10] sm:$0xf]  ;;  %v661_v21 = vsel %vm3090_vm2, %v2344_v62, %v660_v1 }
  0x1e   : > { %767 = vmatpush.bf16.msra.mxu2 %v2840_v13  ;;  %v2834_v8 = vld [vmem:[%s3615_s1 + $0x68] sm:$0xff]  ;;  %v375_v10 = vrot.slane %v373_v58, 5  ;;  %v386_v11 = vrot.slane %v384_v59, 4  ;;  %v389_v12 = vrot.slane %v387_v60, 5  ;;  %v2891_v13 = vld [vmem:[%s3615_s1 + $0x1f0] sm:$0xff]  ;;  %v987_v17 = vshrl.u32 %v2470_v4, 16 }
  0x1f   : > { %921 = vmatpush.bf16.msra.mxu3 %v2852_v18  ;;  %v2862_v14 = vld [vmem:[%s3615_s1 + $0x128] sm:$0xff]  ;;  %v990_v18 = vshll.u32 %v2470_v4, 16  ;;  %v665_v22 = vsel %vm3090_vm2, %v2345_v2, %v664_v3  ;;  %v379_v23 = vshll.u32 %v351_v5, 16  ;;  %v393_v24 = vshll.u32 %v353_v6, 16  ;;  %v2820_v32 = vld [vmem:[%s3072_s22 + $0x34] sm:$0xf0] }
  0x20   : > { %v2882_v15 = vld [vmem:[%s3615_s1 + $0x1a8] sm:$0xff]  ;;  %v989_v35 = vrot.slane %v987_v17, 4  ;;  %v2881_v37 = vld [vmem:[%s3615_s1 + $0x1a0] sm:$0xff]  ;;  %v2252_v38 = vld [vmem:[%s3072_s22 + $0x10] sm:$0xf] }
  0x21   : > { %2929 = vmatpush.bf16.msra.mxu1 %v2823_v19  ;;  %318 = vmatpush.bf16.msra.mxu0 %v2823_v19  ;;  %v2471_v16 = vld [vmem:[%s3072_s22 + $0xc] sm:$0x1]  ;;  %v1001_v19 = vshrl.u32 %v2472_v7, 16  ;;  %v992_v36 = vrot.slane %v990_v18, 5  ;;  %v2818_v39 = vld [vmem:[%s3072_s22 + $0x14] sm:$0xf0] }
  0x22   : > { %768 = vmatpush.bf16.msra.mxu2 %v2839_v20  ;;  %v1004_v20 = vshll.u32 %v2472_v7, 16  ;;  %v996_v29 = vshll.u32 %v2471_v16, 16  ;;  %v2890_v30 = vld [vmem:[%s3615_s1 + $0x1e8] sm:$0xff]  ;;  %v3190_v44 = vrot.slane %v379_v23, 5  ;;  %v3192_v45 = vrot.slane %v393_v24, 5  ;;  %v2831_v57 = vld [vmem:[%s3615_s1 + $0x50] sm:$0xff] }
  0x23   : > { %922 = vmatpush.bf16.msra.mxu3 %v2851_v26  ;;  %v2833_v26 = vld [vmem:[%s3615_s1 + $0x60] sm:$0xff]  ;;  %v2428_v52 = vld [vmem:[%s3072_s22 + $0x18] sm:$0xf]  ;;  %v993_v53 = vor.u32 %v992_v36, %v989_v35  ;;  %v354_v54 = vld [vmem:[%s3072_s22 + $0x10] sm:$0xf]  ;;  %v2253_v58 = vor.u32 %v2818_v39, %v2252_v38 }
  0x24   : > { %v3204_v50 = vrot.slane %v996_v29, 5  ;;  %v2846_v59 = vld [vmem:[%s3072_s22 + $0x1c] sm:$0xf0]  ;;  %v2474_v62 = vld [vmem:[%s3072_s22 + $0x18] sm:$0xf]  ;;  %v398_v3 = vshrl.u32 %v354_v54, 16 }
  0x25   : > { %2930 = vmatpush.bf16.msra.mxu1 %v2822_v27  ;;  %319 = vmatpush.bf16.msra.mxu0 %v2822_v27  ;;  %v376_v27 = vor.u32 %v375_v10, %v372_v9  ;;  %v625_v1 = vld [vmem:[%s3072_s22 + $0x28] sm:$0xe]  ;;  %v626_v2 = vld [vmem:[%s3072_s22 + $0x2c] sm:$0x1]  ;;  %v401_v4 = vshll.u32 %v354_v54, 16  ;;  %v994_v9 = vrot.slane %v993_v53, 4 }
  0x26   : > { %769 = vmatpush.bf16.msra.mxu2 %v2838_v28  ;;  %v390_v28 = vor.u32 %v389_v12, %v386_v11  ;;  %v2476_v7 = vld [vmem:[%s3072_s22 + $0x20] sm:$0xf]  ;;  %v1015_v11 = vshrl.u32 %v2474_v62, 16  ;;  %v1018_v12 = vshll.u32 %v2474_v62, 16  ;;  %v2872_v53 = vld [vmem:[%s3615_s1 + $0x178] sm:$0xff] }
  0x27   : > { %923 = vmatpush.bf16.msra.mxu3 %v2850_v34  ;;  %v2473_v34 = vld [vmem:[%s3072_s22 + $0x14] sm:$0x1]  ;;  %v3200_v48 = vrot.slane %v376_v27, 4  ;;  %v1029_v23 = vshrl.u32 %v2476_v7, 16  ;;  %v1032_v24 = vshll.u32 %v2476_v7, 16  ;;  %v403_v29 = vrot.slane %v401_v4, 5 }
  0x28   : > { %v3202_v49 = vrot.slane %v390_v28, 4  ;;  %v355_v27 = vld [vmem:[%s3072_s22 + $0x14] sm:$0x1]  ;;  %v400_v28 = vrot.slane %v398_v3, 4  ;;  %v1017_v35 = vrot.slane %v1015_v11, 4  ;;  %v1020_v36 = vrot.slane %v1018_v12, 5 }
  0x29   : > { %2931 = vmatpush.bf16.msra.mxu1 %v2821_v31  ;;  %320 = vmatpush.bf16.msra.mxu0 %v2821_v31  ;;  %v2260_v31 = vld [vmem:[%s3072_s22 + $0x30] sm:$0xf]  ;;  %v999_v38 = vsel %vm3227_vm5, %v994_v9, %v3204_v50  ;;  %v2857_v54 = vld [vmem:[%s3615_s1 + $0x100] sm:$0xff]  ;;  %v360_v4 = vld [vmem:[%s3072_s22 + $0x28] sm:$0xf] }
  0x2a   : > { %770 = vmatpush.bf16.msra.mxu2 %v2837_v40  ;;  %v701_v40 = vunpack.c.l.b16 %v661_v21  ;;  %v2347_v21 = vrot.slane %v625_v1, 9  ;;  %v358_v62 = vld [vmem:[%s3072_s22 + $0x20] sm:$0xf]  ;;  %v2871_v1 = vld [vmem:[%s3615_s1 + $0x170] sm:$0xff] }
  0x2b   : > { %924 = vmatpush.bf16.msra.mxu3 %v2849_v43  ;;  %v1006_v43 = vrot.slane %v1004_v20, 5  ;;  %v2858_v20 = vld [vmem:[%s3615_s1 + $0x108] sm:$0xff] }
  0x2c   : > { %331 = vmatmul.bf16.vlgmr.msra.gmra.mxu1 %v2257_v46  ;;  %321 = vmatmul.bf16.vlgmr.msra.gmra.mxu0 %v2249_v47  ;;  %v2832_v46 = vld [vmem:[%s3615_s1 + $0x58] sm:$0xff] }
  0x2d   : > { %562 = vmatpush.bf16.msrb.mxu1 %v2836_v33  ;;  %1179 = vmatpush.bf16.msrb.mxu0 %v2864_v41  ;;  %v2861_v33 = vld [vmem:[%s3615_s1 + $0x120] sm:$0xff]  ;;  %v702_v41 = vunpack.c.l.b16 %v665_v22  ;;  %v2860_v47 = vld [vmem:[%s3615_s1 + $0x118] sm:$0xff]  ;;  %v672_v22 = vrot.slane %v626_v2, 5 }
  0x2e   : > { %1531 = vmatpush.bf16.msrb.mxu2 %v2884_v42  ;;  %925 = vmatmul.bf16.vlgmr.msra.gmra.mxu3 %v2425_v0  ;;  %v1003_v42 = vrot.slane %v1001_v19, 4  ;;  %v624_v0 = vld [vmem:[%s3072_s22 + $0x24] sm:$0x1]  ;;  %v2880_v19 = vld [vmem:[%s3615_s1 + $0x198] sm:$0xff] }
  0x2f   : > { %771 = vmatmul.bf16.vlgmr.msra.gmra.mxu2 %v707_v51  ;;  %1793 = vmatpush.bf16.msrb.mxu3 %v2892_v56  ;;  %v1010_v51 = vshll.u32 %v2473_v34, 16  ;;  %v2261_v56 = vor.u32 %v2820_v32, %v2260_v31  ;;  %v668_v18 = vrot.slane %v624_v0, 5  ;;  %v382_v32 = vsel %vm3227_vm5, %v3200_v48, %v3190_v44  ;;  %v2475_v34 = vld [vmem:[%s3072_s22 + $0x1c] sm:$0x1]  ;;  %v2829_v48 = vld [vmem:[%s3615_s1 + $0x40] sm:$0xff] }
  0x30   : > { %v1007_v60 = vor.u32 %v1006_v43, %v1003_v42  ;;  %v2879_v42 = vld [vmem:[%s3615_s1 + $0x190] sm:$0xff]  ;;  %v2888_v43 = vld [vmem:[%s3615_s1 + $0x1d8] sm:$0xff]  ;;  %v673_v44 = vsel %vm3090_vm2, %v2347_v21, %v672_v22  ;;  %v2478_v21 = vld [vmem:[%s3072_s22 + $0x28] sm:$0xf] }
  0x31   : > { %563 = vmatpush.bf16.msrb.mxu1 %v2835_v55  ;;  %1180 = vmatpush.bf16.msrb.mxu0 %v2863_v61  ;;  %v356_v55 = vld [vmem:[%s3072_s22 + $0x18] sm:$0xf]  ;;  %v623_v61 = vld [vmem:[%s3072_s22 + $0x20] sm:$0xe]  ;;  %v1012_v10 = vrot.slane %v1010_v51, 5  ;;  %v704_v0 = vunpack.c.l.b16 %v673_v44 }
  0x32   : > { %1532 = vmatpush.bf16.msrb.mxu2 %v2883_v63  ;;  %v708_v63 = vpack.c.b16 %v702_v41, %v701_v40  ;;  %v412_v5 = vshrl.u32 %v356_v55, 16  ;;  %v415_v6 = vshll.u32 %v356_v55, 16  ;;  %v1008_v16 = vrot.slane %v1007_v60, 4  ;;  %v2477_v41 = vld [vmem:[%s3072_s22 + $0x24] sm:$0x1] }
  0x33   : > { %1794 = vmatpush.bf16.msrb.mxu3 %v2891_v13  ;;  %v2830_v13 = vld [vmem:[%s3615_s1 + $0x48] sm:$0xff]  ;;  %v2346_v17 = vrot.slane %v623_v61, 9  ;;  %v1021_v55 = vor.u32 %v1020_v36, %v1017_v35  ;;  %v3279_v61 = vld [vmem:[%s3615_s1 + $0x238] sm:$0xff]  ;;  %v1043_v36 = vshrl.u32 %v2478_v21, 16 }
  0x34   : > { %v417_v31 = vrot.slane %v415_v6, 5  ;;  %v1013_v39 = vsel %vm3227_vm5, %v1008_v16, %v1012_v10  ;;  %v2847_v10 = vld [vmem:[%s3072_s22 + $0x2c] sm:$0xf0]  ;;  %v2878_v35 = vld [vmem:[%s3615_s1 + $0x188] sm:$0xff] }
  0x35   : > { %564 = vmatpush.bf16.msrb.mxu1 %v2834_v8  ;;  %1181 = vmatpush.bf16.msrb.mxu0 %v2862_v14  ;;  %v2859_v8 = vld [vmem:[%s3615_s1 + $0x110] sm:$0xff]  ;;  %v669_v40 = vsel %vm3090_vm2, %v2346_v17, %v668_v18  ;;  %v1116_v60 = vunpack.c.l.b16 %v1013_v39  ;;  %v3298_v11 = vrot.slane %v1021_v55, 4 }
  0x36   : > { %1533 = vmatpush.bf16.msrb.mxu2 %v2882_v15  ;;  %v2429_v15 = vor.u32 %v2846_v59, %v2428_v52  ;;  %v1024_v52 = vshll.u32 %v2475_v34, 16  ;;  %v1115_v59 = vunpack.c.l.b16 %v999_v38  ;;  %v3304_v18 = vld [vmem:[%s3072_s22 + $0x30] sm:$0xe]  ;;  %v361_v38 = vld [vmem:[%s3072_s22 + $0x2c] sm:$0x1] }
  0x37   : > { %1795 = vmatpush.bf16.msrb.mxu3 %v2890_v30  ;;  %v414_v30 = vrot.slane %v412_v5, 4  ;;  %v2750_v14 = vld [vmem:[%s3072_s22 + $0x30] sm:$0xe] }
  0x38   : > { %v3295_v9 = vrot.slane %v1024_v52, 5  ;;  %v1123_v17 = vpack.c.b16 %v1116_v60, %v1115_v59  ;;  %v2886_v59 = vld [vmem:[%s3615_s1 + $0x1c8] sm:$0xff] }
  0x39   : > { %565 = vmatpush.bf16.msrb.mxu1 %v2833_v26  ;;  %1182 = vmatpush.bf16.msrb.mxu0 %v2861_v33  ;;  %v2889_v26 = vld [vmem:[%s3615_s1 + $0x1e0] sm:$0xff]  ;;  %v357_v33 = vld [vmem:[%s3072_s22 + $0x1c] sm:$0x1]  ;;  %v418_v50 = vor.u32 %v417_v31, %v414_v30 }
  0x3a   : > { %1534 = vmatpush.bf16.msrb.mxu2 %v2881_v37  ;;  %v396_v37 = vsel %vm3227_vm5, %v3202_v49, %v3192_v45  ;;  %v407_v45 = vshll.u32 %v355_v27, 16  ;;  %v404_v49 = vor.u32 %v403_v29, %v400_v28  ;;  %v421_v51 = vshll.u32 %v357_v33, 16  ;;  %v2480_v27 = vld [vmem:[%s3072_s22 + $0x30] sm:$0xf]  ;;  %v629_v29 = vld [vmem:[%s3072_s22 + $0x38] sm:$0xe] }
  0x3b   : > { %1796 = vmatpush.bf16.msrb.mxu3 %v2889_v26  ;;  %v3290_v6 = vrot.slane %v418_v50, 4  ;;  %v3311_v26 = vld [vmem:[%s3615_s1 + $0x230] sm:$0xff]  ;;  %v630_v30 = vld [vmem:[%s3072_s22 + $0x3c] sm:$0x1]  ;;  %v359_v31 = vld [vmem:[%s3072_s22 + $0x24] sm:$0x1] }
  0x3c   : > { %336 = vmatmul.bf16.gmra.mxu1 %v2261_v56  ;;  %326 = vmatmul.bf16.gmra.mxu0 %v2253_v58  ;;  %v1038_v56 = vshll.u32 %v2477_v41, 16  ;;  %v499_v58 = vunpack.c.l.b16 %v396_v37  ;;  %v3285_v2 = vrot.slane %v407_v45, 5  ;;  %v3288_v5 = vrot.slane %v404_v49, 4 }
  0x3d   : > { %566 = vmatpush.bf16.msrb.mxu1 %v2832_v46  ;;  %1183 = vmatpush.bf16.msrb.mxu0 %v2860_v47  ;;  %v1031_v46 = vrot.slane %v1029_v23, 4  ;;  %v1034_v47 = vrot.slane %v1032_v24, 5  ;;  %v3292_v7 = vrot.slane %v421_v51, 5  ;;  %v628_v24 = vld [vmem:[%s3072_s22 + $0x34] sm:$0x1]  ;;  %v1046_v37 = vshll.u32 %v2478_v21, 16 }
  0x3e   : > { %1535 = vmatpush.bf16.msrb.mxu2 %v2880_v19  ;;  %930 = vmatmul.bf16.gmra.mxu3 %v2429_v15  ;;  %v3300_v12 = vrot.slane %v1038_v56, 5  ;;  %v429_v15 = vshll.u32 %v358_v62, 16  ;;  %v440_v19 = vshrl.u32 %v360_v4, 16  ;;  %v1057_v41 = vshrl.u32 %v2480_v27, 16 }
  0x3f   : > { %776 = vmatmul.bf16.gmra.mxu2 %v708_v63  ;;  %1797 = vmatpush.bf16.msrb.mxu3 %v2888_v43  ;;  %v703_v63 = vunpack.c.l.b16 %v669_v40  ;;  %v1035_v3 = vor.u32 %v1034_v47, %v1031_v46  ;;  %v410_v43 = vsel %vm3227_vm5, %v3288_v5, %v3285_v2  ;;  %v424_v44 = vsel %vm3227_vm5, %v3290_v6, %v3292_v7  ;;  %v3341_v47 = vld [vmem:[%s3615_s1 + $0x228] sm:$0xff]  ;;  %v3364_v5 = vld [vmem:[%s3615_s1 + $0x220] sm:$0xff] }
  0x40   : > { %v431_v34 = vrot.slane %v429_v15, 5  ;;  %v442_v39 = vrot.slane %v440_v19, 4  ;;  %v1027_v45 = vsel %vm3227_vm5, %v3298_v11, %v3295_v9  ;;  %v2348_v46 = vrot.slane %v3304_v18, 9  ;;  %v2868_v11 = vld [vmem:[%s3615_s1 + $0x158] sm:$0xff] }
  0x41   : > { %567 = vmatpush.bf16.msrb.mxu1 %v2831_v57  ;;  %1184 = vmatpush.bf16.msrb.mxu0 %v2859_v8  ;;  %v498_v57 = vunpack.c.l.b16 %v382_v32  ;;  %v2432_v8 = vld [vmem:[%s3072_s22 + $0x28] sm:$0xf]  ;;  %v709_v22 = vpack.c.b16 %v704_v0, %v703_v63  ;;  %v1036_v23 = vrot.slane %v1035_v3, 4  ;;  %v676_v50 = vrot.slane %v628_v24, 5  ;;  %v2479_v63 = vld [vmem:[%s3072_s22 + $0x2c] sm:$0x1] }
  0x42   : > { %1536 = vmatpush.bf16.msrb.mxu2 %v2879_v42  ;;  %v2433_v28 = vor.u32 %v2847_v10, %v2432_v8  ;;  %v2870_v32 = vld [vmem:[%s3615_s1 + $0x168] sm:$0xff]  ;;  %v1060_v42 = vshll.u32 %v2480_v27, 16  ;;  %v2349_v51 = vrot.slane %v629_v29, 9  ;;  %v680_v52 = vrot.slane %v630_v30, 5  ;;  %v2481_v0 = vld [vmem:[%s3072_s22 + $0x34] sm:$0x1] }
  0x43   : > { %v506_v16 = vpack.c.b16 %v499_v58, %v498_v57  ;;  %v1041_v49 = vsel %vm3227_vm5, %v1036_v23, %v3300_v12  ;;  %v435_v55 = vshll.u32 %v359_v31, 16  ;;  %v449_v56 = vshll.u32 %v361_v38, 16  ;;  %v362_v38 = vld [vmem:[%s3072_s22 + $0x30] sm:$0xf] }
  0x44   : > { %v1045_v57 = vrot.slane %v1043_v36, 4  ;;  %v1048_v58 = vrot.slane %v1046_v37, 5  ;;  %v1062_v2 = vrot.slane %v1060_v42, 5  ;;  %v500_v3 = vunpack.c.l.b16 %v410_v43 }
  0x45   : > { %568 = vmatpush.bf16.msrb.mxu1 %v2830_v13  ;;  %1185 = vmatpush.bf16.msrb.mxu0 %v2858_v20  ;;  %v426_v13 = vshrl.u32 %v358_v62, 16  ;;  %v443_v20 = vshll.u32 %v360_v4, 16  ;;  %v501_v4 = vunpack.c.l.b16 %v424_v44  ;;  %v1117_v6 = vunpack.c.l.b16 %v1027_v45  ;;  %v364_v45 = vld [vmem:[%s3072_s22 + $0x38] sm:$0xf] }
  0x46   : > { %1537 = vmatpush.bf16.msrb.mxu2 %v2878_v35  ;;  %v1118_v7 = vunpack.c.l.b16 %v1041_v49  ;;  %v677_v8 = vsel %vm3090_vm2, %v2348_v46, %v676_v50  ;;  %v681_v9 = vsel %vm3090_vm2, %v2349_v51, %v680_v52  ;;  %v437_v10 = vrot.slane %v435_v55, 5  ;;  %v2482_v46 = vld [vmem:[%s3072_s22 + $0x38] sm:$0xf]  ;;  %v2866_v51 = vld [vmem:[%s3615_s1 + $0x148] sm:$0xff] }
  0x47   : > { %v428_v33 = vrot.slane %v426_v13, 4  ;;  %v445_v40 = vrot.slane %v443_v20, 5  ;;  %v1049_v12 = vor.u32 %v1048_v58, %v1045_v57  ;;  %v1052_v13 = vshll.u32 %v2479_v63, 16  ;;  %v3406_v52 = vld [vmem:[%s3615_s1 + $0x218] sm:$0xff] }
  0x48   : > { %v1066_v15 = vshll.u32 %v2481_v0, 16  ;;  %v451_v18 = vrot.slane %v449_v56, 5  ;;  %v705_v20 = vunpack.c.l.b16 %v677_v8  ;;  %v706_v21 = vunpack.c.l.b16 %v681_v9  ;;  %v2484_v56 = vld [vmem:[%s3072_s22 + $0x40] sm:$0xf] }
  0x49   : > { %569 = vmatpush.bf16.msrb.mxu1 %v2829_v48  ;;  %1186 = vmatpush.bf16.msrb.mxu0 %v2857_v54  ;;  %v2887_v48 = vld [vmem:[%s3615_s1 + $0x1d0] sm:$0xff]  ;;  %v2869_v54 = vld [vmem:[%s3615_s1 + $0x160] sm:$0xff]  ;;  %v432_v60 = vor.u32 %v431_v34, %v428_v33  ;;  %v446_v62 = vor.u32 %v445_v40, %v442_v39  ;;  %v507_v23 = vpack.c.b16 %v501_v4, %v500_v3  ;;  %v1054_v29 = vrot.slane %v1052_v13, 5  ;;  %v2436_v33 = vld [vmem:[%s3072_s22 + $0x38] sm:$0xf] }
  0x4a   : > { %1798 = vmatpush.bf16.msrb.mxu3 %v2887_v48  ;;  %v1124_v27 = vpack.c.b16 %v1118_v7, %v1117_v6  ;;  %v1068_v30 = vrot.slane %v1066_v15, 5  ;;  %v2848_v34 = vld [vmem:[%s3072_s22 + $0x3c] sm:$0xf0]  ;;  %v710_v37 = vpack.c.b16 %v706_v21, %v705_v20  ;;  %v2679_v39 = vld [vmem:[%s3072_s22 + $0x14] sm:$0x1]  ;;  %v454_v50 = vshrl.u32 %v362_v38, 16 }
  0x4b   : > { %v2680_v40 = vld [vmem:[%s3072_s22 + $0x18] sm:$0xf]  ;;  %v2437_v44 = vor.u32 %v2848_v34, %v2436_v33  ;;  %v2681_v48 = vld [vmem:[%s3072_s22 + $0x1c] sm:$0x1]  ;;  %v457_v55 = vshll.u32 %v362_v38, 16  ;;  %v1610_v57 = vshll.u32 %v2679_v39, 16 }
  0x4c   : > { %570 = vmatmul.bf16.vlgmr.msrb.gmra.mxu1 %v506_v16  ;;  %1187 = vmatmul.bf16.vlgmr.msrb.gmra.mxu0 %v1123_v17  ;;  %v433_v16 = vrot.slane %v432_v60, 4  ;;  %v447_v17 = vrot.slane %v446_v62, 4  ;;  %v1615_v58 = vshrl.u32 %v2680_v40, 16  ;;  %v3413_v60 = vld [vmem:[%s3072_s22 + $0x34] sm:$0x1]  ;;  %v468_v62 = vshrl.u32 %v364_v45, 16 }
  0x4d   : > { %1377 = vmatpush.bf16.msra.mxu1 %v2872_v53  ;;  %1991 = vmatpush.bf16.msra.mxu0 %v3279_v61  ;;  %v2877_v53 = vld [vmem:[%s3615_s1 + $0x180] sm:$0xff]  ;;  %v471_v63 = vshll.u32 %v364_v45, 16  ;;  %v1071_v0 = vshrl.u32 %v2482_v46, 16  ;;  %v1074_v3 = vshll.u32 %v2482_v46, 16  ;;  %v1624_v7 = vshll.u32 %v2681_v48, 16 }
  0x4e   : > { %935 = vmatmul.bf16.gmra.mxu3 %v2433_v28  ;;  %1538 = vmatpush.bf16.msrb.mxu2 %v2877_v53  ;;  %v1050_v28 = vrot.slane %v1049_v12, 4  ;;  %v438_v31 = vsel %vm3227_vm5, %v433_v16, %v437_v10  ;;  %v2885_v53 = vld [vmem:[%s3615_s1 + $0x1c0] sm:$0xff]  ;;  %v1617_v4 = vrot.slane %v1615_v58, 4  ;;  %v3429_v12 = vld [vmem:[%s3072_s22 + $0x14] sm:$0xf0]  ;;  %v1085_v13 = vshrl.u32 %v2484_v56, 16 }
  0x4f   : > { %781 = vmatmul.bf16.gmra.mxu2 %v709_v22  ;;  %1799 = vmatpush.bf16.msrb.mxu3 %v2886_v59  ;;  %v2678_v22 = vld [vmem:[%s3072_s22 + $0x10] sm:$0xf]  ;;  %v3389_v42 = vunpack.c.l.b16 %v438_v31  ;;  %v1618_v59 = vshll.u32 %v2680_v40, 16  ;;  %v2865_v8 = vld [vmem:[%s3615_s1 + $0x140] sm:$0xff]  ;;  %v1088_v15 = vshll.u32 %v2484_v56, 16  ;;  %v1626_v20 = vrot.slane %v1624_v7, 5 }
  0x50   : > { %v1601_v24 = vshrl.u32 %v2678_v22, 16  ;;  %v1604_v36 = vshll.u32 %v2678_v22, 16  ;;  %v365_v16 = vld [vmem:[%s3072_s22 + $0x3c] sm:$0x1]  ;;  %v456_v21 = vrot.slane %v454_v50, 4  ;;  %v459_v22 = vrot.slane %v457_v55, 5 }
  0x51   : > { %1378 = vmatpush.bf16.msra.mxu1 %v2871_v1  ;;  %1992 = vmatpush.bf16.msra.mxu0 %v3311_v26  ;;  %v1059_v1 = vrot.slane %v1057_v41, 4  ;;  %v1620_v6 = vrot.slane %v1618_v59, 5  ;;  %v1087_v33 = vrot.slane %v1085_v13, 4  ;;  %v1090_v34 = vrot.slane %v1088_v15, 5  ;;  %v2683_v56 = vld [vmem:[%s3072_s22 + $0x24] sm:$0x1] }
  0x52   : > { %2932 = vmatpush.bf16.msra.mxu2 %v3279_v61  ;;  %v2867_v61 = vld [vmem:[%s3615_s1 + $0x150] sm:$0xff]  ;;  %v1603_v41 = vrot.slane %v1601_v24, 4  ;;  %v2894_v24 = vld [vmem:[%s3615_s1 + $0x208] sm:$0xff]  ;;  %v460_v45 = vor.u32 %v459_v22, %v456_v21  ;;  %v1638_v7 = vshll.u32 %v2683_v56, 16 }
  0x53   : > { %v1063_v19 = vor.u32 %v1062_v2, %v1059_v1  ;;  %1800 = vmatpush.bf16.msrb.mxu3 %v2885_v53  ;;  %v3419_v2 = vld [vmem:[%s3615_s1 + $0x210] sm:$0xff] }
  0x54   : > { %v1640_v15 = vrot.slane %v1638_v7, 5 }
  0x55   : > { %1379 = vmatpush.bf16.msra.mxu1 %v2870_v32  ;;  %1993 = vmatpush.bf16.msra.mxu0 %v3341_v47  ;;  %v452_v32 = vsel %vm3227_vm5, %v447_v17, %v451_v18  ;;  %v1064_v35 = vrot.slane %v1063_v19, 4  ;;  %v1612_v18 = vrot.slane %v1610_v57, 5  ;;  %v1621_v19 = vor.u32 %v1620_v6, %v1617_v4  ;;  %v2893_v4 = vld [vmem:[%s3615_s1 + $0x200] sm:$0xff] }
  0x56   : > { %2933 = vmatpush.bf16.msra.mxu2 %v3311_v26  ;;  %v3391_v43 = vunpack.c.l.b16 %v452_v32  ;;  %v1055_v26 = vsel %vm3227_vm5, %v1050_v28, %v1054_v29  ;;  %v2483_v28 = vld [vmem:[%s3072_s22 + $0x3c] sm:$0x1]  ;;  %v1073_v29 = vrot.slane %v1071_v0, 4 }
  0x57   : > { %v1069_v49 = vsel %vm3227_vm5, %v1064_v35, %v1068_v30  ;;  %v1119_v9 = vunpack.c.l.b16 %v1055_v26  ;;  %v1076_v30 = vrot.slane %v1074_v3, 5  ;;  %v2682_v35 = vld [vmem:[%s3072_s22 + $0x20] sm:$0xf]  ;;  %v1080_v26 = vshll.u32 %v2483_v28, 16  ;;  %v2688_v28 = vld [vmem:[%s3072_s22 + $0x38] sm:$0xf] }
  0x58   : > { %v1120_v10 = vunpack.c.l.b16 %v1069_v49  ;;  %v508_v31 = vpack.c.b16 %v3391_v43, %v3389_v42  ;;  %v1629_v39 = vshrl.u32 %v2682_v35, 16  ;;  %v1632_v40 = vshll.u32 %v2682_v35, 16 }
  0x59   : > { %1380 = vmatpush.bf16.msra.mxu1 %v2869_v54  ;;  %1994 = vmatpush.bf16.msra.mxu0 %v3364_v5  ;;  %v1606_v54 = vrot.slane %v1604_v36, 5  ;;  %v2684_v36 = vld [vmem:[%s3072_s22 + $0x28] sm:$0xf]  ;;  %v1077_v48 = vor.u32 %v1076_v30, %v1073_v29 }
  0x5a   : > { %2934 = vmatpush.bf16.msra.mxu2 %v3341_v47  ;;  %v463_v47 = vshll.u32 %v3413_v60, 16  ;;  %v1643_v42 = vshrl.u32 %v2684_v36, 16  ;;  %v1646_v43 = vshll.u32 %v2684_v36, 16  ;;  %v1634_v53 = vrot.slane %v1632_v40, 5  ;;  %v2685_v60 = vld [vmem:[%s3072_s22 + $0x2c] sm:$0x1] }
  0x5b   : > { %v1607_v1 = vor.u32 %v1606_v54, %v1603_v41  ;;  %v1125_v41 = vpack.c.b16 %v1120_v10, %v1119_v9  ;;  %v1091_v54 = vor.u32 %v1090_v34, %v1087_v33  ;;  %v2874_v29 = vld [vmem:[%s3072_s22 + $0x24] sm:$0xf0]  ;;  %v1674_v34 = vshll.u32 %v2688_v28, 16  ;;  %v2535_v36 = vld [vmem:[%s3072_s22 + $0xc] sm:$0x1] }
  0x5c   : > { %575 = vmatmul.bf16.gmra.mxu1 %v507_v23  ;;  %1192 = vmatmul.bf16.gmra.mxu0 %v1124_v27  ;;  %v470_v23 = vrot.slane %v468_v62, 4  ;;  %v473_v27 = vrot.slane %v471_v63, 5  ;;  %v1645_v57 = vrot.slane %v1643_v42, 4  ;;  %v1648_v58 = vrot.slane %v1646_v43, 5  ;;  %v2534_v33 = vld [vmem:[%s3072_s22 + $0x8] sm:$0xe] }
  0x5d   : > { %1381 = vmatpush.bf16.msra.mxu1 %v2868_v11  ;;  %1995 = vmatpush.bf16.msra.mxu0 %v3406_v52  ;;  %v3426_v11 = vld [vmem:[%s3072_s22 + $0x10] sm:$0xf]  ;;  %v1608_v17 = vrot.slane %v1607_v1, 4  ;;  %v465_v59 = vrot.slane %v463_v47, 5  ;;  %v461_v62 = vrot.slane %v460_v45, 4  ;;  %v1078_v1 = vrot.slane %v1077_v48, 4 }
  0x5e   : > { %940 = vmatmul.bf16.gmra.mxu3 %v2437_v44  ;;  %2935 = vmatpush.bf16.msra.mxu2 %v3364_v5  ;;  %v2633_v32 = vor.u32 %v3429_v12, %v3426_v11  ;;  %v477_v5 = vshll.u32 %v365_v16, 16  ;;  %v2485_v44 = vld [vmem:[%s3072_s22 + $0x44] sm:$0x1]  ;;  %v474_v46 = vor.u32 %v473_v27, %v470_v23  ;;  %v1649_v10 = vor.u32 %v1648_v58, %v1645_v57  ;;  %v2636_v23 = vld [vmem:[%s3072_s22 + $0x20] sm:$0xf] }
  0x5f   : > { %786 = vmatmul.bf16.gmra.mxu2 %v710_v37  ;;  %v1613_v37 = vsel %vm3227_vm5, %v1608_v17, %v1612_v18  ;;  %v1094_v55 = vshll.u32 %v2485_v44, 16  ;;  %v1652_v11 = vshll.u32 %v2685_v60, 16  ;;  %v2686_v27 = vld [vmem:[%s3072_s22 + $0x30] sm:$0xf]  ;;  %v2637_v40 = vor.u32 %v2874_v29, %v2636_v23  ;;  %v2743_v42 = vld [vmem:[%s3072_s22 + $0x14] sm:$0x1] }
  0x60   : > { %v1729_v49 = vunpack.c.l.b16 %v1613_v37  ;;  %v475_v63 = vrot.slane %v474_v46, 4  ;;  %v479_v0 = vrot.slane %v477_v5, 5  ;;  %v1650_v18 = vrot.slane %v1649_v10, 4  ;;  %v2536_v37 = vld [vmem:[%s3072_s22 + $0x10] sm:$0xe] }
  0x61   : > { %1382 = vmatpush.bf16.msra.mxu1 %v2867_v61  ;;  %1996 = vmatpush.bf16.msra.mxu0 %v3419_v2  ;;  %v1622_v61 = vrot.slane %v1621_v19, 4  ;;  %v1096_v9 = vrot.slane %v1094_v55, 5  ;;  %v1654_v19 = vrot.slane %v1652_v11, 5  ;;  %v2742_v44 = vld [vmem:[%s3072_s22 + $0x10] sm:$0xe]  ;;  %v2551_v55 = vrot.slane %v2536_v37, 9 }
  0x62   : > { %2936 = vmatpush.bf16.msra.mxu2 %v3406_v52  ;;  %v1082_v52 = vrot.slane %v1080_v26, 5  ;;  %v480_v12 = vsel %vm3227_vm5, %v475_v63, %v479_v0  ;;  %v2744_v43 = vld [vmem:[%s3072_s22 + $0x18] sm:$0xe]  ;;  %v2745_v45 = vld [vmem:[%s3072_s22 + $0x1c] sm:$0x1]  ;;  %v2758_v57 = vrot.slane %v2742_v44, 9 }
  0x63   : > { %v1627_v38 = vsel %vm3227_vm5, %v1622_v61, %v1626_v20  ;;  %v505_v21 = vunpack.c.l.b16 %v480_v12  ;;  %v1655_v30 = vsel %vm3227_vm5, %v1650_v18, %v1654_v19  ;;  %v1657_v61 = vshrl.u32 %v2686_v27, 16  ;;  %v2875_v18 = vld [vmem:[%s3072_s22 + $0x34] sm:$0xf0]  ;;  %v2690_v23 = vld [vmem:[%s3072_s22 + $0x40] sm:$0xf] }
  0x64   : > { %v1730_v50 = vunpack.c.l.b16 %v1627_v38  ;;  %v1083_v16 = vsel %vm3227_vm5, %v1078_v1, %v1082_v52  ;;  %v2537_v38 = vld [vmem:[%s3072_s22 + $0x14] sm:$0x1]  ;;  %v1732_v5 = vunpack.c.l.b16 %v1655_v30  ;;  %v2759_v60 = vrot.slane %v2744_v43, 9  ;;  %v2693_v44 = vld [vmem:[%s3072_s22 + $0x4c] sm:$0x1] }
  0x65   : > { %1383 = vmatpush.bf16.msra.mxu1 %v2866_v51  ;;  %1997 = vmatpush.bf16.msra.mxu0 %v2894_v24  ;;  %v1631_v51 = vrot.slane %v1629_v39, 4  ;;  %v1121_v22 = vunpack.c.l.b16 %v1083_v16  ;;  %v1659_v46 = vrot.slane %v1657_v61, 4  ;;  %v1270_v56 = vrot.slane %v2537_v38, 5  ;;  %v2538_v16 = vld [vmem:[%s3072_s22 + $0x18] sm:$0xe] }
  0x66   : > { %2937 = vmatpush.bf16.msra.mxu2 %v3419_v2  ;;  %v1737_v3 = vpack.c.b16 %v1730_v50, %v1729_v49  ;;  %v466_v2 = vsel %vm3227_vm5, %v461_v62, %v465_v59  ;;  %v1676_v49 = vrot.slane %v1674_v34, 5  ;;  %v2550_v50 = vrot.slane %v2534_v33, 9  ;;  %v2746_v34 = vld [vmem:[%s3072_s22 + $0x20] sm:$0xe]  ;;  %v2748_v38 = vld [vmem:[%s3072_s22 + $0x28] sm:$0xe] }
  0x67   : > { %v1635_v6 = vor.u32 %v1634_v53, %v1631_v51  ;;  %v504_v20 = vunpack.c.l.b16 %v466_v2  ;;  %v2687_v51 = vld [vmem:[%s3072_s22 + $0x34] sm:$0x1]  ;;  %v2689_v53 = vld [vmem:[%s3072_s22 + $0x3c] sm:$0x1]  ;;  %v1880_v59 = vrot.slane %v2743_v42, 5  ;;  %v1884_v62 = vrot.slane %v2745_v45, 5 }
  0x68   : > { %v1666_v0 = vshll.u32 %v2687_v51, 16  ;;  %v1680_v52 = vshll.u32 %v2689_v53, 16  ;;  %v1685_v29 = vshrl.u32 %v2690_v23, 16  ;;  %v1688_v30 = vshll.u32 %v2690_v23, 16  ;;  %v2753_v23 = vld [vmem:[%s3072_s22 + $0x3c] sm:$0x1] }
  0x69   : > { %1384 = vmatpush.bf16.msra.mxu1 %v2865_v8  ;;  %v1092_v8 = vrot.slane %v1091_v54, 4  ;;  %1998 = vmatpush.bf16.msra.mxu0 %v2893_v4  ;;  %v1636_v13 = vrot.slane %v1635_v6, 4  ;;  %v509_v35 = vpack.c.b16 %v505_v21, %v504_v20  ;;  %v1266_v54 = vrot.slane %v2535_v36, 5 }
  0x6a   : > { %2938 = vmatpush.bf16.msra.mxu2 %v2894_v24  ;;  %v1881_v6 = vsel %vm3090_vm2, %v2758_v57, %v1880_v59  ;;  %v1885_v7 = vsel %vm3090_vm2, %v2759_v60, %v1884_v62  ;;  %v1682_v11 = vrot.slane %v1680_v52, 5  ;;  %v2761_v51 = vrot.slane %v2748_v38, 9 }
  0x6b   : > { %v1097_v17 = vsel %vm3227_vm5, %v1092_v8, %v1096_v9  ;;  %v1641_v24 = vsel %vm3227_vm5, %v1636_v13, %v1640_v15  ;;  %v1668_v9 = vrot.slane %v1666_v0, 5  ;;  %v1927_v13 = vunpack.c.l.b16 %v1881_v6 }
  0x6c   : > { %580 = vmatmul.bf16.gmra.mxu1 %v508_v31  ;;  %1197 = vmatmul.bf16.gmra.mxu0 %v1125_v41  ;;  %v1122_v47 = vunpack.c.l.b16 %v1097_v17  ;;  %v1660_v31 = vshll.u32 %v2686_v27, 16  ;;  %v1731_v41 = vunpack.c.l.b16 %v1641_v24  ;;  %v1928_v15 = vunpack.c.l.b16 %v1885_v7  ;;  %v2640_v17 = vld [vmem:[%s3072_s22 + $0x30] sm:$0xf]  ;;  %v2692_v24 = vld [vmem:[%s3072_s22 + $0x48] sm:$0xf] }
  0x6d   : > { %v2541_v27 = vld [vmem:[%s3072_s22 + $0x24] sm:$0x1]  ;;  %v1699_v61 = vshrl.u32 %v2692_v24, 16  ;;  %v1702_v36 = vshll.u32 %v2692_v24, 16  ;;  %v2641_v37 = vor.u32 %v2875_v18, %v2640_v17  ;;  %v1708_v57 = vshll.u32 %v2693_v44, 16 }
  0x6e   : > { %1801 = vmatmul.bf16.vlgmr.msrb.gmra.mxu3 %v1737_v3  ;;  %2939 = vmatpush.bf16.msra.mxu2 %v2893_v4  ;;  %v1126_v39 = vpack.c.b16 %v1122_v47, %v1121_v22  ;;  %v1662_v48 = vrot.slane %v1660_v31, 5  ;;  %v1738_v58 = vpack.c.b16 %v1732_v5, %v1731_v41  ;;  %v1267_v3 = vsel %vm3090_vm2, %v2550_v50, %v1266_v54  ;;  %v2539_v22 = vld [vmem:[%s3072_s22 + $0x1c] sm:$0x1]  ;;  %v2540_v47 = vld [vmem:[%s3072_s22 + $0x20] sm:$0xe] }
  0x6f   : > { %1539 = vmatmul.bf16.vlgmr.msrb.gmra.mxu2 %v2633_v32  ;;  %v1671_v32 = vshrl.u32 %v2688_v28, 16  ;;  %v1271_v4 = vsel %vm3090_vm2, %v2551_v55, %v1270_v56  ;;  %v1313_v2 = vunpack.c.l.b16 %v1267_v3  ;;  %v2552_v28 = vrot.slane %v2538_v16, 9  ;;  %v2691_v5 = vld [vmem:[%s3072_s22 + $0x44] sm:$0x1]  ;;  %v2544_v16 = vld [vmem:[%s3072_s22 + $0x30] sm:$0xe] }
  0x70   : > { %v1663_v63 = vor.u32 %v1662_v48, %v1659_v46  ;;  %v1314_v12 = vunpack.c.l.b16 %v1271_v4  ;;  %v1935_v31 = vpack.c.b16 %v1928_v15, %v1927_v13  ;;  %v1690_v41 = vrot.slane %v1688_v30, 5  ;;  %v2543_v15 = vld [vmem:[%s3072_s22 + $0x2c] sm:$0x1]  ;;  %v2545_v17 = vld [vmem:[%s3072_s22 + $0x34] sm:$0x1] }
  0x71   : > { %v1673_v26 = vrot.slane %v1671_v32, 4  ;;  %v1701_v42 = vrot.slane %v1699_v61, 4  ;;  %v1704_v43 = vrot.slane %v1702_v36, 5  ;;  %v1274_v45 = vrot.slane %v2539_v22, 5  ;;  %v2751_v22 = vld [vmem:[%s3072_s22 + $0x34] sm:$0x1] }
  0x72   : > { %v1664_v8 = vrot.slane %v1663_v63, 4  ;;  %v1321_v21 = vpack.c.b16 %v1314_v12, %v1313_v2  ;;  %v2553_v46 = vrot.slane %v2540_v47, 9  ;;  %v1278_v48 = vrot.slane %v2541_v27, 5  ;;  %v2542_v2 = vld [vmem:[%s3072_s22 + $0x28] sm:$0xe] }
  0x73   : > { %v1677_v1 = vor.u32 %v1676_v49, %v1673_v26  ;;  %v2760_v26 = vrot.slane %v2746_v34, 9  ;;  %v1694_v55 = vshll.u32 %v2691_v5, 16  ;;  %v1705_v56 = vor.u32 %v1704_v43, %v1701_v42  ;;  %v2752_v47 = vld [vmem:[%s3072_s22 + $0x38] sm:$0xe]  ;;  %v2754_v24 = vld [vmem:[%s3072_s22 + $0x40] sm:$0xe] }
  0x74   : > { %v1669_v19 = vsel %vm3227_vm5, %v1664_v8, %v1668_v9  ;;  %v1279_v59 = vsel %vm3090_vm2, %v2553_v46, %v1278_v48  ;;  %v1710_v52 = vrot.slane %v1708_v57, 5  ;;  %v2755_v27 = vld [vmem:[%s3072_s22 + $0x44] sm:$0x1]  ;;  %v1282_v30 = vrot.slane %v2543_v15, 5 }
  0x75   : > { %v1678_v10 = vrot.slane %v1677_v1, 4  ;;  %v1733_v32 = vunpack.c.l.b16 %v1669_v19  ;;  %v1696_v0 = vrot.slane %v1694_v55, 5  ;;  %v1706_v1 = vrot.slane %v1705_v56, 4 }
  0x76   : > { %v1316_v4 = vunpack.c.l.b16 %v1279_v59  ;;  %v2555_v61 = vrot.slane %v2544_v16, 9  ;;  %v1896_v34 = vrot.slane %v2751_v22, 5  ;;  %v1900_v36 = vrot.slane %v2753_v23, 5  ;;  %v2547_v59 = vld [vmem:[%s3072_s22 + $0x3c] sm:$0x1] }
  0x77   : > { %v1683_v20 = vsel %vm3227_vm5, %v1678_v10, %v1682_v11  ;;  %v1711_v9 = vsel %vm3227_vm5, %v1706_v1, %v1710_v52  ;;  %v2644_v10 = vld [vmem:[%s3072_s22 + $0x40] sm:$0xf]  ;;  %v2876_v11 = vld [vmem:[%s3072_s22 + $0x44] sm:$0xf0]  ;;  %v1904_v38 = vrot.slane %v2755_v27, 5 }
  0x78   : > { %v1734_v33 = vunpack.c.l.b16 %v1683_v20  ;;  %v1736_v19 = vunpack.c.l.b16 %v1711_v9  ;;  %v2645_v20 = vor.u32 %v2876_v11, %v2644_v10 }
  0x7a   : > { %v1739_v49 = vpack.c.b16 %v1734_v33, %v1733_v32  ;;  %v2762_v33 = vrot.slane %v2750_v14, 9 }
  0x7c   : > { %585 = vmatmul.bf16.gmra.mxu1 %v509_v35  ;;  %1202 = vmatmul.bf16.gmra.mxu0 %v1126_v39  ;;  %v2747_v35 = vld [vmem:[%s3072_s22 + $0x24] sm:$0x1]  ;;  %v2749_v39 = vld [vmem:[%s3072_s22 + $0x2c] sm:$0x1]  ;;  %v1897_v44 = vsel %vm3090_vm2, %v2762_v33, %v1896_v34 }
  0x7d   : > { %v1888_v50 = vrot.slane %v2747_v35, 5  ;;  %v1892_v53 = vrot.slane %v2749_v39, 5  ;;  %v2763_v35 = vrot.slane %v2752_v47, 9 }
  0x7e   : > { %1806 = vmatmul.bf16.gmra.mxu3 %v1738_v58  ;;  %v1275_v58 = vsel %vm3090_vm2, %v2552_v28, %v1274_v45  ;;  %v2756_v28 = vld [vmem:[%s3072_s22 + $0x48] sm:$0xe] }
  0x7f   : > { %1544 = vmatmul.bf16.gmra.mxu2 %v2637_v40  ;;  %v1687_v40 = vrot.slane %v1685_v29, 4  ;;  %v1889_v60 = vsel %vm3090_vm2, %v2760_v26, %v1888_v50  ;;  %v1893_v62 = vsel %vm3090_vm2, %v2761_v51, %v1892_v53  ;;  %v1315_v3 = vunpack.c.l.b16 %v1275_v58  ;;  %v2757_v29 = vld [vmem:[%s3072_s22 + $0x4c] sm:$0x1]  ;;  %v2546_v58 = vld [vmem:[%s3072_s22 + $0x38] sm:$0xe] }
  0x80   : > { %v1929_v6 = vunpack.c.l.b16 %v1889_v60  ;;  %v1930_v7 = vunpack.c.l.b16 %v1893_v62  ;;  %v2765_v39 = vrot.slane %v2756_v28, 9  ;;  %v1901_v42 = vsel %vm3090_vm2, %v2763_v35, %v1900_v36  ;;  %v2548_v60 = vld [vmem:[%s3072_s22 + $0x40] sm:$0xe]  ;;  %v2549_v62 = vld [vmem:[%s3072_s22 + $0x44] sm:$0x1]  ;;  %s2816_s22 = sshll.u32 %s3627_s12, 5 }
  0x81   : > { %v1691_v54 = vor.u32 %v1690_v41, %v1687_v40  ;;  %v1322_v12 = vpack.c.b16 %v1316_v4, %v1315_v3  ;;  %v1908_v40 = vrot.slane %v2757_v29, 5  ;;  %v1931_v26 = vunpack.c.l.b16 %v1897_v44  ;;  %s3584_s6 = scalar_lea.vmem %s3616_s2, %s2816_s22 }
  0x82   : > { %v1936_v13 = vpack.c.b16 %v1930_v7, %v1929_v6  ;;  %v2557_v1 = vrot.slane %v2548_v60, 9  ;;  %v1294_v52 = vrot.slane %v2549_v62, 5 }
  0x83   : > { %v1692_v63 = vrot.slane %v1691_v54, 4  ;;  %v1909_v45 = vsel %vm3090_vm2, %v2765_v39, %v1908_v40 }
  0x84   : > { %v1934_v51 = vunpack.c.l.b16 %v1909_v45 }
  0x85   : > { %v1697_v8 = vsel %vm3227_vm5, %v1692_v63, %v1696_v0  ;;  %v2556_v63 = vrot.slane %v2546_v58, 9  ;;  %v1290_v0 = vrot.slane %v2547_v59, 5 }
  0x86   : > { %v1735_v18 = vunpack.c.l.b16 %v1697_v8  ;;  %v1295_v8 = vsel %vm3090_vm2, %v2557_v1, %v1294_v52 }
  0x87   : > { %v1291_v7 = vsel %vm3090_vm2, %v2556_v63, %v1290_v0  ;;  %v1320_v11 = vunpack.c.l.b16 %v1295_v8 }
  0x88   : > { %v1740_v32 = vpack.c.b16 %v1736_v19, %v1735_v18  ;;  %v1319_v10 = vunpack.c.l.b16 %v1291_v7 }
  0x8c   : > { %1385 = vmatmul.bf16.vlgmr.msra.gmra.mxu1 %v1321_v21  ;;  %1999 = vmatmul.bf16.vlgmr.msra.gmra.mxu0 %v1935_v31  ;;  %v2554_v21 = vrot.slane %v2542_v2, 9  ;;  %v1286_v31 = vrot.slane %v2545_v17, 5  ;;  %v1324_v2 = vpack.c.b16 %v1320_v11, %v1319_v10 }
  0x8e   : > { %1811 = vmatmul.bf16.gmra.mxu3 %v1739_v49  ;;  %v1283_v41 = vsel %vm3090_vm2, %v2554_v21, %v1282_v30  ;;  %v1287_v5 = vsel %vm3090_vm2, %v2555_v61, %v1286_v31  ;;  %v1932_v49 = vunpack.c.l.b16 %v1901_v42 }
  0x8f   : > { %1549 = vmatmul.bf16.gmra.mxu2 %v2641_v37  ;;  %v2764_v37 = vrot.slane %v2754_v24, 9  ;;  %v1317_v46 = vunpack.c.l.b16 %v1283_v41  ;;  %v1318_v48 = vunpack.c.l.b16 %v1287_v5 }
  0x90   : > { %v1937_v54 = vpack.c.b16 %v1932_v49, %v1931_v26 }
  0x91   : > { %v1905_v43 = vsel %vm3090_vm2, %v2764_v37, %v1904_v38  ;;  %v1323_v53 = vpack.c.b16 %v1318_v48, %v1317_v46 }
  0x92   : > { %v1933_v50 = vunpack.c.l.b16 %v1905_v43 }
  0x94   : > { %v1938_v57 = vpack.c.b16 %v1934_v51, %v1933_v50 }
  0x9c   : > { %1390 = vmatmul.bf16.gmra.mxu1 %v1322_v12  ;;  %2004 = vmatmul.bf16.gmra.mxu0 %v1936_v13 }
  0x9e   : > { %1816 = vmatmul.bf16.gmra.mxu3 %v1740_v32 }
  0x9f   : > { %1554 = vmatmul.bf16.gmra.mxu2 %v2645_v20 }
  0xa9   : > { %v332_v55 = vpop.f32.mrf.mxu1  ;;  %v322_v56 = vpop.f32.mrf.mxu0 }
  0xac   : > { %1395 = vmatmul.bf16.gmra.mxu1 %v1323_v53  ;;  %2009 = vmatmul.bf16.gmra.mxu0 %v1937_v54 }
  0xaf   : > { %2014 = vmatmul.bf16.vlgmr.msra.gmra.mxu2 %v1938_v57 }
  0xb1   : > { %v334_v4 = vpop.f32.mrf.mxu1  ;;  %v324_v6 = vpop.f32.mrf.mxu0 }
  0xb2   : > { %v772_v3 = vpop.f32.mrf.mxu2  ;;  %v926_v9 = vpop.f32.mrf.mxu3 }
  0xb9   : > { %v337_v13 = vpop.f32.mrf.mxu1  ;;  %v327_v15 = vpop.f32.mrf.mxu0 }
  0xba   : > { %v774_v12 = vpop.f32.mrf.mxu2  ;;  %v3555_v16 = vpop.f32.mrf.mxu3 }
  0xbc   : > { %1400 = vmatmul.bf16.gmra.mxu1 %v1324_v2 }
  0xc1   : > { %v339_v18 = vpop.f32.mrf.mxu1  ;;  %v329_v19 = vpop.f32.mrf.mxu0 }
  0xc2   : > { %v777_v17 = vpop.f32.mrf.mxu2  ;;  %v931_v20 = vpop.f32.mrf.mxu3 }
  0xc9   : > { %v571_v14 = vpop.f32.mrf.mxu1  ;;  %v1188_v22 = vpop.f32.mrf.mxu0 }
  0xca   : > { %v779_v21 = vpop.f32.mrf.mxu2  ;;  %v599_v47 = vadd.f32 %v571_v14, %v322_v56  ;;  %v3557_v23 = vpop.f32.mrf.mxu3 }
  0xcc   : > { %v800_v25 = vadd.f32 %v772_v3, %v599_v47 }
  0xce   : > { %v954_v24 = vadd.f32 %v926_v9, %v800_v25 }
  0xd0   : > { %v1216_v27 = vadd.f32 %v1188_v22, %v954_v24 }
  0xd1   : > { %v573_v29 = vpop.f32.mrf.mxu1  ;;  %v1190_v30 = vpop.f32.mrf.mxu0 }
  0xd2   : > { %v782_v28 = vpop.f32.mrf.mxu2  ;;  %v600_v61 = vadd.f32 %v573_v29, %v324_v6  ;;  %v936_v32 = vpop.f32.mrf.mxu3 }
  0xd4   : > { %v801_v31 = vadd.f32 %v774_v12, %v600_v61 }
  0xd9   : > { %v576_v34 = vpop.f32.mrf.mxu1  ;;  %v1193_v35 = vpop.f32.mrf.mxu0 }
  0xda   : > { %v784_v33 = vpop.f32.mrf.mxu2  ;;  %v601_v36 = vadd.f32 %v576_v34, %v327_v15  ;;  %v3559_v41 = vpop.f32.mrf.mxu3  ;;  %v955_v15 = vadd.f32 %v3555_v16, %v801_v31 }
  0xdc   : > { %v802_v37 = vadd.f32 %v777_v17, %v601_v36 }
  0xde   : > { %v956_v38 = vadd.f32 %v931_v20, %v802_v37 }
  0xe0   : > { %v1218_v39 = vadd.f32 %v1193_v35, %v956_v38 }
  0xe1   : > { %v578_v5 = vpop.f32.mrf.mxu1  ;;  %v1195_v44 = vpop.f32.mrf.mxu0 }
  0xe2   : > { %v787_v40 = vpop.f32.mrf.mxu2  ;;  %v602_v42 = vadd.f32 %v578_v5, %v329_v19  ;;  %v3561_v49 = vpop.f32.mrf.mxu3 }
  0xe4   : > { %v803_v43 = vadd.f32 %v779_v21, %v602_v42 }
  0xe9   : > { %v581_v46 = vpop.f32.mrf.mxu1  ;;  %v1198_v48 = vpop.f32.mrf.mxu0 }
  0xea   : > { %v789_v45 = vpop.f32.mrf.mxu2  ;;  %v603_v26 = vadd.f32 %v581_v46, %v332_v55  ;;  %v3569_v60 = vpop.f32.mrf.mxu3 }
  0xec   : > { %v804_v50 = vadd.f32 %v782_v28, %v603_v26 }
  0xee   : > { %v958_v51 = vadd.f32 %v936_v32, %v804_v50 }
  0xf0   : > { %v3563_v53 = vadd.f32 %v1198_v48, %v958_v51 }
  0xf1   : > { %v583_v56 = vpop.f32.mrf.mxu1  ;;  %v3565_v57 = vpop.f32.mrf.mxu0 }
  0xf2   : > { %v1540_v54 = vpop.f32.mrf.mxu2  ;;  %v604_v58 = vadd.f32 %v583_v56, %v334_v4  ;;  %v1802_v52 = vpop.f32.mrf.mxu3 }
  0xf4   : > { %v3567_v59 = vadd.f32 %v784_v33, %v604_v58  ;;  %v957_v33 = vadd.f32 %v3557_v23, %v803_v43 }
  0xf9   : > { %v586_v63 = vpop.f32.mrf.mxu1  ;;  %v3571_v0 = vpop.f32.mrf.mxu0 }
  0xfa   : > { %v1542_v62 = vpop.f32.mrf.mxu2  ;;  %v605_v55 = vadd.f32 %v586_v63, %v337_v13  ;;  %v1804_v4 = vpop.f32.mrf.mxu3  ;;  %v1217_v13 = vadd.f32 %v1190_v30, %v955_v15 }
  0xfc   : > { %v3573_v1 = vadd.f32 %v787_v40, %v605_v55  ;;  %v1219_v40 = vadd.f32 %v1195_v44, %v957_v33 }
 0x101   : > { %v588_v6 = vpop.f32.mrf.mxu1  ;;  %v3575_v7 = vpop.f32.mrf.mxu0 }
 0x102   : > { %v1545_v3 = vpop.f32.mrf.mxu2  ;;  %v606_v8 = vadd.f32 %v588_v6, %v339_v18  ;;  %v1807_v22 = vpop.f32.mrf.mxu3 }
 0x104   : > { %v3577_v9 = vadd.f32 %v789_v45, %v606_v8 }
 0x109   : > { %v1386_v10 = vpop.f32.mrf.mxu1  ;;  %v2000_v11 = vpop.f32.mrf.mxu0 }
 0x10a   : > { %v1414_v2 = vadd.f32 %v1386_v10, %v1216_v27  ;;  %v1547_v12 = vpop.f32.mrf.mxu2  ;;  %v1809_v36 = vpop.f32.mrf.mxu3 }
 0x10c   : > { %v1568_v17 = vadd.f32 %v1540_v54, %v1414_v2 }
 0x10e   : > { %v1830_v19 = vadd.f32 %v1802_v52, %v1568_v17  ;;  %v959_v52 = vadd.f32 %v3559_v41, %v3567_v59 }
 0x110   : > { %v2028_v25 = vadd.f32 %v2000_v11, %v1830_v19 }
 0x111   : > { %v1388_v20 = vpop.f32.mrf.mxu1  ;;  %v2002_v21 = vpop.f32.mrf.mxu0 }
 0x112   : > { %v1415_v14 = vadd.f32 %v1388_v20, %v1217_v13  ;;  %v1550_v18 = vpop.f32.mrf.mxu2  ;;  %v2081_v29 = vmul.f32 %v2028_v25, %v2028_v25 }
 0x114   : > { %v1569_v47 = vadd.f32 %v1542_v62, %v1415_v14 }
 0x116   : > { %v1831_v24 = vadd.f32 %v1804_v4, %v1569_v47  ;;  %v1221_v4 = vadd.f32 %v3565_v57, %v959_v52 }
 0x118   : > { %v2029_v28 = vadd.f32 %v2002_v21, %v1831_v24 }
 0x119   : > { %v1391_v16 = vpop.f32.mrf.mxu1  ;;  %v2005_v27 = vpop.f32.mrf.mxu0 }
 0x11a   : > { %v2904_v30 = vpack.c.bf16 %v2029_v28, %v2028_v25  ;;  %v2068_v61 = vadd.f32 %v2029_v28, %v2028_v25  ;;  %v2082_v31 = vmul.f32 %v2029_v28, %v2029_v28  ;;  %v1416_v32 = vadd.f32 %v1391_v16, %v1218_v39  ;;  %v1552_v38 = vpop.f32.mrf.mxu2  ;;  %v1812_v39 = vpop.f32.mrf.mxu3 }
 0x11b   : > { %v961_v28 = vadd.f32 %v3569_v60, %v3577_v9 }
 0x11c   : > { %2905 = vst [vmem:[%s3584_s6] sm:$0xff] %v2904_v30   ;;  %v2089_v34 = vadd.f32 %v2082_v31, %v2081_v29  ;;  %v1570_v35 = vadd.f32 %v1545_v3, %v1416_v32 }
 0x11e   : > { %v1832_v37 = vadd.f32 %v1807_v22, %v1570_v35 }
 0x120   : > { %v2030_v5 = vadd.f32 %v2005_v27, %v1832_v37  ;;  %v1223_v27 = vadd.f32 %v3575_v7, %v961_v28 }
 0x121   : > { %v1393_v42 = vpop.f32.mrf.mxu1  ;;  %v2007_v45 = vpop.f32.mrf.mxu0 }
 0x122   : > { %v2069_v46 = vadd.f32 %v2068_v61, %v2030_v5  ;;  %v2083_v48 = vmul.f32 %v2030_v5, %v2030_v5  ;;  %v1417_v26 = vadd.f32 %v1393_v42, %v1219_v40  ;;  %v1555_v23 = vpop.f32.mrf.mxu2  ;;  %v1814_v11 = vpop.f32.mrf.mxu3 }
 0x124   : > { %v2090_v50 = vadd.f32 %v2089_v34, %v2083_v48  ;;  %v1571_v51 = vadd.f32 %v1547_v12, %v1417_v26 }
 0x126   : > { %v1833_v54 = vadd.f32 %v1809_v36, %v1571_v51 }
 0x128   : > { %v2031_v56 = vadd.f32 %v2007_v45, %v1833_v54 }
 0x129   : > { %v1396_v43 = vpop.f32.mrf.mxu1  ;;  %v2010_v44 = vpop.f32.mrf.mxu0 }
 0x12a   : > { %v2909_v58 = vpack.c.bf16 %v2031_v56, %v2030_v5  ;;  %v2070_v62 = vadd.f32 %v2069_v46, %v2031_v56  ;;  %v2084_v63 = vmul.f32 %v2031_v56, %v2031_v56  ;;  %v1418_v55 = vadd.f32 %v1396_v43, %v3563_v53  ;;  %v1557_v13 = vpop.f32.mrf.mxu2  ;;  %v1817_v24 = vpop.f32.mrf.mxu3 }
 0x12b   : > { %v960_v53 = vadd.f32 %v3561_v49, %v3573_v1 }
 0x12c   : > { %2921 = vst [vmem:[%s3584_s6 + $0x8] sm:$0xff] %v2909_v58   ;;  %v2091_v3 = vadd.f32 %v2090_v50, %v2084_v63  ;;  %v1572_v6 = vadd.f32 %v1550_v18, %v1418_v55 }
 0x12d   : > { %v1222_v21 = vadd.f32 %v3571_v0, %v960_v53 }
 0x12e   : > { %v1834_v8 = vadd.f32 %v1812_v39, %v1572_v6 }
 0x130   : > { %v2032_v10 = vadd.f32 %v2010_v44, %v1834_v8 }
 0x131   : > { %v1398_v2 = vpop.f32.mrf.mxu1  ;;  %v2012_v41 = vpop.f32.mrf.mxu0 }
 0x132   : > { %v2071_v12 = vadd.f32 %v2070_v62, %v2032_v10  ;;  %v2085_v15 = vmul.f32 %v2032_v10, %v2032_v10  ;;  %v1419_v17 = vadd.f32 %v1398_v2, %v1221_v4  ;;  %v2015_v49 = vpop.f32.mrf.mxu2  ;;  %v1819_v35 = vpop.f32.mrf.mxu3 }
 0x134   : > { %v2092_v19 = vadd.f32 %v2091_v3, %v2085_v15  ;;  %v1573_v20 = vadd.f32 %v1552_v38, %v1419_v17 }
 0x136   : > { %v1835_v59 = vadd.f32 %v1814_v11, %v1573_v20 }
 0x138   : > { %v2033_v14 = vadd.f32 %v2012_v41, %v1835_v59 }
 0x139   : > { %v1401_v22 = vpop.f32.mrf.mxu1 }
 0x13a   : > { %v2914_v57 = vpack.c.bf16 %v2033_v14, %v2032_v10  ;;  %v2072_v47 = vadd.f32 %v2071_v12, %v2033_v14  ;;  %v2086_v25 = vmul.f32 %v2033_v14, %v2033_v14  ;;  %v1420_v18 = vadd.f32 %v1401_v22, %v1222_v21  ;;  %v2017_v37 = vpop.f32.mrf.mxu2 }
 0x13c   : > { %2922 = vst [vmem:[%s3584_s6 + $0x10] sm:$0xff] %v2914_v57   ;;  %v2093_v29 = vadd.f32 %v2092_v19, %v2086_v25  ;;  %v1574_v16 = vadd.f32 %v1555_v23, %v1420_v18 }
 0x13e   : > { %v1836_v1 = vadd.f32 %v1817_v24, %v1574_v16 }
 0x140   : > { %v2034_v30 = vadd.f32 %v2015_v49, %v1836_v1 }
 0x141   : > { %v1403_v0 = vpop.f32.mrf.mxu1 }
 0x142   : > { %v2073_v61 = vadd.f32 %v2072_v47, %v2034_v30  ;;  %v2087_v31 = vmul.f32 %v2034_v30, %v2034_v30  ;;  %v1421_v32 = vadd.f32 %v1403_v0, %v1223_v27 }
 0x144   : > { %v2094_v33 = vadd.f32 %v2093_v29, %v2087_v31  ;;  %v1575_v34 = vadd.f32 %v1557_v13, %v1421_v32 }
 0x146   : > { %v1837_v36 = vadd.f32 %v1819_v35, %v1575_v34 }
 0x148   : > { %v2035_v60 = vadd.f32 %v2017_v37, %v1837_v36 }
 0x14a   : > { %v2919_v9 = vpack.c.bf16 %v2035_v60, %v2034_v30  ;;  %v2074_v38 = vadd.f32 %v2073_v61, %v2035_v60  ;;  %v2088_v40 = vmul.f32 %v2035_v60, %v2035_v60 }
 0x14c   : > { %2923 = vst [vmem:[%s3584_s6 + $0x18] sm:$0xff] %v2919_v9   ;;  %v2075_v5 = vrot.slane %v2074_v38, 4  ;;  %v2095_v42 = vadd.f32 %v2094_v33, %v2088_v40 }
 0x14e   : > { %v2076_v45 = vadd.f32 %v2075_v5, %v2074_v38  ;;  %v2096_v7 = vrot.slane %v2095_v42, 4 }
 0x150   : > { %v2077_v46 = vrot.slane %v2076_v45, 2  ;;  %v2097_v48 = vadd.f32 %v2096_v7, %v2095_v42 }
 0x152   : > { %v2078_v26 = vadd.f32 %v2077_v46, %v2076_v45  ;;  %v2098_v50 = vrot.slane %v2097_v48, 2 }
 0x154   : > { %v2079_v51 = vrot.slane %v2078_v26, 1  ;;  %v2099_v54 = vadd.f32 %v2098_v50, %v2097_v48 }
 0x156   : > { %v2100_v39 = vrot.slane %v2099_v54, 1  ;;  %v2080_v56 = vadd.f32 %v2079_v51, %v2078_v26 }
 0x158   : > { %v2101_v23 = vadd.f32 %v2100_v39, %v2099_v54 }
 0x15a   : > { %v2103_v43 = vsel %vm2102_vm6, %v2080_v56, %v2101_v23 }
 0x15b   : > { %2104 = vst [vmem:[%s212_s10] sm:$0x3] %v2103_v43 }
 0x15c PF: > { %s14_s14 = sadd.s32 1, %s2987_s14   ;;  %s3622_s12 = smov %s2983_s13 }
 0x15d   : > { %p11_p5 = scmp.ge.s32.totalorder %s14_s14, 4   ;;  %s3623_s13 = smov %s3625_s15 }
 0x15f   :  { %13 = sbr.rel (!%p11_p5) target bundleno = 2 (0x2), region = 81 }

</bundles_post_ra>
